<compile_context>
chip_gen: v7x
topology: tpu7x:2x2x1
jax: 0.10.0
libtpu: 0.0.40
codegen_flags: <defaults>
</compile_context>

<pallas_src>
import functools

import jax
import jax.numpy as jnp
from jax.experimental import pallas as pl
from jax.experimental.pallas import tpu as pltpu


# ----------------------------------------------------------------------------
# Fused kernel: all LSTM layers + linear head + softmax, chunked over time.
# ----------------------------------------------------------------------------
def _lstm_model_kernel(*args, num_layers, H_pad, Tc):
    # args = x_chunk, h0, c0, (w_ih_t, w_hh_t, bias) * num_layers,
    #        lin_w_t, lin_b, out, xproj_sc, seq_sc, h_state, c_state
    x_ref, h0_ref, c0_ref = args[0], args[1], args[2]
    p = 3
    layer_refs = []
    for _ in range(num_layers):
        layer_refs.append((args[p], args[p + 1], args[p + 2]))
        p += 3
    lin_w_ref, lin_b_ref = args[p], args[p + 1]
    out_ref = args[p + 2]
    xproj_sc = args[p + 3]          # (Tc, B, 4*H_pad) bf16 — input projections
    seq_sc = args[p + 4]            # (Tc, B, H_pad)   bf16 — inter-layer acts
    h_state = args[p + 5]           # (L,  B, H_pad)   f32  — carried h
    c_state = args[p + 6]           # (L,  B, H_pad)   f32  — carried c

    _, B, F = x_ref.shape
    G = 4 * H_pad
    chunk = pl.program_id(0)
    n_chunks = pl.num_programs(0)

    # Initialise carried state from h0/c0 at the first chunk.
    @pl.when(chunk == 0)
    def _init():
        h_state[...] = h0_ref[...]
        c_state[...] = c0_ref[...]

    h_last = None
    for layer, (wih_ref, whh_ref, b_ref) in enumerate(layer_refs):
        is_last = layer == num_layers - 1

        # (1) Input projection for ALL timesteps of this chunk in one big MXU
        #     matmul (bf16 x bf16 -> f32 acc), hoisted out of the recurrence.
        if layer == 0:
            src2d = x_ref[...].reshape(Tc * B, F)              # bf16
        else:
            src2d = seq_sc[...].reshape(Tc * B, H_pad)         # bf16
        xp = jnp.dot(src2d, wih_ref[...],
                     preferred_element_type=jnp.float32) + b_ref[...]
        xproj_sc[...] = xp.reshape(Tc, B, G).astype(jnp.bfloat16)

        w_hh = whh_ref[...]          # bf16 (H_pad, 4*H_pad), resident

        # (2) Serial recurrence: only h @ W_hh^T per step; h/c carried in
        #     vregs (f32).  Gate slices are lane-aligned (H_pad % 128 == 0).
        def step(t, carry, *, w_hh=w_hh, is_last=is_last):
            h, c = carry
            gates = xproj_sc[t].astype(jnp.float32) + jnp.dot(
                h.astype(jnp.bfloat16), w_hh,
                preferred_element_type=jnp.float32)            # (B, 4*H_pad)
            i_g = jax.nn.sigmoid(gates[:, 0 * H_pad:1 * H_pad])
            f_g = jax.nn.sigmoid(gates[:, 1 * H_pad:2 * H_pad])
            g_g = jnp.tanh(gates[:, 2 * H_pad:3 * H_pad])
            o_g = jax.nn.sigmoid(gates[:, 3 * H_pad:4 * H_pad])
            c_new = f_g * c + i_g * g_g
            h_new = o_g * jnp.tanh(c_new)
            if not is_last:
                seq_sc[t] = h_new.astype(jnp.bfloat16)   # next layer's input
            return (h_new, c_new)

        h_fin, c_fin = jax.lax.fori_loop(
            0, Tc, step,
            (h_state[layer], c_state[layer]),
            unroll=min(Tc, 8))                    # bounded unroll (no vreg blowup)

        h_state[layer] = h_fin                     # carry to next chunk
        c_state[layer] = c_fin
        h_last = h_fin

        # TODO(synk): hold W_hh in MXU weight registers across the time loop
        # (pltpu.matmul_push_rhs / matmul_acc_lhs / matmul_pop) to avoid
        # re-streaming the RHS every step when B is small.

    # (3) Fused classification head + softmax, only at the final chunk.
    @pl.when(chunk == n_chunks - 1)
    def _head():
        z = jnp.dot(h_last.astype(jnp.bfloat16), lin_w_ref[...],
                    preferred_element_type=jnp.float32) + lin_b_ref[...]
        z = z - jnp.max(z, axis=-1, keepdims=True)   # padded cols are -1e30
        e = jnp.exp(z)
        inv = pl.reciprocal(jnp.sum(e, axis=-1, keepdims=True), approx=True)
        out_ref[...] = (e * inv).astype(out_ref.dtype)


# ----------------------------------------------------------------------------
# Parameter layout helpers (lane-align each gate block to H_pad columns).
# ----------------------------------------------------------------------------
def _round_up(n, m):
    return ((n + m - 1) // m) * m


def _choose_chunk(t, cap=64):
    # Largest divisor of t that is <= cap (so chunks tile T exactly).
    best = 1
    for d in range(1, min(t, cap) + 1):
        if t % d == 0:
            best = d
    return best


def _expand_gate_cols(w, H, H_pad):
    # w: (4H, in_dim) torch layout -> (in_dim, 4*H_pad); each gate block padded
    # with zero columns so gate slices in the kernel are lane-aligned.
    blocks = []
    for k in range(4):
        blk = w[k * H:(k + 1) * H, :].T                      # (in_dim, H)
        blocks.append(jnp.pad(blk, ((0, 0), (0, H_pad - H))))
    return jnp.concatenate(blocks, axis=1)                   # (in_dim, 4*H_pad)


def _expand_gate_bias(b, H, H_pad):
    segs = [jnp.pad(b[k * H:(k + 1) * H], (0, H_pad - H)) for k in range(4)]
    return jnp.concatenate(segs).reshape(1, -1)              # (1, 4*H_pad)


# ----------------------------------------------------------------------------
# Wrapper: pad batch/hidden/out dims, go time-major, launch one kernel.
# ----------------------------------------------------------------------------
def lstm_model_forward(x_btf, params, h0, c0, *, t_chunk_max=64):
    """x_btf: (B, T, F) batch_first; h0/c0: (num_layers, B, H).

    params: torch-layout f32 weights {"lstm": [(w_ih, w_hh, b_ih, b_hh)...],
    "lin_w": (O, H), "lin_b": (O,)}.
    """
    B, T, F = x_btf.shape
    num_layers, _, H = h0.shape
    O = params["lin_w"].shape[0]

    H_pad = _round_up(H, 128)              # lane-aligned gate blocks
    O_pad = _round_up(O, 128)              # unmasked output stores
    B_pad = max(8, _round_up(B, 8))        # full sublane tiles
    Tc = _choose_chunk(T, t_chunk_max)     # time chunk (bounds VMEM)
    n_chunks = T // Tc

    # --- pad batch / hidden state -------------------------------------------
    if B_pad != B:
        x_btf = jnp.pad(x_btf, ((0, B_pad - B), (0, 0), (0, 0)))
        h0 = jnp.pad(h0, ((0, 0), (0, B_pad - B), (0, 0)))
        c0 = jnp.pad(c0, ((0, 0), (0, B_pad - B), (0, 0)))
    h0 = jnp.pad(h0, ((0, 0), (0, 0), (0, H_pad - H))).astype(jnp.float32)
    c0 = jnp.pad(c0, ((0, 0), (0, 0), (0, H_pad - H))).astype(jnp.float32)

    x_tbf = jnp.transpose(x_btf, (1, 0, 2)).astype(jnp.bfloat16)  # (T, B_pad, F)

    # --- weights: bf16, per-gate lane padding, zero rows for padded H -------
    layer_ins = []
    for layer, (w_ih, w_hh, b_ih, b_hh) in enumerate(params["lstm"]):
        in_dim = w_ih.shape[1]
        w_ih_t = _expand_gate_cols(w_ih, H, H_pad)           # (in_dim, 4*H_pad)
        if layer > 0:
            w_ih_t = jnp.pad(w_ih_t, ((0, H_pad - in_dim), (0, 0)))
        w_hh_t = jnp.pad(_expand_gate_cols(w_hh, H, H_pad),
                         ((0, H_pad - H), (0, 0)))           # (H_pad, 4*H_pad)
        bias = _expand_gate_bias(b_ih + b_hh, H, H_pad)      # f32
        layer_ins += [w_ih_t.astype(jnp.bfloat16),
                      w_hh_t.astype(jnp.bfloat16),
                      bias.astype(jnp.float32)]

    lin_w_t = jnp.pad(params["lin_w"].T,
                      ((0, H_pad - H), (0, O_pad - O))).astype(jnp.bfloat16)
    lin_b = jnp.pad(params["lin_b"].reshape(1, -1), ((0, 0), (0, O_pad - O)),
                    constant_values=-1e30).astype(jnp.float32)  # kill pad logits

    inputs = [x_tbf, h0, c0] + layer_ins + [lin_w_t, lin_b]

    # --- specs ---------------------------------------------------------------
    def _const_map(ndim):
        return lambda c: (0,) * ndim

    in_specs = [pl.BlockSpec((Tc, B_pad, F), lambda c: (c, 0, 0))]   # x chunks
    in_specs += [pl.BlockSpec(h0.shape, _const_map(3)),
                 pl.BlockSpec(c0.shape, _const_map(3))]
    for arr in layer_ins:
        in_specs.append(pl.BlockSpec(arr.shape, _const_map(arr.ndim)))
    in_specs += [pl.BlockSpec(lin_w_t.shape, _const_map(2)),
                 pl.BlockSpec(lin_b.shape, _const_map(2))]
    out_spec = pl.BlockSpec((B_pad, O_pad), lambda c: (0, 0))

    scratch_shapes = [
        pltpu.VMEM((Tc, B_pad, 4 * H_pad), jnp.bfloat16),   # input projections
        pltpu.VMEM((Tc, B_pad, H_pad), jnp.bfloat16),       # inter-layer acts
        pltpu.VMEM((num_layers, B_pad, H_pad), jnp.float32),  # carried h
        pltpu.VMEM((num_layers, B_pad, H_pad), jnp.float32),  # carried c
    ]

    # --- VMEM budget (static shapes) -----------------------------------------
    def _nbytes(a):
        return int(a.size) * a.dtype.itemsize

    need = (sum(_nbytes(a) for a in layer_ins)
            + _nbytes(lin_w_t) + _nbytes(lin_b)
            + 2 * Tc * B_pad * F * 2                 # x chunk, double-buffered bf16
            + 2 * num_layers * B_pad * H_pad * 4     # h0/c0 inputs (f32)
            + 2 * num_layers * B_pad * H_pad * 4     # h/c state scratch (f32)
            + Tc * B_pad * (4 * H_pad + H_pad) * 2   # bf16 scratches
            + B_pad * O_pad * 4)                     # output
    # Conservative cross-generation cap (v7x physical VMEM is 64 MiB).
    vmem_limit = int(min(max(32 << 20, 2 * need + (4 << 20)), 64 << 20))

    kernel = functools.partial(_lstm_model_kernel,
                               num_layers=num_layers, H_pad=H_pad, Tc=Tc)

    # TODO(synk): for large batches on v7x, add a leading "parallel" grid axis
    # over batch tiles so both TensorCores run independent batch slices.
    out = pl.pallas_call(
        kernel,
        out_shape=jax.ShapeDtypeStruct((B_pad, O_pad), jnp.float32),
        grid_spec=pltpu.PrefetchScalarGridSpec(
            num_scalar_prefetch=0,
            grid=(n_chunks,),
            in_specs=in_specs,
            out_specs=out_spec,
            scratch_shapes=scratch_shapes),
        compiler_params=pltpu.CompilerParams(
            dimension_semantics=("arbitrary",),       # recurrence across chunks
            vmem_limit_bytes=vmem_limit),
    )(*inputs)
    return out[:B, :O]


# ----------------------------------------------------------------------------
# Deterministic parameter init (torch nn.LSTM / nn.Linear layouts, f32).
# ----------------------------------------------------------------------------
def init_params(key, num_features, hidden_dim, num_layers, out_dim):
    scale = 1.0 / jnp.sqrt(jnp.float32(hidden_dim))
    lstm_params = []
    for layer in range(num_layers):
        in_dim = num_features if layer == 0 else hidden_dim
        key, k1, k2, k3, k4 = jax.random.split(key, 5)
        w_ih = jax.random.uniform(k1, (4 * hidden_dim, in_dim),
                                  jnp.float32, -scale, scale)
        w_hh = jax.random.uniform(k2, (4 * hidden_dim, hidden_dim),
                                  jnp.float32, -scale, scale)
        b_ih = jax.random.uniform(k3, (4 * hidden_dim,),
                                  jnp.float32, -scale, scale)
        b_hh = jax.random.uniform(k4, (4 * hidden_dim,),
                                  jnp.float32, -scale, scale)
        lstm_params.append((w_ih, w_hh, b_ih, b_hh))
    key, k5, k6 = jax.random.split(key, 3)
    lin_w = jax.random.uniform(k5, (out_dim, hidden_dim),
                               jnp.float32, -scale, scale)
    lin_b = jax.random.uniform(k6, (out_dim,), jnp.float32, -scale, scale)
    return {"lstm": lstm_params, "lin_w": lin_w, "lin_b": lin_b}


# Pure-JAX f32 reference (same math, torch layout) for a correctness check.
def _reference(x_btf, params, h0, c0):
    B, T, F = x_btf.shape
    H = h0.shape[-1]
    seq = x_btf
    for layer, (w_ih, w_hh, b_ih, b_hh) in enumerate(params["lstm"]):
        h, c = h0[layer], c0[layer]
        outs = []
        for t in range(T):
            gates = seq[:, t, :] @ w_ih.T + h @ w_hh.T + b_ih + b_hh
            i = jax.nn.sigmoid(gates[:, 0 * H:1 * H])
            f = jax.nn.sigmoid(gates[:, 1 * H:2 * H])
            g = jnp.tanh(gates[:, 2 * H:3 * H])
            o = jax.nn.sigmoid(gates[:, 3 * H:4 * H])
            c = f * c + i * g
            h = o * jnp.tanh(c)
            outs.append(h)
        seq = jnp.stack(outs, axis=1)
    z = seq[:, -1, :] @ params["lin_w"].T + params["lin_b"]
    return jax.nn.softmax(z, axis=-1)


if __name__ == "__main__":
    # Small shapes consistent with the module: x (B, T, F), y (B, O)
    B, T, F = 2, 8, 8
    hidden_dim, num_layers, out_dim = 32, 2, 4

    key = jax.random.PRNGKey(0)
    kx, kp = jax.random.split(key)
    x = jax.random.normal(kx, (B, T, F), jnp.float32)
    params = init_params(kp, F, hidden_dim, num_layers, out_dim)

    # zero_initial_h_c=True -> zeros (matches module's make_initial_h0_c0)
    h0 = jnp.zeros((num_layers, B, hidden_dim), jnp.float32)
    c0 = jnp.zeros((num_layers, B, hidden_dim), jnp.float32)

    fwd = jax.jit(lstm_model_forward)
    out = jax.block_until_ready(fwd(x, params, h0, c0))

    ref = _reference(x, params, h0, c0)
    assert out.shape == (B, out_dim)
    # bf16 weights / activations in the kernel -> looser tolerance vs f32 ref.
    assert jnp.allclose(out, ref, atol=2e-2, rtol=2e-2), \
        float(jnp.max(jnp.abs(out - ref)))

    print("KERNEL_OK")
</pallas_src>

<mosaic_0001>
module attributes {stable_mosaic.version = 11 : i64} {
  func.func @_lstm_model_kernel(%arg0: i32, %arg1: memref<8x8x8xbf16, #tpu.memory_space<vmem>>, %arg2: memref<2x8x128xf32, #tpu.memory_space<vmem>>, %arg3: memref<2x8x128xf32, #tpu.memory_space<vmem>>, %arg4: memref<8x512xbf16, #tpu.memory_space<vmem>>, %arg5: memref<128x512xbf16, #tpu.memory_space<vmem>>, %arg6: memref<1x512xf32, #tpu.memory_space<vmem>>, %arg7: memref<128x512xbf16, #tpu.memory_space<vmem>>, %arg8: memref<128x512xbf16, #tpu.memory_space<vmem>>, %arg9: memref<1x512xf32, #tpu.memory_space<vmem>>, %arg10: memref<128x128xbf16, #tpu.memory_space<vmem>>, %arg11: memref<1x128xf32, #tpu.memory_space<vmem>>, %arg12: memref<8x128xf32, #tpu.memory_space<vmem>>, %arg13: memref<8x8x512xbf16, #tpu.memory_space<vmem>>, %arg14: memref<8x8x128xbf16, #tpu.memory_space<vmem>>, %arg15: memref<2x8x128xf32, #tpu.memory_space<vmem>>, %arg16: memref<2x8x128xf32, #tpu.memory_space<vmem>>) attributes {dimension_semantics = [#tpu.dimension_semantics<arbitrary>], iteration_bounds = array<i64: 1>, scalar_prefetch = 0 : i64, scratch_operands = 4 : i64, tpu.core_type = #tpu.core_type<tc>, window_params = [{transform_indices = @transform_0, window_bounds = array<i64: 8, 8, 8>}, {pipeline_mode = #tpu.pipeline_mode<synchronous>, transform_indices = @transform_1, window_bounds = array<i64: 2, 8, 128>}, {pipeline_mode = #tpu.pipeline_mode<synchronous>, transform_indices = @transform_2, window_bounds = array<i64: 2, 8, 128>}, {pipeline_mode = #tpu.pipeline_mode<synchronous>, transform_indices = @transform_3, window_bounds = array<i64: 8, 512>}, {pipeline_mode = #tpu.pipeline_mode<synchronous>, transform_indices = @transform_4, window_bounds = array<i64: 128, 512>}, {pipeline_mode = #tpu.pipeline_mode<synchronous>, transform_indices = @transform_5, window_bounds = array<i64: 1, 512>}, {pipeline_mode = #tpu.pipeline_mode<synchronous>, transform_indices = @transform_6, window_bounds = array<i64: 128, 512>}, {pipeline_mode = #tpu.pipeline_mode<synchronous>, transform_indices = @transform_7, window_bounds = array<i64: 128, 512>}, {pipeline_mode = #tpu.pipeline_mode<synchronous>, transform_indices = @transform_8, window_bounds = array<i64: 1, 512>}, {pipeline_mode = #tpu.pipeline_mode<synchronous>, transform_indices = @transform_9, window_bounds = array<i64: 128, 128>}, {pipeline_mode = #tpu.pipeline_mode<synchronous>, transform_indices = @transform_10, window_bounds = array<i64: 1, 128>}, {pipeline_mode = #tpu.pipeline_mode<synchronous>, transform_indices = @transform_11, window_bounds = array<i64: 8, 128>}]} {
    %c0_i32 = arith.constant 0 : i32
    %0 = arith.cmpi eq, %arg0, %c0_i32 : i32
    %1 = arith.extui %0 : i1 to i32
    %c0_i32_0 = arith.constant 0 : i32
    %2 = arith.cmpi ne, %1, %c0_i32_0 : i32
    scf.if %2 {
      %c0_172 = arith.constant 0 : index
      %c0_173 = arith.constant 0 : index
      %c0_174 = arith.constant 0 : index
      %600 = vector.load %arg2[%c0_172, %c0_173, %c0_174] : memref<2x8x128xf32, #tpu.memory_space<vmem>>, vector<2x8x128xf32>
      %c0_175 = arith.constant 0 : index
      %c0_176 = arith.constant 0 : index
      %c0_177 = arith.constant 0 : index
      %601 = vector.load %arg15[%c0_175, %c0_176, %c0_177] : memref<2x8x128xf32, #tpu.memory_space<vmem>>, vector<2x8x128xf32>
      tpu.vector_store %arg15[%c0_175, %c0_176, %c0_177], %600 {strides = array<i32>} : memref<2x8x128xf32, #tpu.memory_space<vmem>>, vector<2x8x128xf32>,
      %c0_178 = arith.constant 0 : index
      %c0_179 = arith.constant 0 : index
      %c0_180 = arith.constant 0 : index
      %602 = vector.load %arg3[%c0_178, %c0_179, %c0_180] : memref<2x8x128xf32, #tpu.memory_space<vmem>>, vector<2x8x128xf32>
      %c0_181 = arith.constant 0 : index
      %c0_182 = arith.constant 0 : index
      %c0_183 = arith.constant 0 : index
      %603 = vector.load %arg16[%c0_181, %c0_182, %c0_183] : memref<2x8x128xf32, #tpu.memory_space<vmem>>, vector<2x8x128xf32>
      tpu.vector_store %arg16[%c0_181, %c0_182, %c0_183], %602 {strides = array<i32>} : memref<2x8x128xf32, #tpu.memory_space<vmem>>, vector<2x8x128xf32>,
    } else {
    }
    %c0 = arith.constant 0 : index
    %c0_1 = arith.constant 0 : index
    %c0_2 = arith.constant 0 : index
    %3 = vector.load %arg1[%c0, %c0_1, %c0_2] : memref<8x8x8xbf16, #tpu.memory_space<vmem>>, vector<8x8x8xbf16>
    %4 = vector.shape_cast %3 : vector<8x8x8xbf16> to vector<64x8xbf16>
    %c0_3 = arith.constant 0 : index
    %c0_4 = arith.constant 0 : index
    %5 = vector.load %arg4[%c0_3, %c0_4] : memref<8x512xbf16, #tpu.memory_space<vmem>>, vector<8x512xbf16>
    %cst = arith.constant dense<0.000000e+00> : vector<64x512xf32>
    %6 = tpu.matmul %4, %5, %cst {dimension_numbers = #tpu.dot_dimension_numbers<[1], [0], [0], [1], [0, 0, 1, 1], [], []>} : vector<64x8xbf16>, vector<8x512xbf16>, vector<64x512xf32> -> vector<64x512xf32>
    %c0_5 = arith.constant 0 : index
    %c0_6 = arith.constant 0 : index
    %7 = vector.load %arg6[%c0_5, %c0_6] : memref<1x512xf32, #tpu.memory_space<vmem>>, vector<1x512xf32>
    %8 = vector.broadcast %7 : vector<1x512xf32> to vector<64x512xf32>
    %9 = arith.addf %6, %8 : vector<64x512xf32>
    %10 = vector.shape_cast %9 : vector<64x512xf32> to vector<8x8x512xf32>
    %11 = arith.truncf %10 : vector<8x8x512xf32> to vector<8x8x512xbf16>
    %c0_7 = arith.constant 0 : index
    %c0_8 = arith.constant 0 : index
    %c0_9 = arith.constant 0 : index
    %12 = vector.load %arg13[%c0_7, %c0_8, %c0_9] : memref<8x8x512xbf16, #tpu.memory_space<vmem>>, vector<8x8x512xbf16>
    tpu.vector_store %arg13[%c0_7, %c0_8, %c0_9], %11 {strides = array<i32>} : memref<8x8x512xbf16, #tpu.memory_space<vmem>>, vector<8x8x512xbf16>,
    %c0_10 = arith.constant 0 : index
    %c0_11 = arith.constant 0 : index
    %13 = vector.load %arg5[%c0_10, %c0_11] : memref<128x512xbf16, #tpu.memory_space<vmem>>, vector<128x512xbf16>
    %c0_12 = arith.constant 0 : index
    %c0_13 = arith.constant 0 : index
    %c0_14 = arith.constant 0 : index
    %14 = vector.load %arg15[%c0_12, %c0_13, %c0_14] : memref<2x8x128xf32, #tpu.memory_space<vmem>>, vector<1x8x128xf32>
    %15 = vector.shape_cast %14 : vector<1x8x128xf32> to vector<8x128xf32>
    %c0_15 = arith.constant 0 : index
    %c0_16 = arith.constant 0 : index
    %c0_17 = arith.constant 0 : index
    %16 = vector.load %arg16[%c0_15, %c0_16, %c0_17] : memref<2x8x128xf32, #tpu.memory_space<vmem>>, vector<1x8x128xf32>
    %17 = vector.shape_cast %16 : vector<1x8x128xf32> to vector<8x128xf32>
    %c0_i32_18 = arith.constant 0 : i32
    %18 = arith.index_cast %c0_i32_18 : i32 to index
    %c0_19 = arith.constant 0 : index
    %c0_20 = arith.constant 0 : index
    %19 = vector.load %arg13[%18, %c0_19, %c0_20] : memref<8x8x512xbf16, #tpu.memory_space<vmem>>, vector<1x8x512xbf16>
    %20 = vector.shape_cast %19 : vector<1x8x512xbf16> to vector<8x512xbf16>
    %21 = arith.extf %20 : vector<8x512xbf16> to vector<8x512xf32>
    %22 = arith.truncf %15 : vector<8x128xf32> to vector<8x128xbf16>
    %cst_21 = arith.constant dense<0.000000e+00> : vector<8x512xf32>
    %23 = tpu.matmul %22, %13, %cst_21 {dimension_numbers = #tpu.dot_dimension_numbers<[1], [0], [0], [1], [0, 0, 1, 1], [], []>} : vector<8x128xbf16>, vector<128x512xbf16>, vector<8x512xf32> -> vector<8x512xf32>
    %24 = arith.addf %21, %23 : vector<8x512xf32>
    %25 = vector.extract_strided_slice %24 {offsets = [0, 0], sizes = [8, 128], strides = [1, 1]} : vector<8x512xf32> to vector<8x128xf32>
    %26 = arith.negf %25 : vector<8x128xf32>
    %27 = math.exp %26 : vector<8x128xf32>
    %cst_22 = arith.constant 1.000000e+00 : f32
    %28 = vector.broadcast %cst_22 : f32 to vector<8x128xf32>
    %29 = arith.addf %28, %27 : vector<8x128xf32>
    %30 = arith.divf %28, %29 : vector<8x128xf32>
    %31 = vector.extract_strided_slice %24 {offsets = [0, 128], sizes = [8, 128], strides = [1, 1]} : vector<8x512xf32> to vector<8x128xf32>
    %32 = arith.negf %31 : vector<8x128xf32>
    %33 = math.exp %32 : vector<8x128xf32>
    %cst_23 = arith.constant 1.000000e+00 : f32
    %34 = vector.broadcast %cst_23 : f32 to vector<8x128xf32>
    %35 = arith.addf %34, %33 : vector<8x128xf32>
    %36 = arith.divf %34, %35 : vector<8x128xf32>
    %37 = vector.extract_strided_slice %24 {offsets = [0, 256], sizes = [8, 128], strides = [1, 1]} : vector<8x512xf32> to vector<8x128xf32>
    %38 = math.tanh %37 : vector<8x128xf32>
    %39 = vector.extract_strided_slice %24 {offsets = [0, 384], sizes = [8, 128], strides = [1, 1]} : vector<8x512xf32> to vector<8x128xf32>
    %40 = arith.negf %39 : vector<8x128xf32>
    %41 = math.exp %40 : vector<8x128xf32>
    %cst_24 = arith.constant 1.000000e+00 : f32
    %42 = vector.broadcast %cst_24 : f32 to vector<8x128xf32>
    %43 = arith.addf %42, %41 : vector<8x128xf32>
    %44 = arith.divf %42, %43 : vector<8x128xf32>
    %45 = arith.mulf %36, %17 : vector<8x128xf32>
    %46 = arith.mulf %30, %38 : vector<8x128xf32>
    %47 = arith.addf %45, %46 : vector<8x128xf32>
    %48 = math.tanh %47 : vector<8x128xf32>
    %49 = arith.mulf %44, %48 : vector<8x128xf32>
    %50 = arith.truncf %49 : vector<8x128xf32> to vector<8x128xbf16>
    %51 = arith.index_cast %c0_i32_18 : i32 to index
    %c0_25 = arith.constant 0 : index
    %c0_26 = arith.constant 0 : index
    %52 = vector.load %arg14[%51, %c0_25, %c0_26] : memref<8x8x128xbf16, #tpu.memory_space<vmem>>, vector<1x8x128xbf16>
    %53 = vector.shape_cast %52 : vector<1x8x128xbf16> to vector<8x128xbf16>
    %54 = vector.shape_cast %50 : vector<8x128xbf16> to vector<1x8x128xbf16>
    tpu.vector_store %arg14[%51, %c0_25, %c0_26], %54 {strides = array<i32>} : memref<8x8x128xbf16, #tpu.memory_space<vmem>>, vector<1x8x128xbf16>,
    %c1_i32 = arith.constant 1 : i32
    %55 = arith.index_cast %c1_i32 : i32 to index
    %c0_27 = arith.constant 0 : index
    %c0_28 = arith.constant 0 : index
    %56 = vector.load %arg13[%55, %c0_27, %c0_28] : memref<8x8x512xbf16, #tpu.memory_space<vmem>>, vector<1x8x512xbf16>
    %57 = vector.shape_cast %56 : vector<1x8x512xbf16> to vector<8x512xbf16>
    %58 = arith.extf %57 : vector<8x512xbf16> to vector<8x512xf32>
    %59 = arith.truncf %49 : vector<8x128xf32> to vector<8x128xbf16>
    %cst_29 = arith.constant dense<0.000000e+00> : vector<8x512xf32>
    %60 = tpu.matmul %59, %13, %cst_29 {dimension_numbers = #tpu.dot_dimension_numbers<[1], [0], [0], [1], [0, 0, 1, 1], [], []>} : vector<8x128xbf16>, vector<128x512xbf16>, vector<8x512xf32> -> vector<8x512xf32>
    %61 = arith.addf %58, %60 : vector<8x512xf32>
    %62 = vector.extract_strided_slice %61 {offsets = [0, 0], sizes = [8, 128], strides = [1, 1]} : vector<8x512xf32> to vector<8x128xf32>
    %63 = arith.negf %62 : vector<8x128xf32>
    %64 = math.exp %63 : vector<8x128xf32>
    %cst_30 = arith.constant 1.000000e+00 : f32
    %65 = vector.broadcast %cst_30 : f32 to vector<8x128xf32>
    %66 = arith.addf %65, %64 : vector<8x128xf32>
    %67 = arith.divf %65, %66 : vector<8x128xf32>
    %68 = vector.extract_strided_slice %61 {offsets = [0, 128], sizes = [8, 128], strides = [1, 1]} : vector<8x512xf32> to vector<8x128xf32>
    %69 = arith.negf %68 : vector<8x128xf32>
    %70 = math.exp %69 : vector<8x128xf32>
    %cst_31 = arith.constant 1.000000e+00 : f32
    %71 = vector.broadcast %cst_31 : f32 to vector<8x128xf32>
    %72 = arith.addf %71, %70 : vector<8x128xf32>
    %73 = arith.divf %71, %72 : vector<8x128xf32>
    %74 = vector.extract_strided_slice %61 {offsets = [0, 256], sizes = [8, 128], strides = [1, 1]} : vector<8x512xf32> to vector<8x128xf32>
    %75 = math.tanh %74 : vector<8x128xf32>
    %76 = vector.extract_strided_slice %61 {offsets = [0, 384], sizes = [8, 128], strides = [1, 1]} : vector<8x512xf32> to vector<8x128xf32>
    %77 = arith.negf %76 : vector<8x128xf32>
    %78 = math.exp %77 : vector<8x128xf32>
    %cst_32 = arith.constant 1.000000e+00 : f32
    %79 = vector.broadcast %cst_32 : f32 to vector<8x128xf32>
    %80 = arith.addf %79, %78 : vector<8x128xf32>
    %81 = arith.divf %79, %80 : vector<8x128xf32>
    %82 = arith.mulf %73, %47 : vector<8x128xf32>
    %83 = arith.mulf %67, %75 : vector<8x128xf32>
    %84 = arith.addf %82, %83 : vector<8x128xf32>
    %85 = math.tanh %84 : vector<8x128xf32>
    %86 = arith.mulf %81, %85 : vector<8x128xf32>
    %87 = arith.truncf %86 : vector<8x128xf32> to vector<8x128xbf16>
    %88 = arith.index_cast %c1_i32 : i32 to index
    %c0_33 = arith.constant 0 : index
    %c0_34 = arith.constant 0 : index
    %89 = vector.load %arg14[%88, %c0_33, %c0_34] : memref<8x8x128xbf16, #tpu.memory_space<vmem>>, vector<1x8x128xbf16>
    %90 = vector.shape_cast %89 : vector<1x8x128xbf16> to vector<8x128xbf16>
    %91 = vector.shape_cast %87 : vector<8x128xbf16> to vector<1x8x128xbf16>
    tpu.vector_store %arg14[%88, %c0_33, %c0_34], %91 {strides = array<i32>} : memref<8x8x128xbf16, #tpu.memory_space<vmem>>, vector<1x8x128xbf16>,
    %c2_i32 = arith.constant 2 : i32
    %92 = arith.index_cast %c2_i32 : i32 to index
    %c0_35 = arith.constant 0 : index
    %c0_36 = arith.constant 0 : index
    %93 = vector.load %arg13[%92, %c0_35, %c0_36] : memref<8x8x512xbf16, #tpu.memory_space<vmem>>, vector<1x8x512xbf16>
    %94 = vector.shape_cast %93 : vector<1x8x512xbf16> to vector<8x512xbf16>
    %95 = arith.extf %94 : vector<8x512xbf16> to vector<8x512xf32>
    %96 = arith.truncf %86 : vector<8x128xf32> to vector<8x128xbf16>
    %cst_37 = arith.constant dense<0.000000e+00> : vector<8x512xf32>
    %97 = tpu.matmul %96, %13, %cst_37 {dimension_numbers = #tpu.dot_dimension_numbers<[1], [0], [0], [1], [0, 0, 1, 1], [], []>} : vector<8x128xbf16>, vector<128x512xbf16>, vector<8x512xf32> -> vector<8x512xf32>
    %98 = arith.addf %95, %97 : vector<8x512xf32>
    %99 = vector.extract_strided_slice %98 {offsets = [0, 0], sizes = [8, 128], strides = [1, 1]} : vector<8x512xf32> to vector<8x128xf32>
    %100 = arith.negf %99 : vector<8x128xf32>
    %101 = math.exp %100 : vector<8x128xf32>
    %cst_38 = arith.constant 1.000000e+00 : f32
    %102 = vector.broadcast %cst_38 : f32 to vector<8x128xf32>
    %103 = arith.addf %102, %101 : vector<8x128xf32>
    %104 = arith.divf %102, %103 : vector<8x128xf32>
    %105 = vector.extract_strided_slice %98 {offsets = [0, 128], sizes = [8, 128], strides = [1, 1]} : vector<8x512xf32> to vector<8x128xf32>
    %106 = arith.negf %105 : vector<8x128xf32>
    %107 = math.exp %106 : vector<8x128xf32>
    %cst_39 = arith.constant 1.000000e+00 : f32
    %108 = vector.broadcast %cst_39 : f32 to vector<8x128xf32>
    %109 = arith.addf %108, %107 : vector<8x128xf32>
    %110 = arith.divf %108, %109 : vector<8x128xf32>
    %111 = vector.extract_strided_slice %98 {offsets = [0, 256], sizes = [8, 128], strides = [1, 1]} : vector<8x512xf32> to vector<8x128xf32>
    %112 = math.tanh %111 : vector<8x128xf32>
    %113 = vector.extract_strided_slice %98 {offsets = [0, 384], sizes = [8, 128], strides = [1, 1]} : vector<8x512xf32> to vector<8x128xf32>
    %114 = arith.negf %113 : vector<8x128xf32>
    %115 = math.exp %114 : vector<8x128xf32>
    %cst_40 = arith.constant 1.000000e+00 : f32
    %116 = vector.broadcast %cst_40 : f32 to vector<8x128xf32>
    %117 = arith.addf %116, %115 : vector<8x128xf32>
    %118 = arith.divf %116, %117 : vector<8x128xf32>
    %119 = arith.mulf %110, %84 : vector<8x128xf32>
    %120 = arith.mulf %104, %112 : vector<8x128xf32>
    %121 = arith.addf %119, %120 : vector<8x128xf32>
    %122 = math.tanh %121 : vector<8x128xf32>
    %123 = arith.mulf %118, %122 : vector<8x128xf32>
    %124 = arith.truncf %123 : vector<8x128xf32> to vector<8x128xbf16>
    %125 = arith.index_cast %c2_i32 : i32 to index
    %c0_41 = arith.constant 0 : index
    %c0_42 = arith.constant 0 : index
    %126 = vector.load %arg14[%125, %c0_41, %c0_42] : memref<8x8x128xbf16, #tpu.memory_space<vmem>>, vector<1x8x128xbf16>
    %127 = vector.shape_cast %126 : vector<1x8x128xbf16> to vector<8x128xbf16>
    %128 = vector.shape_cast %124 : vector<8x128xbf16> to vector<1x8x128xbf16>
    tpu.vector_store %arg14[%125, %c0_41, %c0_42], %128 {strides = array<i32>} : memref<8x8x128xbf16, #tpu.memory_space<vmem>>, vector<1x8x128xbf16>,
    %c3_i32 = arith.constant 3 : i32
    %129 = arith.index_cast %c3_i32 : i32 to index
    %c0_43 = arith.constant 0 : index
    %c0_44 = arith.constant 0 : index
    %130 = vector.load %arg13[%129, %c0_43, %c0_44] : memref<8x8x512xbf16, #tpu.memory_space<vmem>>, vector<1x8x512xbf16>
    %131 = vector.shape_cast %130 : vector<1x8x512xbf16> to vector<8x512xbf16>
    %132 = arith.extf %131 : vector<8x512xbf16> to vector<8x512xf32>
    %133 = arith.truncf %123 : vector<8x128xf32> to vector<8x128xbf16>
    %cst_45 = arith.constant dense<0.000000e+00> : vector<8x512xf32>
    %134 = tpu.matmul %133, %13, %cst_45 {dimension_numbers = #tpu.dot_dimension_numbers<[1], [0], [0], [1], [0, 0, 1, 1], [], []>} : vector<8x128xbf16>, vector<128x512xbf16>, vector<8x512xf32> -> vector<8x512xf32>
    %135 = arith.addf %132, %134 : vector<8x512xf32>
    %136 = vector.extract_strided_slice %135 {offsets = [0, 0], sizes = [8, 128], strides = [1, 1]} : vector<8x512xf32> to vector<8x128xf32>
    %137 = arith.negf %136 : vector<8x128xf32>
    %138 = math.exp %137 : vector<8x128xf32>
    %cst_46 = arith.constant 1.000000e+00 : f32
    %139 = vector.broadcast %cst_46 : f32 to vector<8x128xf32>
    %140 = arith.addf %139, %138 : vector<8x128xf32>
    %141 = arith.divf %139, %140 : vector<8x128xf32>
    %142 = vector.extract_strided_slice %135 {offsets = [0, 128], sizes = [8, 128], strides = [1, 1]} : vector<8x512xf32> to vector<8x128xf32>
    %143 = arith.negf %142 : vector<8x128xf32>
    %144 = math.exp %143 : vector<8x128xf32>
    %cst_47 = arith.constant 1.000000e+00 : f32
    %145 = vector.broadcast %cst_47 : f32 to vector<8x128xf32>
    %146 = arith.addf %145, %144 : vector<8x128xf32>
    %147 = arith.divf %145, %146 : vector<8x128xf32>
    %148 = vector.extract_strided_slice %135 {offsets = [0, 256], sizes = [8, 128], strides = [1, 1]} : vector<8x512xf32> to vector<8x128xf32>
    %149 = math.tanh %148 : vector<8x128xf32>
    %150 = vector.extract_strided_slice %135 {offsets = [0, 384], sizes = [8, 128], strides = [1, 1]} : vector<8x512xf32> to vector<8x128xf32>
    %151 = arith.negf %150 : vector<8x128xf32>
    %152 = math.exp %151 : vector<8x128xf32>
    %cst_48 = arith.constant 1.000000e+00 : f32
    %153 = vector.broadcast %cst_48 : f32 to vector<8x128xf32>
    %154 = arith.addf %153, %152 : vector<8x128xf32>
    %155 = arith.divf %153, %154 : vector<8x128xf32>
    %156 = arith.mulf %147, %121 : vector<8x128xf32>
    %157 = arith.mulf %141, %149 : vector<8x128xf32>
    %158 = arith.addf %156, %157 : vector<8x128xf32>
    %159 = math.tanh %158 : vector<8x128xf32>
    %160 = arith.mulf %155, %159 : vector<8x128xf32>
    %161 = arith.truncf %160 : vector<8x128xf32> to vector<8x128xbf16>
    %162 = arith.index_cast %c3_i32 : i32 to index
    %c0_49 = arith.constant 0 : index
    %c0_50 = arith.constant 0 : index
    %163 = vector.load %arg14[%162, %c0_49, %c0_50] : memref<8x8x128xbf16, #tpu.memory_space<vmem>>, vector<1x8x128xbf16>
    %164 = vector.shape_cast %163 : vector<1x8x128xbf16> to vector<8x128xbf16>
    %165 = vector.shape_cast %161 : vector<8x128xbf16> to vector<1x8x128xbf16>
    tpu.vector_store %arg14[%162, %c0_49, %c0_50], %165 {strides = array<i32>} : memref<8x8x128xbf16, #tpu.memory_space<vmem>>, vector<1x8x128xbf16>,
    %c4_i32 = arith.constant 4 : i32
    %166 = arith.index_cast %c4_i32 : i32 to index
    %c0_51 = arith.constant 0 : index
    %c0_52 = arith.constant 0 : index
    %167 = vector.load %arg13[%166, %c0_51, %c0_52] : memref<8x8x512xbf16, #tpu.memory_space<vmem>>, vector<1x8x512xbf16>
    %168 = vector.shape_cast %167 : vector<1x8x512xbf16> to vector<8x512xbf16>
    %169 = arith.extf %168 : vector<8x512xbf16> to vector<8x512xf32>
    %170 = arith.truncf %160 : vector<8x128xf32> to vector<8x128xbf16>
    %cst_53 = arith.constant dense<0.000000e+00> : vector<8x512xf32>
    %171 = tpu.matmul %170, %13, %cst_53 {dimension_numbers = #tpu.dot_dimension_numbers<[1], [0], [0], [1], [0, 0, 1, 1], [], []>} : vector<8x128xbf16>, vector<128x512xbf16>, vector<8x512xf32> -> vector<8x512xf32>
    %172 = arith.addf %169, %171 : vector<8x512xf32>
    %173 = vector.extract_strided_slice %172 {offsets = [0, 0], sizes = [8, 128], strides = [1, 1]} : vector<8x512xf32> to vector<8x128xf32>
    %174 = arith.negf %173 : vector<8x128xf32>
    %175 = math.exp %174 : vector<8x128xf32>
    %cst_54 = arith.constant 1.000000e+00 : f32
    %176 = vector.broadcast %cst_54 : f32 to vector<8x128xf32>
    %177 = arith.addf %176, %175 : vector<8x128xf32>
    %178 = arith.divf %176, %177 : vector<8x128xf32>
    %179 = vector.extract_strided_slice %172 {offsets = [0, 128], sizes = [8, 128], strides = [1, 1]} : vector<8x512xf32> to vector<8x128xf32>
    %180 = arith.negf %179 : vector<8x128xf32>
    %181 = math.exp %180 : vector<8x128xf32>
    %cst_55 = arith.constant 1.000000e+00 : f32
    %182 = vector.broadcast %cst_55 : f32 to vector<8x128xf32>
    %183 = arith.addf %182, %181 : vector<8x128xf32>
    %184 = arith.divf %182, %183 : vector<8x128xf32>
    %185 = vector.extract_strided_slice %172 {offsets = [0, 256], sizes = [8, 128], strides = [1, 1]} : vector<8x512xf32> to vector<8x128xf32>
    %186 = math.tanh %185 : vector<8x128xf32>
    %187 = vector.extract_strided_slice %172 {offsets = [0, 384], sizes = [8, 128], strides = [1, 1]} : vector<8x512xf32> to vector<8x128xf32>
    %188 = arith.negf %187 : vector<8x128xf32>
    %189 = math.exp %188 : vector<8x128xf32>
    %cst_56 = arith.constant 1.000000e+00 : f32
    %190 = vector.broadcast %cst_56 : f32 to vector<8x128xf32>
    %191 = arith.addf %190, %189 : vector<8x128xf32>
    %192 = arith.divf %190, %191 : vector<8x128xf32>
    %193 = arith.mulf %184, %158 : vector<8x128xf32>
    %194 = arith.mulf %178, %186 : vector<8x128xf32>
    %195 = arith.addf %193, %194 : vector<8x128xf32>
    %196 = math.tanh %195 : vector<8x128xf32>
    %197 = arith.mulf %192, %196 : vector<8x128xf32>
    %198 = arith.truncf %197 : vector<8x128xf32> to vector<8x128xbf16>
    %199 = arith.index_cast %c4_i32 : i32 to index
    %c0_57 = arith.constant 0 : index
    %c0_58 = arith.constant 0 : index
    %200 = vector.load %arg14[%199, %c0_57, %c0_58] : memref<8x8x128xbf16, #tpu.memory_space<vmem>>, vector<1x8x128xbf16>
    %201 = vector.shape_cast %200 : vector<1x8x128xbf16> to vector<8x128xbf16>
    %202 = vector.shape_cast %198 : vector<8x128xbf16> to vector<1x8x128xbf16>
    tpu.vector_store %arg14[%199, %c0_57, %c0_58], %202 {strides = array<i32>} : memref<8x8x128xbf16, #tpu.memory_space<vmem>>, vector<1x8x128xbf16>,
    %c5_i32 = arith.constant 5 : i32
    %203 = arith.index_cast %c5_i32 : i32 to index
    %c0_59 = arith.constant 0 : index
    %c0_60 = arith.constant 0 : index
    %204 = vector.load %arg13[%203, %c0_59, %c0_60] : memref<8x8x512xbf16, #tpu.memory_space<vmem>>, vector<1x8x512xbf16>
    %205 = vector.shape_cast %204 : vector<1x8x512xbf16> to vector<8x512xbf16>
    %206 = arith.extf %205 : vector<8x512xbf16> to vector<8x512xf32>
    %207 = arith.truncf %197 : vector<8x128xf32> to vector<8x128xbf16>
    %cst_61 = arith.constant dense<0.000000e+00> : vector<8x512xf32>
    %208 = tpu.matmul %207, %13, %cst_61 {dimension_numbers = #tpu.dot_dimension_numbers<[1], [0], [0], [1], [0, 0, 1, 1], [], []>} : vector<8x128xbf16>, vector<128x512xbf16>, vector<8x512xf32> -> vector<8x512xf32>
    %209 = arith.addf %206, %208 : vector<8x512xf32>
    %210 = vector.extract_strided_slice %209 {offsets = [0, 0], sizes = [8, 128], strides = [1, 1]} : vector<8x512xf32> to vector<8x128xf32>
    %211 = arith.negf %210 : vector<8x128xf32>
    %212 = math.exp %211 : vector<8x128xf32>
    %cst_62 = arith.constant 1.000000e+00 : f32
    %213 = vector.broadcast %cst_62 : f32 to vector<8x128xf32>
    %214 = arith.addf %213, %212 : vector<8x128xf32>
    %215 = arith.divf %213, %214 : vector<8x128xf32>
    %216 = vector.extract_strided_slice %209 {offsets = [0, 128], sizes = [8, 128], strides = [1, 1]} : vector<8x512xf32> to vector<8x128xf32>
    %217 = arith.negf %216 : vector<8x128xf32>
    %218 = math.exp %217 : vector<8x128xf32>
    %cst_63 = arith.constant 1.000000e+00 : f32
    %219 = vector.broadcast %cst_63 : f32 to vector<8x128xf32>
    %220 = arith.addf %219, %218 : vector<8x128xf32>
    %221 = arith.divf %219, %220 : vector<8x128xf32>
    %222 = vector.extract_strided_slice %209 {offsets = [0, 256], sizes = [8, 128], strides = [1, 1]} : vector<8x512xf32> to vector<8x128xf32>
    %223 = math.tanh %222 : vector<8x128xf32>
    %224 = vector.extract_strided_slice %209 {offsets = [0, 384], sizes = [8, 128], strides = [1, 1]} : vector<8x512xf32> to vector<8x128xf32>
    %225 = arith.negf %224 : vector<8x128xf32>
    %226 = math.exp %225 : vector<8x128xf32>
    %cst_64 = arith.constant 1.000000e+00 : f32
    %227 = vector.broadcast %cst_64 : f32 to vector<8x128xf32>
    %228 = arith.addf %227, %226 : vector<8x128xf32>
    %229 = arith.divf %227, %228 : vector<8x128xf32>
    %230 = arith.mulf %221, %195 : vector<8x128xf32>
    %231 = arith.mulf %215, %223 : vector<8x128xf32>
    %232 = arith.addf %230, %231 : vector<8x128xf32>
    %233 = math.tanh %232 : vector<8x128xf32>
    %234 = arith.mulf %229, %233 : vector<8x128xf32>
    %235 = arith.truncf %234 : vector<8x128xf32> to vector<8x128xbf16>
    %236 = arith.index_cast %c5_i32 : i32 to index
    %c0_65 = arith.constant 0 : index
    %c0_66 = arith.constant 0 : index
    %237 = vector.load %arg14[%236, %c0_65, %c0_66] : memref<8x8x128xbf16, #tpu.memory_space<vmem>>, vector<1x8x128xbf16>
    %238 = vector.shape_cast %237 : vector<1x8x128xbf16> to vector<8x128xbf16>
    %239 = vector.shape_cast %235 : vector<8x128xbf16> to vector<1x8x128xbf16>
    tpu.vector_store %arg14[%236, %c0_65, %c0_66], %239 {strides = array<i32>} : memref<8x8x128xbf16, #tpu.memory_space<vmem>>, vector<1x8x128xbf16>,
    %c6_i32 = arith.constant 6 : i32
    %240 = arith.index_cast %c6_i32 : i32 to index
    %c0_67 = arith.constant 0 : index
    %c0_68 = arith.constant 0 : index
    %241 = vector.load %arg13[%240, %c0_67, %c0_68] : memref<8x8x512xbf16, #tpu.memory_space<vmem>>, vector<1x8x512xbf16>
    %242 = vector.shape_cast %241 : vector<1x8x512xbf16> to vector<8x512xbf16>
    %243 = arith.extf %242 : vector<8x512xbf16> to vector<8x512xf32>
    %244 = arith.truncf %234 : vector<8x128xf32> to vector<8x128xbf16>
    %cst_69 = arith.constant dense<0.000000e+00> : vector<8x512xf32>
    %245 = tpu.matmul %244, %13, %cst_69 {dimension_numbers = #tpu.dot_dimension_numbers<[1], [0], [0], [1], [0, 0, 1, 1], [], []>} : vector<8x128xbf16>, vector<128x512xbf16>, vector<8x512xf32> -> vector<8x512xf32>
    %246 = arith.addf %243, %245 : vector<8x512xf32>
    %247 = vector.extract_strided_slice %246 {offsets = [0, 0], sizes = [8, 128], strides = [1, 1]} : vector<8x512xf32> to vector<8x128xf32>
    %248 = arith.negf %247 : vector<8x128xf32>
    %249 = math.exp %248 : vector<8x128xf32>
    %cst_70 = arith.constant 1.000000e+00 : f32
    %250 = vector.broadcast %cst_70 : f32 to vector<8x128xf32>
    %251 = arith.addf %250, %249 : vector<8x128xf32>
    %252 = arith.divf %250, %251 : vector<8x128xf32>
    %253 = vector.extract_strided_slice %246 {offsets = [0, 128], sizes = [8, 128], strides = [1, 1]} : vector<8x512xf32> to vector<8x128xf32>
    %254 = arith.negf %253 : vector<8x128xf32>
    %255 = math.exp %254 : vector<8x128xf32>
    %cst_71 = arith.constant 1.000000e+00 : f32
    %256 = vector.broadcast %cst_71 : f32 to vector<8x128xf32>
    %257 = arith.addf %256, %255 : vector<8x128xf32>
    %258 = arith.divf %256, %257 : vector<8x128xf32>
    %259 = vector.extract_strided_slice %246 {offsets = [0, 256], sizes = [8, 128], strides = [1, 1]} : vector<8x512xf32> to vector<8x128xf32>
    %260 = math.tanh %259 : vector<8x128xf32>
    %261 = vector.extract_strided_slice %246 {offsets = [0, 384], sizes = [8, 128], strides = [1, 1]} : vector<8x512xf32> to vector<8x128xf32>
    %262 = arith.negf %261 : vector<8x128xf32>
    %263 = math.exp %262 : vector<8x128xf32>
    %cst_72 = arith.constant 1.000000e+00 : f32
    %264 = vector.broadcast %cst_72 : f32 to vector<8x128xf32>
    %265 = arith.addf %264, %263 : vector<8x128xf32>
    %266 = arith.divf %264, %265 : vector<8x128xf32>
    %267 = arith.mulf %258, %232 : vector<8x128xf32>
    %268 = arith.mulf %252, %260 : vector<8x128xf32>
    %269 = arith.addf %267, %268 : vector<8x128xf32>
    %270 = math.tanh %269 : vector<8x128xf32>
    %271 = arith.mulf %266, %270 : vector<8x128xf32>
    %272 = arith.truncf %271 : vector<8x128xf32> to vector<8x128xbf16>
    %273 = arith.index_cast %c6_i32 : i32 to index
    %c0_73 = arith.constant 0 : index
    %c0_74 = arith.constant 0 : index
    %274 = vector.load %arg14[%273, %c0_73, %c0_74] : memref<8x8x128xbf16, #tpu.memory_space<vmem>>, vector<1x8x128xbf16>
    %275 = vector.shape_cast %274 : vector<1x8x128xbf16> to vector<8x128xbf16>
    %276 = vector.shape_cast %272 : vector<8x128xbf16> to vector<1x8x128xbf16>
    tpu.vector_store %arg14[%273, %c0_73, %c0_74], %276 {strides = array<i32>} : memref<8x8x128xbf16, #tpu.memory_space<vmem>>, vector<1x8x128xbf16>,
    %c7_i32 = arith.constant 7 : i32
    %277 = arith.index_cast %c7_i32 : i32 to index
    %c0_75 = arith.constant 0 : index
    %c0_76 = arith.constant 0 : index
    %278 = vector.load %arg13[%277, %c0_75, %c0_76] : memref<8x8x512xbf16, #tpu.memory_space<vmem>>, vector<1x8x512xbf16>
    %279 = vector.shape_cast %278 : vector<1x8x512xbf16> to vector<8x512xbf16>
    %280 = arith.extf %279 : vector<8x512xbf16> to vector<8x512xf32>
    %281 = arith.truncf %271 : vector<8x128xf32> to vector<8x128xbf16>
    %cst_77 = arith.constant dense<0.000000e+00> : vector<8x512xf32>
    %282 = tpu.matmul %281, %13, %cst_77 {dimension_numbers = #tpu.dot_dimension_numbers<[1], [0], [0], [1], [0, 0, 1, 1], [], []>} : vector<8x128xbf16>, vector<128x512xbf16>, vector<8x512xf32> -> vector<8x512xf32>
    %283 = arith.addf %280, %282 : vector<8x512xf32>
    %284 = vector.extract_strided_slice %283 {offsets = [0, 0], sizes = [8, 128], strides = [1, 1]} : vector<8x512xf32> to vector<8x128xf32>
    %285 = arith.negf %284 : vector<8x128xf32>
    %286 = math.exp %285 : vector<8x128xf32>
    %cst_78 = arith.constant 1.000000e+00 : f32
    %287 = vector.broadcast %cst_78 : f32 to vector<8x128xf32>
    %288 = arith.addf %287, %286 : vector<8x128xf32>
    %289 = arith.divf %287, %288 : vector<8x128xf32>
    %290 = vector.extract_strided_slice %283 {offsets = [0, 128], sizes = [8, 128], strides = [1, 1]} : vector<8x512xf32> to vector<8x128xf32>
    %291 = arith.negf %290 : vector<8x128xf32>
    %292 = math.exp %291 : vector<8x128xf32>
    %cst_79 = arith.constant 1.000000e+00 : f32
    %293 = vector.broadcast %cst_79 : f32 to vector<8x128xf32>
    %294 = arith.addf %293, %292 : vector<8x128xf32>
    %295 = arith.divf %293, %294 : vector<8x128xf32>
    %296 = vector.extract_strided_slice %283 {offsets = [0, 256], sizes = [8, 128], strides = [1, 1]} : vector<8x512xf32> to vector<8x128xf32>
    %297 = math.tanh %296 : vector<8x128xf32>
    %298 = vector.extract_strided_slice %283 {offsets = [0, 384], sizes = [8, 128], strides = [1, 1]} : vector<8x512xf32> to vector<8x128xf32>
    %299 = arith.negf %298 : vector<8x128xf32>
    %300 = math.exp %299 : vector<8x128xf32>
    %cst_80 = arith.constant 1.000000e+00 : f32
    %301 = vector.broadcast %cst_80 : f32 to vector<8x128xf32>
    %302 = arith.addf %301, %300 : vector<8x128xf32>
    %303 = arith.divf %301, %302 : vector<8x128xf32>
    %304 = arith.mulf %295, %269 : vector<8x128xf32>
    %305 = arith.mulf %289, %297 : vector<8x128xf32>
    %306 = arith.addf %304, %305 : vector<8x128xf32>
    %307 = math.tanh %306 : vector<8x128xf32>
    %308 = arith.mulf %303, %307 : vector<8x128xf32>
    %309 = arith.truncf %308 : vector<8x128xf32> to vector<8x128xbf16>
    %310 = arith.index_cast %c7_i32 : i32 to index
    %c0_81 = arith.constant 0 : index
    %c0_82 = arith.constant 0 : index
    %311 = vector.load %arg14[%310, %c0_81, %c0_82] : memref<8x8x128xbf16, #tpu.memory_space<vmem>>, vector<1x8x128xbf16>
    %312 = vector.shape_cast %311 : vector<1x8x128xbf16> to vector<8x128xbf16>
    %313 = vector.shape_cast %309 : vector<8x128xbf16> to vector<1x8x128xbf16>
    tpu.vector_store %arg14[%310, %c0_81, %c0_82], %313 {strides = array<i32>} : memref<8x8x128xbf16, #tpu.memory_space<vmem>>, vector<1x8x128xbf16>,
    %c8_i32 = arith.constant 8 : i32
    %c0_83 = arith.constant 0 : index
    %c0_84 = arith.constant 0 : index
    %c0_85 = arith.constant 0 : index
    %314 = vector.load %arg15[%c0_83, %c0_84, %c0_85] : memref<2x8x128xf32, #tpu.memory_space<vmem>>, vector<1x8x128xf32>
    %315 = vector.shape_cast %314 : vector<1x8x128xf32> to vector<8x128xf32>
    %316 = vector.shape_cast %308 : vector<8x128xf32> to vector<1x8x128xf32>
    tpu.vector_store %arg15[%c0_83, %c0_84, %c0_85], %316 {strides = array<i32>} : memref<2x8x128xf32, #tpu.memory_space<vmem>>, vector<1x8x128xf32>,
    %c0_86 = arith.constant 0 : index
    %c0_87 = arith.constant 0 : index
    %c0_88 = arith.constant 0 : index
    %317 = vector.load %arg16[%c0_86, %c0_87, %c0_88] : memref<2x8x128xf32, #tpu.memory_space<vmem>>, vector<1x8x128xf32>
    %318 = vector.shape_cast %317 : vector<1x8x128xf32> to vector<8x128xf32>
    %319 = vector.shape_cast %306 : vector<8x128xf32> to vector<1x8x128xf32>
    tpu.vector_store %arg16[%c0_86, %c0_87, %c0_88], %319 {strides = array<i32>} : memref<2x8x128xf32, #tpu.memory_space<vmem>>, vector<1x8x128xf32>,
    %c0_89 = arith.constant 0 : index
    %c0_90 = arith.constant 0 : index
    %c0_91 = arith.constant 0 : index
    %320 = vector.load %arg14[%c0_89, %c0_90, %c0_91] : memref<8x8x128xbf16, #tpu.memory_space<vmem>>, vector<8x8x128xbf16>
    %321 = vector.shape_cast %320 : vector<8x8x128xbf16> to vector<64x128xbf16>
    %c0_92 = arith.constant 0 : index
    %c0_93 = arith.constant 0 : index
    %322 = vector.load %arg7[%c0_92, %c0_93] : memref<128x512xbf16, #tpu.memory_space<vmem>>, vector<128x512xbf16>
    %cst_94 = arith.constant dense<0.000000e+00> : vector<64x512xf32>
    %323 = tpu.matmul %321, %322, %cst_94 {dimension_numbers = #tpu.dot_dimension_numbers<[1], [0], [0], [1], [0, 0, 1, 1], [], []>} : vector<64x128xbf16>, vector<128x512xbf16>, vector<64x512xf32> -> vector<64x512xf32>
    %c0_95 = arith.constant 0 : index
    %c0_96 = arith.constant 0 : index
    %324 = vector.load %arg9[%c0_95, %c0_96] : memref<1x512xf32, #tpu.memory_space<vmem>>, vector<1x512xf32>
    %325 = vector.broadcast %324 : vector<1x512xf32> to vector<64x512xf32>
    %326 = arith.addf %323, %325 : vector<64x512xf32>
    %327 = vector.shape_cast %326 : vector<64x512xf32> to vector<8x8x512xf32>
    %328 = arith.truncf %327 : vector<8x8x512xf32> to vector<8x8x512xbf16>
    %c0_97 = arith.constant 0 : index
    %c0_98 = arith.constant 0 : index
    %c0_99 = arith.constant 0 : index
    %329 = vector.load %arg13[%c0_97, %c0_98, %c0_99] : memref<8x8x512xbf16, #tpu.memory_space<vmem>>, vector<8x8x512xbf16>
    tpu.vector_store %arg13[%c0_97, %c0_98, %c0_99], %328 {strides = array<i32>} : memref<8x8x512xbf16, #tpu.memory_space<vmem>>, vector<8x8x512xbf16>,
    %c0_100 = arith.constant 0 : index
    %c0_101 = arith.constant 0 : index
    %330 = vector.load %arg8[%c0_100, %c0_101] : memref<128x512xbf16, #tpu.memory_space<vmem>>, vector<128x512xbf16>
    %c1 = arith.constant 1 : index
    %c0_102 = arith.constant 0 : index
    %c0_103 = arith.constant 0 : index
    %331 = vector.load %arg15[%c1, %c0_102, %c0_103] : memref<2x8x128xf32, #tpu.memory_space<vmem>>, vector<1x8x128xf32>
    %332 = vector.shape_cast %331 : vector<1x8x128xf32> to vector<8x128xf32>
    %c1_104 = arith.constant 1 : index
    %c0_105 = arith.constant 0 : index
    %c0_106 = arith.constant 0 : index
    %333 = vector.load %arg16[%c1_104, %c0_105, %c0_106] : memref<2x8x128xf32, #tpu.memory_space<vmem>>, vector<1x8x128xf32>
    %334 = vector.shape_cast %333 : vector<1x8x128xf32> to vector<8x128xf32>
    %c0_i32_107 = arith.constant 0 : i32
    %335 = arith.index_cast %c0_i32_107 : i32 to index
    %c0_108 = arith.constant 0 : index
    %c0_109 = arith.constant 0 : index
    %336 = vector.load %arg13[%335, %c0_108, %c0_109] : memref<8x8x512xbf16, #tpu.memory_space<vmem>>, vector<1x8x512xbf16>
    %337 = vector.shape_cast %336 : vector<1x8x512xbf16> to vector<8x512xbf16>
    %338 = arith.extf %337 : vector<8x512xbf16> to vector<8x512xf32>
    %339 = arith.truncf %332 : vector<8x128xf32> to vector<8x128xbf16>
    %cst_110 = arith.constant dense<0.000000e+00> : vector<8x512xf32>
    %340 = tpu.matmul %339, %330, %cst_110 {dimension_numbers = #tpu.dot_dimension_numbers<[1], [0], [0], [1], [0, 0, 1, 1], [], []>} : vector<8x128xbf16>, vector<128x512xbf16>, vector<8x512xf32> -> vector<8x512xf32>
    %341 = arith.addf %338, %340 : vector<8x512xf32>
    %342 = vector.extract_strided_slice %341 {offsets = [0, 0], sizes = [8, 128], strides = [1, 1]} : vector<8x512xf32> to vector<8x128xf32>
    %343 = arith.negf %342 : vector<8x128xf32>
    %344 = math.exp %343 : vector<8x128xf32>
    %cst_111 = arith.constant 1.000000e+00 : f32
    %345 = vector.broadcast %cst_111 : f32 to vector<8x128xf32>
    %346 = arith.addf %345, %344 : vector<8x128xf32>
    %347 = arith.divf %345, %346 : vector<8x128xf32>
    %348 = vector.extract_strided_slice %341 {offsets = [0, 128], sizes = [8, 128], strides = [1, 1]} : vector<8x512xf32> to vector<8x128xf32>
    %349 = arith.negf %348 : vector<8x128xf32>
    %350 = math.exp %349 : vector<8x128xf32>
    %cst_112 = arith.constant 1.000000e+00 : f32
    %351 = vector.broadcast %cst_112 : f32 to vector<8x128xf32>
    %352 = arith.addf %351, %350 : vector<8x128xf32>
    %353 = arith.divf %351, %352 : vector<8x128xf32>
    %354 = vector.extract_strided_slice %341 {offsets = [0, 256], sizes = [8, 128], strides = [1, 1]} : vector<8x512xf32> to vector<8x128xf32>
    %355 = math.tanh %354 : vector<8x128xf32>
    %356 = vector.extract_strided_slice %341 {offsets = [0, 384], sizes = [8, 128], strides = [1, 1]} : vector<8x512xf32> to vector<8x128xf32>
    %357 = arith.negf %356 : vector<8x128xf32>
    %358 = math.exp %357 : vector<8x128xf32>
    %cst_113 = arith.constant 1.000000e+00 : f32
    %359 = vector.broadcast %cst_113 : f32 to vector<8x128xf32>
    %360 = arith.addf %359, %358 : vector<8x128xf32>
    %361 = arith.divf %359, %360 : vector<8x128xf32>
    %362 = arith.mulf %353, %334 : vector<8x128xf32>
    %363 = arith.mulf %347, %355 : vector<8x128xf32>
    %364 = arith.addf %362, %363 : vector<8x128xf32>
    %365 = math.tanh %364 : vector<8x128xf32>
    %366 = arith.mulf %361, %365 : vector<8x128xf32>
    %c1_i32_114 = arith.constant 1 : i32
    %367 = arith.index_cast %c1_i32_114 : i32 to index
    %c0_115 = arith.constant 0 : index
    %c0_116 = arith.constant 0 : index
    %368 = vector.load %arg13[%367, %c0_115, %c0_116] : memref<8x8x512xbf16, #tpu.memory_space<vmem>>, vector<1x8x512xbf16>
    %369 = vector.shape_cast %368 : vector<1x8x512xbf16> to vector<8x512xbf16>
    %370 = arith.extf %369 : vector<8x512xbf16> to vector<8x512xf32>
    %371 = arith.truncf %366 : vector<8x128xf32> to vector<8x128xbf16>
    %cst_117 = arith.constant dense<0.000000e+00> : vector<8x512xf32>
    %372 = tpu.matmul %371, %330, %cst_117 {dimension_numbers = #tpu.dot_dimension_numbers<[1], [0], [0], [1], [0, 0, 1, 1], [], []>} : vector<8x128xbf16>, vector<128x512xbf16>, vector<8x512xf32> -> vector<8x512xf32>
    %373 = arith.addf %370, %372 : vector<8x512xf32>
    %374 = vector.extract_strided_slice %373 {offsets = [0, 0], sizes = [8, 128], strides = [1, 1]} : vector<8x512xf32> to vector<8x128xf32>
    %375 = arith.negf %374 : vector<8x128xf32>
    %376 = math.exp %375 : vector<8x128xf32>
    %cst_118 = arith.constant 1.000000e+00 : f32
    %377 = vector.broadcast %cst_118 : f32 to vector<8x128xf32>
    %378 = arith.addf %377, %376 : vector<8x128xf32>
    %379 = arith.divf %377, %378 : vector<8x128xf32>
    %380 = vector.extract_strided_slice %373 {offsets = [0, 128], sizes = [8, 128], strides = [1, 1]} : vector<8x512xf32> to vector<8x128xf32>
    %381 = arith.negf %380 : vector<8x128xf32>
    %382 = math.exp %381 : vector<8x128xf32>
    %cst_119 = arith.constant 1.000000e+00 : f32
    %383 = vector.broadcast %cst_119 : f32 to vector<8x128xf32>
    %384 = arith.addf %383, %382 : vector<8x128xf32>
    %385 = arith.divf %383, %384 : vector<8x128xf32>
    %386 = vector.extract_strided_slice %373 {offsets = [0, 256], sizes = [8, 128], strides = [1, 1]} : vector<8x512xf32> to vector<8x128xf32>
    %387 = math.tanh %386 : vector<8x128xf32>
    %388 = vector.extract_strided_slice %373 {offsets = [0, 384], sizes = [8, 128], strides = [1, 1]} : vector<8x512xf32> to vector<8x128xf32>
    %389 = arith.negf %388 : vector<8x128xf32>
    %390 = math.exp %389 : vector<8x128xf32>
    %cst_120 = arith.constant 1.000000e+00 : f32
    %391 = vector.broadcast %cst_120 : f32 to vector<8x128xf32>
    %392 = arith.addf %391, %390 : vector<8x128xf32>
    %393 = arith.divf %391, %392 : vector<8x128xf32>
    %394 = arith.mulf %385, %364 : vector<8x128xf32>
    %395 = arith.mulf %379, %387 : vector<8x128xf32>
    %396 = arith.addf %394, %395 : vector<8x128xf32>
    %397 = math.tanh %396 : vector<8x128xf32>
    %398 = arith.mulf %393, %397 : vector<8x128xf32>
    %c2_i32_121 = arith.constant 2 : i32
    %399 = arith.index_cast %c2_i32_121 : i32 to index
    %c0_122 = arith.constant 0 : index
    %c0_123 = arith.constant 0 : index
    %400 = vector.load %arg13[%399, %c0_122, %c0_123] : memref<8x8x512xbf16, #tpu.memory_space<vmem>>, vector<1x8x512xbf16>
    %401 = vector.shape_cast %400 : vector<1x8x512xbf16> to vector<8x512xbf16>
    %402 = arith.extf %401 : vector<8x512xbf16> to vector<8x512xf32>
    %403 = arith.truncf %398 : vector<8x128xf32> to vector<8x128xbf16>
    %cst_124 = arith.constant dense<0.000000e+00> : vector<8x512xf32>
    %404 = tpu.matmul %403, %330, %cst_124 {dimension_numbers = #tpu.dot_dimension_numbers<[1], [0], [0], [1], [0, 0, 1, 1], [], []>} : vector<8x128xbf16>, vector<128x512xbf16>, vector<8x512xf32> -> vector<8x512xf32>
    %405 = arith.addf %402, %404 : vector<8x512xf32>
    %406 = vector.extract_strided_slice %405 {offsets = [0, 0], sizes = [8, 128], strides = [1, 1]} : vector<8x512xf32> to vector<8x128xf32>
    %407 = arith.negf %406 : vector<8x128xf32>
    %408 = math.exp %407 : vector<8x128xf32>
    %cst_125 = arith.constant 1.000000e+00 : f32
    %409 = vector.broadcast %cst_125 : f32 to vector<8x128xf32>
    %410 = arith.addf %409, %408 : vector<8x128xf32>
    %411 = arith.divf %409, %410 : vector<8x128xf32>
    %412 = vector.extract_strided_slice %405 {offsets = [0, 128], sizes = [8, 128], strides = [1, 1]} : vector<8x512xf32> to vector<8x128xf32>
    %413 = arith.negf %412 : vector<8x128xf32>
    %414 = math.exp %413 : vector<8x128xf32>
    %cst_126 = arith.constant 1.000000e+00 : f32
    %415 = vector.broadcast %cst_126 : f32 to vector<8x128xf32>
    %416 = arith.addf %415, %414 : vector<8x128xf32>
    %417 = arith.divf %415, %416 : vector<8x128xf32>
    %418 = vector.extract_strided_slice %405 {offsets = [0, 256], sizes = [8, 128], strides = [1, 1]} : vector<8x512xf32> to vector<8x128xf32>
    %419 = math.tanh %418 : vector<8x128xf32>
    %420 = vector.extract_strided_slice %405 {offsets = [0, 384], sizes = [8, 128], strides = [1, 1]} : vector<8x512xf32> to vector<8x128xf32>
    %421 = arith.negf %420 : vector<8x128xf32>
    %422 = math.exp %421 : vector<8x128xf32>
    %cst_127 = arith.constant 1.000000e+00 : f32
    %423 = vector.broadcast %cst_127 : f32 to vector<8x128xf32>
    %424 = arith.addf %423, %422 : vector<8x128xf32>
    %425 = arith.divf %423, %424 : vector<8x128xf32>
    %426 = arith.mulf %417, %396 : vector<8x128xf32>
    %427 = arith.mulf %411, %419 : vector<8x128xf32>
    %428 = arith.addf %426, %427 : vector<8x128xf32>
    %429 = math.tanh %428 : vector<8x128xf32>
    %430 = arith.mulf %425, %429 : vector<8x128xf32>
    %c3_i32_128 = arith.constant 3 : i32
    %431 = arith.index_cast %c3_i32_128 : i32 to index
    %c0_129 = arith.constant 0 : index
    %c0_130 = arith.constant 0 : index
    %432 = vector.load %arg13[%431, %c0_129, %c0_130] : memref<8x8x512xbf16, #tpu.memory_space<vmem>>, vector<1x8x512xbf16>
    %433 = vector.shape_cast %432 : vector<1x8x512xbf16> to vector<8x512xbf16>
    %434 = arith.extf %433 : vector<8x512xbf16> to vector<8x512xf32>
    %435 = arith.truncf %430 : vector<8x128xf32> to vector<8x128xbf16>
    %cst_131 = arith.constant dense<0.000000e+00> : vector<8x512xf32>
    %436 = tpu.matmul %435, %330, %cst_131 {dimension_numbers = #tpu.dot_dimension_numbers<[1], [0], [0], [1], [0, 0, 1, 1], [], []>} : vector<8x128xbf16>, vector<128x512xbf16>, vector<8x512xf32> -> vector<8x512xf32>
    %437 = arith.addf %434, %436 : vector<8x512xf32>
    %438 = vector.extract_strided_slice %437 {offsets = [0, 0], sizes = [8, 128], strides = [1, 1]} : vector<8x512xf32> to vector<8x128xf32>
    %439 = arith.negf %438 : vector<8x128xf32>
    %440 = math.exp %439 : vector<8x128xf32>
    %cst_132 = arith.constant 1.000000e+00 : f32
    %441 = vector.broadcast %cst_132 : f32 to vector<8x128xf32>
    %442 = arith.addf %441, %440 : vector<8x128xf32>
    %443 = arith.divf %441, %442 : vector<8x128xf32>
    %444 = vector.extract_strided_slice %437 {offsets = [0, 128], sizes = [8, 128], strides = [1, 1]} : vector<8x512xf32> to vector<8x128xf32>
    %445 = arith.negf %444 : vector<8x128xf32>
    %446 = math.exp %445 : vector<8x128xf32>
    %cst_133 = arith.constant 1.000000e+00 : f32
    %447 = vector.broadcast %cst_133 : f32 to vector<8x128xf32>
    %448 = arith.addf %447, %446 : vector<8x128xf32>
    %449 = arith.divf %447, %448 : vector<8x128xf32>
    %450 = vector.extract_strided_slice %437 {offsets = [0, 256], sizes = [8, 128], strides = [1, 1]} : vector<8x512xf32> to vector<8x128xf32>
    %451 = math.tanh %450 : vector<8x128xf32>
    %452 = vector.extract_strided_slice %437 {offsets = [0, 384], sizes = [8, 128], strides = [1, 1]} : vector<8x512xf32> to vector<8x128xf32>
    %453 = arith.negf %452 : vector<8x128xf32>
    %454 = math.exp %453 : vector<8x128xf32>
    %cst_134 = arith.constant 1.000000e+00 : f32
    %455 = vector.broadcast %cst_134 : f32 to vector<8x128xf32>
    %456 = arith.addf %455, %454 : vector<8x128xf32>
    %457 = arith.divf %455, %456 : vector<8x128xf32>
    %458 = arith.mulf %449, %428 : vector<8x128xf32>
    %459 = arith.mulf %443, %451 : vector<8x128xf32>
    %460 = arith.addf %458, %459 : vector<8x128xf32>
    %461 = math.tanh %460 : vector<8x128xf32>
    %462 = arith.mulf %457, %461 : vector<8x128xf32>
    %c4_i32_135 = arith.constant 4 : i32
    %463 = arith.index_cast %c4_i32_135 : i32 to index
    %c0_136 = arith.constant 0 : index
    %c0_137 = arith.constant 0 : index
    %464 = vector.load %arg13[%463, %c0_136, %c0_137] : memref<8x8x512xbf16, #tpu.memory_space<vmem>>, vector<1x8x512xbf16>
    %465 = vector.shape_cast %464 : vector<1x8x512xbf16> to vector<8x512xbf16>
    %466 = arith.extf %465 : vector<8x512xbf16> to vector<8x512xf32>
    %467 = arith.truncf %462 : vector<8x128xf32> to vector<8x128xbf16>
    %cst_138 = arith.constant dense<0.000000e+00> : vector<8x512xf32>
    %468 = tpu.matmul %467, %330, %cst_138 {dimension_numbers = #tpu.dot_dimension_numbers<[1], [0], [0], [1], [0, 0, 1, 1], [], []>} : vector<8x128xbf16>, vector<128x512xbf16>, vector<8x512xf32> -> vector<8x512xf32>
    %469 = arith.addf %466, %468 : vector<8x512xf32>
    %470 = vector.extract_strided_slice %469 {offsets = [0, 0], sizes = [8, 128], strides = [1, 1]} : vector<8x512xf32> to vector<8x128xf32>
    %471 = arith.negf %470 : vector<8x128xf32>
    %472 = math.exp %471 : vector<8x128xf32>
    %cst_139 = arith.constant 1.000000e+00 : f32
    %473 = vector.broadcast %cst_139 : f32 to vector<8x128xf32>
    %474 = arith.addf %473, %472 : vector<8x128xf32>
    %475 = arith.divf %473, %474 : vector<8x128xf32>
    %476 = vector.extract_strided_slice %469 {offsets = [0, 128], sizes = [8, 128], strides = [1, 1]} : vector<8x512xf32> to vector<8x128xf32>
    %477 = arith.negf %476 : vector<8x128xf32>
    %478 = math.exp %477 : vector<8x128xf32>
    %cst_140 = arith.constant 1.000000e+00 : f32
    %479 = vector.broadcast %cst_140 : f32 to vector<8x128xf32>
    %480 = arith.addf %479, %478 : vector<8x128xf32>
    %481 = arith.divf %479, %480 : vector<8x128xf32>
    %482 = vector.extract_strided_slice %469 {offsets = [0, 256], sizes = [8, 128], strides = [1, 1]} : vector<8x512xf32> to vector<8x128xf32>
    %483 = math.tanh %482 : vector<8x128xf32>
    %484 = vector.extract_strided_slice %469 {offsets = [0, 384], sizes = [8, 128], strides = [1, 1]} : vector<8x512xf32> to vector<8x128xf32>
    %485 = arith.negf %484 : vector<8x128xf32>
    %486 = math.exp %485 : vector<8x128xf32>
    %cst_141 = arith.constant 1.000000e+00 : f32
    %487 = vector.broadcast %cst_141 : f32 to vector<8x128xf32>
    %488 = arith.addf %487, %486 : vector<8x128xf32>
    %489 = arith.divf %487, %488 : vector<8x128xf32>
    %490 = arith.mulf %481, %460 : vector<8x128xf32>
    %491 = arith.mulf %475, %483 : vector<8x128xf32>
    %492 = arith.addf %490, %491 : vector<8x128xf32>
    %493 = math.tanh %492 : vector<8x128xf32>
    %494 = arith.mulf %489, %493 : vector<8x128xf32>
    %c5_i32_142 = arith.constant 5 : i32
    %495 = arith.index_cast %c5_i32_142 : i32 to index
    %c0_143 = arith.constant 0 : index
    %c0_144 = arith.constant 0 : index
    %496 = vector.load %arg13[%495, %c0_143, %c0_144] : memref<8x8x512xbf16, #tpu.memory_space<vmem>>, vector<1x8x512xbf16>
    %497 = vector.shape_cast %496 : vector<1x8x512xbf16> to vector<8x512xbf16>
    %498 = arith.extf %497 : vector<8x512xbf16> to vector<8x512xf32>
    %499 = arith.truncf %494 : vector<8x128xf32> to vector<8x128xbf16>
    %cst_145 = arith.constant dense<0.000000e+00> : vector<8x512xf32>
    %500 = tpu.matmul %499, %330, %cst_145 {dimension_numbers = #tpu.dot_dimension_numbers<[1], [0], [0], [1], [0, 0, 1, 1], [], []>} : vector<8x128xbf16>, vector<128x512xbf16>, vector<8x512xf32> -> vector<8x512xf32>
    %501 = arith.addf %498, %500 : vector<8x512xf32>
    %502 = vector.extract_strided_slice %501 {offsets = [0, 0], sizes = [8, 128], strides = [1, 1]} : vector<8x512xf32> to vector<8x128xf32>
    %503 = arith.negf %502 : vector<8x128xf32>
    %504 = math.exp %503 : vector<8x128xf32>
    %cst_146 = arith.constant 1.000000e+00 : f32
    %505 = vector.broadcast %cst_146 : f32 to vector<8x128xf32>
    %506 = arith.addf %505, %504 : vector<8x128xf32>
    %507 = arith.divf %505, %506 : vector<8x128xf32>
    %508 = vector.extract_strided_slice %501 {offsets = [0, 128], sizes = [8, 128], strides = [1, 1]} : vector<8x512xf32> to vector<8x128xf32>
    %509 = arith.negf %508 : vector<8x128xf32>
    %510 = math.exp %509 : vector<8x128xf32>
    %cst_147 = arith.constant 1.000000e+00 : f32
    %511 = vector.broadcast %cst_147 : f32 to vector<8x128xf32>
    %512 = arith.addf %511, %510 : vector<8x128xf32>
    %513 = arith.divf %511, %512 : vector<8x128xf32>
    %514 = vector.extract_strided_slice %501 {offsets = [0, 256], sizes = [8, 128], strides = [1, 1]} : vector<8x512xf32> to vector<8x128xf32>
    %515 = math.tanh %514 : vector<8x128xf32>
    %516 = vector.extract_strided_slice %501 {offsets = [0, 384], sizes = [8, 128], strides = [1, 1]} : vector<8x512xf32> to vector<8x128xf32>
    %517 = arith.negf %516 : vector<8x128xf32>
    %518 = math.exp %517 : vector<8x128xf32>
    %cst_148 = arith.constant 1.000000e+00 : f32
    %519 = vector.broadcast %cst_148 : f32 to vector<8x128xf32>
    %520 = arith.addf %519, %518 : vector<8x128xf32>
    %521 = arith.divf %519, %520 : vector<8x128xf32>
    %522 = arith.mulf %513, %492 : vector<8x128xf32>
    %523 = arith.mulf %507, %515 : vector<8x128xf32>
    %524 = arith.addf %522, %523 : vector<8x128xf32>
    %525 = math.tanh %524 : vector<8x128xf32>
    %526 = arith.mulf %521, %525 : vector<8x128xf32>
    %c6_i32_149 = arith.constant 6 : i32
    %527 = arith.index_cast %c6_i32_149 : i32 to index
    %c0_150 = arith.constant 0 : index
    %c0_151 = arith.constant 0 : index
    %528 = vector.load %arg13[%527, %c0_150, %c0_151] : memref<8x8x512xbf16, #tpu.memory_space<vmem>>, vector<1x8x512xbf16>
    %529 = vector.shape_cast %528 : vector<1x8x512xbf16> to vector<8x512xbf16>
    %530 = arith.extf %529 : vector<8x512xbf16> to vector<8x512xf32>
    %531 = arith.truncf %526 : vector<8x128xf32> to vector<8x128xbf16>
    %cst_152 = arith.constant dense<0.000000e+00> : vector<8x512xf32>
    %532 = tpu.matmul %531, %330, %cst_152 {dimension_numbers = #tpu.dot_dimension_numbers<[1], [0], [0], [1], [0, 0, 1, 1], [], []>} : vector<8x128xbf16>, vector<128x512xbf16>, vector<8x512xf32> -> vector<8x512xf32>
    %533 = arith.addf %530, %532 : vector<8x512xf32>
    %534 = vector.extract_strided_slice %533 {offsets = [0, 0], sizes = [8, 128], strides = [1, 1]} : vector<8x512xf32> to vector<8x128xf32>
    %535 = arith.negf %534 : vector<8x128xf32>
    %536 = math.exp %535 : vector<8x128xf32>
    %cst_153 = arith.constant 1.000000e+00 : f32
    %537 = vector.broadcast %cst_153 : f32 to vector<8x128xf32>
    %538 = arith.addf %537, %536 : vector<8x128xf32>
    %539 = arith.divf %537, %538 : vector<8x128xf32>
    %540 = vector.extract_strided_slice %533 {offsets = [0, 128], sizes = [8, 128], strides = [1, 1]} : vector<8x512xf32> to vector<8x128xf32>
    %541 = arith.negf %540 : vector<8x128xf32>
    %542 = math.exp %541 : vector<8x128xf32>
    %cst_154 = arith.constant 1.000000e+00 : f32
    %543 = vector.broadcast %cst_154 : f32 to vector<8x128xf32>
    %544 = arith.addf %543, %542 : vector<8x128xf32>
    %545 = arith.divf %543, %544 : vector<8x128xf32>
    %546 = vector.extract_strided_slice %533 {offsets = [0, 256], sizes = [8, 128], strides = [1, 1]} : vector<8x512xf32> to vector<8x128xf32>
    %547 = math.tanh %546 : vector<8x128xf32>
    %548 = vector.extract_strided_slice %533 {offsets = [0, 384], sizes = [8, 128], strides = [1, 1]} : vector<8x512xf32> to vector<8x128xf32>
    %549 = arith.negf %548 : vector<8x128xf32>
    %550 = math.exp %549 : vector<8x128xf32>
    %cst_155 = arith.constant 1.000000e+00 : f32
    %551 = vector.broadcast %cst_155 : f32 to vector<8x128xf32>
    %552 = arith.addf %551, %550 : vector<8x128xf32>
    %553 = arith.divf %551, %552 : vector<8x128xf32>
    %554 = arith.mulf %545, %524 : vector<8x128xf32>
    %555 = arith.mulf %539, %547 : vector<8x128xf32>
    %556 = arith.addf %554, %555 : vector<8x128xf32>
    %557 = math.tanh %556 : vector<8x128xf32>
    %558 = arith.mulf %553, %557 : vector<8x128xf32>
    %c7_i32_156 = arith.constant 7 : i32
    %559 = arith.index_cast %c7_i32_156 : i32 to index
    %c0_157 = arith.constant 0 : index
    %c0_158 = arith.constant 0 : index
    %560 = vector.load %arg13[%559, %c0_157, %c0_158] : memref<8x8x512xbf16, #tpu.memory_space<vmem>>, vector<1x8x512xbf16>
    %561 = vector.shape_cast %560 : vector<1x8x512xbf16> to vector<8x512xbf16>
    %562 = arith.extf %561 : vector<8x512xbf16> to vector<8x512xf32>
    %563 = arith.truncf %558 : vector<8x128xf32> to vector<8x128xbf16>
    %cst_159 = arith.constant dense<0.000000e+00> : vector<8x512xf32>
    %564 = tpu.matmul %563, %330, %cst_159 {dimension_numbers = #tpu.dot_dimension_numbers<[1], [0], [0], [1], [0, 0, 1, 1], [], []>} : vector<8x128xbf16>, vector<128x512xbf16>, vector<8x512xf32> -> vector<8x512xf32>
    %565 = arith.addf %562, %564 : vector<8x512xf32>
    %566 = vector.extract_strided_slice %565 {offsets = [0, 0], sizes = [8, 128], strides = [1, 1]} : vector<8x512xf32> to vector<8x128xf32>
    %567 = arith.negf %566 : vector<8x128xf32>
    %568 = math.exp %567 : vector<8x128xf32>
    %cst_160 = arith.constant 1.000000e+00 : f32
    %569 = vector.broadcast %cst_160 : f32 to vector<8x128xf32>
    %570 = arith.addf %569, %568 : vector<8x128xf32>
    %571 = arith.divf %569, %570 : vector<8x128xf32>
    %572 = vector.extract_strided_slice %565 {offsets = [0, 128], sizes = [8, 128], strides = [1, 1]} : vector<8x512xf32> to vector<8x128xf32>
    %573 = arith.negf %572 : vector<8x128xf32>
    %574 = math.exp %573 : vector<8x128xf32>
    %cst_161 = arith.constant 1.000000e+00 : f32
    %575 = vector.broadcast %cst_161 : f32 to vector<8x128xf32>
    %576 = arith.addf %575, %574 : vector<8x128xf32>
    %577 = arith.divf %575, %576 : vector<8x128xf32>
    %578 = vector.extract_strided_slice %565 {offsets = [0, 256], sizes = [8, 128], strides = [1, 1]} : vector<8x512xf32> to vector<8x128xf32>
    %579 = math.tanh %578 : vector<8x128xf32>
    %580 = vector.extract_strided_slice %565 {offsets = [0, 384], sizes = [8, 128], strides = [1, 1]} : vector<8x512xf32> to vector<8x128xf32>
    %581 = arith.negf %580 : vector<8x128xf32>
    %582 = math.exp %581 : vector<8x128xf32>
    %cst_162 = arith.constant 1.000000e+00 : f32
    %583 = vector.broadcast %cst_162 : f32 to vector<8x128xf32>
    %584 = arith.addf %583, %582 : vector<8x128xf32>
    %585 = arith.divf %583, %584 : vector<8x128xf32>
    %586 = arith.mulf %577, %556 : vector<8x128xf32>
    %587 = arith.mulf %571, %579 : vector<8x128xf32>
    %588 = arith.addf %586, %587 : vector<8x128xf32>
    %589 = math.tanh %588 : vector<8x128xf32>
    %590 = arith.mulf %585, %589 : vector<8x128xf32>
    %c8_i32_163 = arith.constant 8 : i32
    %c1_164 = arith.constant 1 : index
    %c0_165 = arith.constant 0 : index
    %c0_166 = arith.constant 0 : index
    %591 = vector.load %arg15[%c1_164, %c0_165, %c0_166] : memref<2x8x128xf32, #tpu.memory_space<vmem>>, vector<1x8x128xf32>
    %592 = vector.shape_cast %591 : vector<1x8x128xf32> to vector<8x128xf32>
    %593 = vector.shape_cast %590 : vector<8x128xf32> to vector<1x8x128xf32>
    tpu.vector_store %arg15[%c1_164, %c0_165, %c0_166], %593 {strides = array<i32>} : memref<2x8x128xf32, #tpu.memory_space<vmem>>, vector<1x8x128xf32>,
    %c1_167 = arith.constant 1 : index
    %c0_168 = arith.constant 0 : index
    %c0_169 = arith.constant 0 : index
    %594 = vector.load %arg16[%c1_167, %c0_168, %c0_169] : memref<2x8x128xf32, #tpu.memory_space<vmem>>, vector<1x8x128xf32>
    %595 = vector.shape_cast %594 : vector<1x8x128xf32> to vector<8x128xf32>
    %596 = vector.shape_cast %588 : vector<8x128xf32> to vector<1x8x128xf32>
    tpu.vector_store %arg16[%c1_167, %c0_168, %c0_169], %596 {strides = array<i32>} : memref<2x8x128xf32, #tpu.memory_space<vmem>>, vector<1x8x128xf32>,
    %c0_i32_170 = arith.constant 0 : i32
    %597 = arith.cmpi eq, %arg0, %c0_i32_170 : i32
    %598 = arith.extui %597 : i1 to i32
    %c0_i32_171 = arith.constant 0 : i32
    %599 = arith.cmpi ne, %598, %c0_i32_171 : i32
    scf.if %599 {
      %600 = arith.truncf %590 : vector<8x128xf32> to vector<8x128xbf16>
      %c0_172 = arith.constant 0 : index
      %c0_173 = arith.constant 0 : index
      %601 = vector.load %arg10[%c0_172, %c0_173] : memref<128x128xbf16, #tpu.memory_space<vmem>>, vector<128x128xbf16>
      %cst_174 = arith.constant dense<0.000000e+00> : vector<8x128xf32>
      %602 = tpu.matmul %600, %601, %cst_174 {dimension_numbers = #tpu.dot_dimension_numbers<[1], [0], [0], [1], [0, 0, 1, 1], [], []>} : vector<8x128xbf16>, vector<128x128xbf16>, vector<8x128xf32> -> vector<8x128xf32>
      %c0_175 = arith.constant 0 : index
      %c0_176 = arith.constant 0 : index
      %603 = vector.load %arg11[%c0_175, %c0_176] : memref<1x128xf32, #tpu.memory_space<vmem>>, vector<1x128xf32>
      %604 = vector.broadcast %603 : vector<1x128xf32> to vector<8x128xf32>
      %605 = arith.addf %602, %604 : vector<8x128xf32>
      %cst_177 = arith.constant dense<0xFF800000> : vector<8xf32>
      %606 = vector.multi_reduction <maximumf>, %605, %cst_177 [1] : vector<8x128xf32> to vector<8xf32>
      %607 = vector.shape_cast %606 : vector<8xf32> to vector<8x1xf32>
      %608 = vector.broadcast %607 : vector<8x1xf32> to vector<8x128xf32>
      %609 = arith.subf %605, %608 : vector<8x128xf32>
      %610 = math.exp %609 : vector<8x128xf32>
      %cst_178 = arith.constant dense<0.000000e+00> : vector<8xf32>
      %611 = vector.multi_reduction <add>, %610, %cst_178 [1] : vector<8x128xf32> to vector<8xf32>
      %612 = vector.shape_cast %611 : vector<8xf32> to vector<8x1xf32>
      %613 = tpu.reciprocal %612 {approx = true} : vector<8x1xf32> -> vector<8x1xf32>
      %614 = vector.broadcast %613 : vector<8x1xf32> to vector<8x128xf32>
      %615 = arith.mulf %610, %614 : vector<8x128xf32>
      %c0_179 = arith.constant 0 : index
      %c0_180 = arith.constant 0 : index
      %616 = vector.load %arg12[%c0_179, %c0_180] : memref<8x128xf32, #tpu.memory_space<vmem>>, vector<8x128xf32>
      tpu.vector_store %arg12[%c0_179, %c0_180], %615 {strides = array<i32>} : memref<8x128xf32, #tpu.memory_space<vmem>>, vector<8x128xf32>,
    } else {
    }
    return
  }
  func.func @transform_0(%arg0: i32) -> (i32, i32, i32) {
    %c0_i32 = arith.constant 0 : i32
    %c0_i32_0 = arith.constant 0 : i32
    %c0_i32_1 = arith.constant 0 : i32
    return %arg0, %c0_i32, %c0_i32_0 : i32, i32, i32
  }
  func.func @transform_1(%arg0: i32) -> (i32, i32, i32) {
    %c0_i32 = arith.constant 0 : i32
    %c0_i32_0 = arith.constant 0 : i32
    %c0_i32_1 = arith.constant 0 : i32
    %c0_i32_2 = arith.constant 0 : i32
    return %c0_i32, %c0_i32_0, %c0_i32_1 : i32, i32, i32
  }
  func.func @transform_2(%arg0: i32) -> (i32, i32, i32) {
    %c0_i32 = arith.constant 0 : i32
    %c0_i32_0 = arith.constant 0 : i32
    %c0_i32_1 = arith.constant 0 : i32
    %c0_i32_2 = arith.constant 0 : i32
    return %c0_i32, %c0_i32_0, %c0_i32_1 : i32, i32, i32
  }
  func.func @transform_3(%arg0: i32) -> (i32, i32) {
    %c0_i32 = arith.constant 0 : i32
    %c0_i32_0 = arith.constant 0 : i32
    %c0_i32_1 = arith.constant 0 : i32
    return %c0_i32, %c0_i32_0 : i32, i32
  }
  func.func @transform_4(%arg0: i32) -> (i32, i32) {
    %c0_i32 = arith.constant 0 : i32
    %c0_i32_0 = arith.constant 0 : i32
    %c0_i32_1 = arith.constant 0 : i32
    return %c0_i32, %c0_i32_0 : i32, i32
  }
  func.func @transform_5(%arg0: i32) -> (i32, i32) {
    %c0_i32 = arith.constant 0 : i32
    %c0_i32_0 = arith.constant 0 : i32
    %c0_i32_1 = arith.constant 0 : i32
    return %c0_i32, %c0_i32_0 : i32, i32
  }
  func.func @transform_6(%arg0: i32) -> (i32, i32) {
    %c0_i32 = arith.constant 0 : i32
    %c0_i32_0 = arith.constant 0 : i32
    %c0_i32_1 = arith.constant 0 : i32
    return %c0_i32, %c0_i32_0 : i32, i32
  }
  func.func @transform_7(%arg0: i32) -> (i32, i32) {
    %c0_i32 = arith.constant 0 : i32
    %c0_i32_0 = arith.constant 0 : i32
    %c0_i32_1 = arith.constant 0 : i32
    return %c0_i32, %c0_i32_0 : i32, i32
  }
  func.func @transform_8(%arg0: i32) -> (i32, i32) {
    %c0_i32 = arith.constant 0 : i32
    %c0_i32_0 = arith.constant 0 : i32
    %c0_i32_1 = arith.constant 0 : i32
    return %c0_i32, %c0_i32_0 : i32, i32
  }
  func.func @transform_9(%arg0: i32) -> (i32, i32) {
    %c0_i32 = arith.constant 0 : i32
    %c0_i32_0 = arith.constant 0 : i32
    %c0_i32_1 = arith.constant 0 : i32
    return %c0_i32, %c0_i32_0 : i32, i32
  }
  func.func @transform_10(%arg0: i32) -> (i32, i32) {
    %c0_i32 = arith.constant 0 : i32
    %c0_i32_0 = arith.constant 0 : i32
    %c0_i32_1 = arith.constant 0 : i32
    return %c0_i32, %c0_i32_0 : i32, i32
  }
  func.func @transform_11(%arg0: i32) -> (i32, i32) {
    %c0_i32 = arith.constant 0 : i32
    %c0_i32_0 = arith.constant 0 : i32
    %c0_i32_1 = arith.constant 0 : i32
    return %c0_i32, %c0_i32_0 : i32, i32
  }
}

</mosaic_0001>

<bundles_post_ra>
// kernel: lstm_model_forward.1
= control target key start
LH: loop header
LB: loop body
LE: loop exit
PB: predicated region body
PF: predicated region fallthrough
CT: control target
= control target key end

     0   :  { %vm126_vm0 = vcmask 1043456   ;;  %v5877_v2 = vmov 0   ;;  %vm113_vm1 = vcmask 64512   ;;  %v63_v47 = vlaneseq  ;;  %s5861_s3 = inlined_call_operand.vmem [shape: bf16[8,512], index: 3, kind: input, shape index: {}]   ;;  %s5862_s0 = inlined_call_operand.vmem [shape: bf16[8,8,8], index: 0, kind: input, shape index: {}]   ;;  %s5863_s4 = inlined_call_operand.vmem [shape: bf16[128,512], index: 4, kind: input, shape index: {}]   ;;  %s5864_s1 = inlined_call_operand.vmem [shape: f32[2,8,128], index: 1, kind: input, shape index: {}]   ;;  %s5865_s5 = inlined_call_operand.vmem [shape: f32[1,512], index: 5, kind: input, shape index: {}]   ;;  %s5866_s2 = inlined_call_operand.vmem [shape: f32[2,8,128], index: 2, kind: input, shape index: {}]   ;;  %s5867_s6 = inlined_call_operand.vmem [shape: bf16[128,512], index: 6, kind: input, shape index: {}]   ;;  %s5868_s7 = inlined_call_operand.vmem [shape: bf16[128,512], index: 7, kind: input, shape index: {}]   ;;  %s5869_s8 = inlined_call_operand.vmem [shape: f32[1,512], index: 8, kind: input, shape index: {}]   ;;  %s5870_s9 = inlined_call_operand.vmem [shape: bf16[128,128], index: 9, kind: input, shape index: {}]   ;;  %s5871_s10 = inlined_call_operand.vmem [shape: f32[1,128], index: 10, kind: input, shape index: {}]   ;;  %s5872_s11 = inlined_call_operand.vmem [shape: f32[8,128], index: 11, kind: output, shape index: {}]  }
   0x1   :  { %v59_v0 = vld [vmem:[%s5861_s3] sm:$0xff]  ;;  %v60_v1 = vld [vmem:[%s5861_s3 + $0x8] sm:$0xff]  ;;  %171 = vmatprep.mubr.bf16.mxu0 %v5877_v2  ;;  %244 = vmatprep.mubr.bf16.mxu1 %v5877_v2  ;;  %v3684_v29 = vld [vmem:[%s5862_s0 + $0x10] sm:$0xff]   ;;  %vm4144_vm2 = vmmov 0  }
   0x2   :  { %v3388_v3 = vcombine.high %v59_v0, %v59_v0  ;;  %v3390_v4 = vcombine.high %v60_v1, %v60_v1  ;;  %v3387_v5 = vcombine.low %v59_v0, %v59_v0  ;;  %v3389_v6 = vcombine.low %v60_v1, %v60_v1  ;;  %v3658_v7 = vld [vmem:[%s5862_s0] sm:$0xff]   ;;  %v4224_v11 = vld [vmem:[%s5863_s4 + $0xc] ss:$16 sps:$4 sm:$0xff]   ;;  %v4234_v13 = vld [vmem:[%s5863_s4 + $0x8] ss:$16 sps:$4 sm:$0xff]  }
   0x3   :  { %v4219_v8 = vld [vmem:[%s5863_s4 + $0x4] ss:$16 sps:$4 sm:$0xff]   ;;  %v4229_v12 = vld [vmem:[%s5863_s4] ss:$16 sps:$4 sm:$0xff]   ;;  %v4246_v15 = vld [vmem:[%s5863_s4 + $0x2c] ss:$16 sps:$4 sm:$0xff]  }
   0x4   :  { %3391 = vmatprep.subr.msk.bf16.mxu0 %vm126_vm0, %v3388_v3  ;;  %3396 = vmatprep.subr.msk.bf16.mxu1 %vm126_vm0, %v3390_v4  ;;  %v128_v9 = vsel %vm126_vm0, %v3387_v5, 0  ;;  %v134_v10 = vsel %vm126_vm0, %v3389_v6, 0  ;;  %v4241_v14 = vld [vmem:[%s5863_s4 + $0x24] ss:$16 sps:$4 sm:$0xff]   ;;  %v4251_v16 = vld [vmem:[%s5863_s4 + $0x20] ss:$16 sps:$4 sm:$0xff]  }
   0x5   :  { %140 = vmatpush1.bf16.msra.mxu0 %v128_v9  ;;  %213 = vmatpush1.bf16.msra.mxu1 %v134_v10  ;;  %v4258_v17 = vld [vmem:[%s5863_s4 + $0x28] ss:$16 sps:$4 sm:$0xff]   ;;  %v4265_v18 = vld [vmem:[%s5863_s4 + $0x44] ss:$16 sps:$4 sm:$0xff]   ;;  %v4272_v19 = vld [vmem:[%s5863_s4 + $0x4c] ss:$16 sps:$4 sm:$0xff]  }
   0x6   :  { %630 = vmatprep.subr.bf16.mxu0 %v4219_v8  ;;  %671 = vmatprep.subr.bf16.mxu1 %v4224_v11  ;;  %v3671_v20 = vld [vmem:[%s5862_s0 + $0x8] sm:$0xff]   ;;  %v4282_v21 = vld [vmem:[%s5863_s4 + $0x40] ss:$16 sps:$4 sm:$0xff]   ;;  %v4294_v23 = vld [vmem:[%s5863_s4 + $0x64] ss:$16 sps:$4 sm:$0xff]   ;;  %v4472_v48 = vshrl.u32 %v63_v47, 7 }
   0x7   :  { %v4289_v22 = vld [vmem:[%s5863_s4 + $0x48] ss:$16 sps:$4 sm:$0xff]   ;;  %v4301_v24 = vld [vmem:[%s5863_s4 + $0x6c] ss:$16 sps:$4 sm:$0xff]   ;;  %v4310_v25 = vld [vmem:[%s5863_s4 + $0x60] ss:$16 sps:$4 sm:$0xff]  }
   0x8   :  { %3392 = vmatmul.mubr.msk.bf16.vlgmr.msra.gmra.mrb[0].mxu0 %vm113_vm1, %v3658_v7  ;;  %3397 = vmatmul.mubr.msk.bf16.vlgmr.msra.gmra.mrb[0].mxu1 %vm113_vm1, %v3658_v7  ;;  %v4315_v26 = vld [vmem:[%s5863_s4 + $0x68] ss:$16 sps:$4 sm:$0xff]   ;;  %v4320_v27 = vld [vmem:[%s5863_s4 + $0x84] ss:$16 sps:$4 sm:$0xff]   ;;  %v4327_v28 = vld [vmem:[%s5863_s4 + $0x8c] ss:$16 sps:$4 sm:$0xff]  }
   0x9   :  { %631 = vmatpush1.bf16.msra.mxu0 %v4229_v12  ;;  %672 = vmatpush1.bf16.msra.mxu1 %v4234_v13  ;;  %v4337_v30 = vld [vmem:[%s5863_s4 + $0x80] ss:$16 sps:$4 sm:$0xff]   ;;  %v4342_v31 = vld [vmem:[%s5863_s4 + $0x88] ss:$16 sps:$4 sm:$0xff]   ;;  %v4349_v32 = vld [vmem:[%s5863_s4 + $0xa4] ss:$16 sps:$4 sm:$0xff]  }
   0xa   :  { %632 = vmatprep.subr.bf16.mxu0 %v4241_v14  ;;  %673 = vmatprep.subr.bf16.mxu1 %v4246_v15  ;;  %v4356_v33 = vld [vmem:[%s5863_s4 + $0xac] ss:$16 sps:$4 sm:$0xff]   ;;  %v4363_v34 = vld [vmem:[%s5863_s4 + $0xa0] ss:$16 sps:$4 sm:$0xff]   ;;  %v4370_v35 = vld [vmem:[%s5863_s4 + $0xa8] ss:$16 sps:$4 sm:$0xff]  }
   0xb   :  { %181 = vmatprep.mubr.bf16.mxu0 %v5877_v2  ;;  %254 = vmatprep.mubr.bf16.mxu1 %v5877_v2  ;;  %v4377_v36 = vld [vmem:[%s5863_s4 + $0xc4] ss:$16 sps:$4 sm:$0xff]   ;;  %v4382_v37 = vld [vmem:[%s5863_s4 + $0xcc] ss:$16 sps:$4 sm:$0xff]   ;;  %v4394_v39 = vld [vmem:[%s5863_s4 + $0xc0] ss:$16 sps:$4 sm:$0xff]  }
   0xc   :  { %v3697_v38 = vld [vmem:[%s5862_s0 + $0x18] sm:$0xff]   ;;  %v4406_v41 = vld [vmem:[%s5863_s4 + $0xe4] ss:$16 sps:$4 sm:$0xff]   ;;  %v4420_v43 = vld [vmem:[%s5863_s4 + $0xe0] ss:$16 sps:$4 sm:$0xff]   ;;  %5892 = vst [vmem:[#allocation6_spill] sm:$0xff] %v4472_v48 }
   0xd   :  { %633 = vmatpush1.bf16.msra.mxu0 %v4251_v16  ;;  %674 = vmatpush1.bf16.msra.mxu1 %v4258_v17  ;;  %v4399_v40 = vld [vmem:[%s5863_s4 + $0xc8] ss:$16 sps:$4 sm:$0xff]   ;;  %v4411_v42 = vld [vmem:[%s5863_s4 + $0xec] ss:$16 sps:$4 sm:$0xff]   ;;  %v43_v45 = vld [vmem:[%s5864_s1] sm:$0xff]  ;;  %v5876_v49 = vsub.s32 0, %v4472_v48 }
   0xe   :  { %634 = vmatprep.subr.bf16.mxu0 %v4265_v18  ;;  %675 = vmatprep.subr.bf16.mxu1 %v4272_v19  ;;  %v4425_v44 = vld [vmem:[%s5863_s4 + $0xe8] ss:$16 sps:$4 sm:$0xff]   ;;  %v469_v46 = vpack.c.bf16 %v43_v45, %v43_v45  ;;  %v5875_v50 = vsub.s32 2, %v4472_v48  ;;  %v61_v51 = vld [vmem:[%s5865_s5] sm:$0xf]  ;;  %v5874_v52 = vsub.s32 1, %v4472_v48 }
   0xf   :  { %v5873_v53 = vsub.s32 3, %v4472_v48  ;;  %v4483_v54 = vrot.slane %v61_v51, %v5876_v49 }
  0x10   :  { %3393 = vmatmul.mubr.msk.bf16.gmra.mrb[4].mxu0 %vm113_vm1, %v3671_v20  ;;  %3398 = vmatmul.mubr.msk.bf16.gmra.mrb[4].mxu1 %vm113_vm1, %v3671_v20  ;;  %v4487_v55 = vrot.slane %v61_v51, %v5875_v50  ;;  %v4491_v56 = vrot.slane %v61_v51, %v5874_v52 }
  0x11   :  { %635 = vmatpush1.bf16.msra.mxu0 %v4282_v21  ;;  %676 = vmatpush1.bf16.msra.mxu1 %v4289_v22  ;;  %v4495_v57 = vrot.slane %v61_v51, %v5873_v53 }
  0x12   :  { %636 = vmatprep.subr.bf16.mxu0 %v4294_v23  ;;  %677 = vmatprep.subr.bf16.mxu1 %v4301_v24 }
  0x13   :  { %191 = vmatprep.mubr.bf16.mxu0 %v5877_v2  ;;  %264 = vmatprep.mubr.bf16.mxu1 %v5877_v2 }
  0x15   :  { %637 = vmatpush1.bf16.msra.mxu0 %v4310_v25  ;;  %678 = vmatpush1.bf16.msra.mxu1 %v4315_v26 }
  0x16   :  { %638 = vmatprep.subr.bf16.mxu0 %v4320_v27  ;;  %679 = vmatprep.subr.bf16.mxu1 %v4327_v28 }
  0x18   :  { %3394 = vmatmul.mubr.msk.bf16.gmra.mrb[8].mxu0 %vm113_vm1, %v3684_v29  ;;  %3399 = vmatmul.mubr.msk.bf16.gmra.mrb[8].mxu1 %vm113_vm1, %v3684_v29 }
  0x19   :  { %639 = vmatpush1.bf16.msra.mxu0 %v4337_v30  ;;  %680 = vmatpush1.bf16.msra.mxu1 %v4342_v31 }
  0x1a   :  { %640 = vmatprep.subr.bf16.mxu0 %v4349_v32  ;;  %681 = vmatprep.subr.bf16.mxu1 %v4356_v33 }
  0x1b   :  { %201 = vmatprep.mubr.bf16.mxu0 %v5877_v2  ;;  %274 = vmatprep.mubr.bf16.mxu1 %v5877_v2 }
  0x1d   :  { %641 = vmatpush1.bf16.msra.mxu0 %v4363_v34  ;;  %682 = vmatpush1.bf16.msra.mxu1 %v4370_v35 }
  0x1e   :  { %642 = vmatprep.subr.bf16.mxu0 %v4377_v36  ;;  %683 = vmatprep.subr.bf16.mxu1 %v4382_v37 }
  0x20   :  { %3395 = vmatmul.mubr.msk.bf16.gmra.mrb[12].mxu0 %vm113_vm1, %v3697_v38  ;;  %3400 = vmatmul.mubr.msk.bf16.gmra.mrb[12].mxu1 %vm113_vm1, %v3697_v38 }
  0x21   :  { %643 = vmatpush1.bf16.msra.mxu0 %v4394_v39  ;;  %684 = vmatpush1.bf16.msra.mxu1 %v4399_v40 }
  0x22   :  { %644 = vmatprep.subr.bf16.mxu0 %v4406_v41  ;;  %685 = vmatprep.subr.bf16.mxu1 %v4411_v42 }
  0x23   :  { %662 = vmatprep.mubr.bf16.mxu0 %v5877_v2  ;;  %703 = vmatprep.mubr.bf16.mxu1 %v5877_v2 }
  0x25   :  { %645 = vmatpush1.bf16.msra.mxu0 %v4420_v43  ;;  %686 = vmatpush1.bf16.msra.mxu1 %v4425_v44 }
  0x26   :  { %749 = vmatprep.subr.bf16.mxu0 %v4219_v8  ;;  %790 = vmatprep.subr.bf16.mxu1 %v4224_v11 }
  0x28   :  { %663 = vmatmul.mubr.bf16.vlgmr.msra.gmra.mrb[16].mxu0 %v469_v46  ;;  %704 = vmatmul.mubr.bf16.vlgmr.msra.gmra.mrb[16].mxu1 %v469_v46 }
  0x29   :  { %750 = vmatpush1.bf16.msra.mxu0 %v4229_v12  ;;  %791 = vmatpush1.bf16.msra.mxu1 %v4234_v13 }
  0x2a   :  { %751 = vmatprep.subr.bf16.mxu0 %v4241_v14  ;;  %792 = vmatprep.subr.bf16.mxu1 %v4246_v15 }
  0x2b   :  { %781 = vmatprep.mubr.bf16.mxu0 %v5877_v2  ;;  %822 = vmatprep.mubr.bf16.mxu1 %v5877_v2 }
  0x2d   :  { %752 = vmatpush1.bf16.msra.mxu0 %v4251_v16  ;;  %793 = vmatpush1.bf16.msra.mxu1 %v4258_v17 }
  0x2e   :  { %753 = vmatprep.subr.bf16.mxu0 %v4265_v18  ;;  %794 = vmatprep.subr.bf16.mxu1 %v4272_v19 }
  0x31   :  { %754 = vmatpush1.bf16.msra.mxu0 %v4282_v21  ;;  %795 = vmatpush1.bf16.msra.mxu1 %v4289_v22 }
  0x32   :  { %755 = vmatprep.subr.bf16.mxu0 %v4294_v23  ;;  %796 = vmatprep.subr.bf16.mxu1 %v4301_v24 }
  0x35   :  { %756 = vmatpush1.bf16.msra.mxu0 %v4310_v25  ;;  %797 = vmatpush1.bf16.msra.mxu1 %v4315_v26 }
  0x36   :  { %757 = vmatprep.subr.bf16.mxu0 %v4320_v27  ;;  %798 = vmatprep.subr.bf16.mxu1 %v4327_v28 }
  0x39   :  { %758 = vmatpush1.bf16.msra.mxu0 %v4337_v30  ;;  %799 = vmatpush1.bf16.msra.mxu1 %v4342_v31 }
  0x3a   :  { %759 = vmatprep.subr.bf16.mxu0 %v4349_v32  ;;  %800 = vmatprep.subr.bf16.mxu1 %v4356_v33 }
  0x3d   :  { %760 = vmatpush1.bf16.msra.mxu0 %v4363_v34  ;;  %801 = vmatpush1.bf16.msra.mxu1 %v4370_v35 }
  0x3e   :  { %761 = vmatprep.subr.bf16.mxu0 %v4377_v36  ;;  %802 = vmatprep.subr.bf16.mxu1 %v4382_v37 }
  0x41   :  { %762 = vmatpush1.bf16.msra.mxu0 %v4394_v39  ;;  %803 = vmatpush1.bf16.msra.mxu1 %v4399_v40 }
  0x42   :  { %763 = vmatprep.subr.bf16.mxu0 %v4406_v41  ;;  %804 = vmatprep.subr.bf16.mxu1 %v4411_v42 }
  0x45   :  { %764 = vmatpush1.bf16.msra.mxu0 %v4420_v43  ;;  %805 = vmatpush1.bf16.msra.mxu1 %v4425_v44 }
  0x46   :  { %869 = vmatprep.subr.bf16.mxu0 %v4219_v8  ;;  %910 = vmatprep.subr.bf16.mxu1 %v4224_v11 }
  0xdb   :  { %v173_v58 = vpop.f32.mrb[0].mxu0  ;;  %v246_v59 = vpop.f32.mrb[0].mxu1 }
  0xdc   :  { %v174_v60 = vadd.f32 %v173_v58, %v4483_v54  ;;  %v175_v61 = vpop.f32.mrb[1].mxu0  ;;  %v247_v62 = vadd.f32 %v246_v59, %v4487_v55  ;;  %v248_v63 = vpop.f32.mrb[1].mxu1 }
  0xdd   :  { %v176_v0 = vadd.f32 %v175_v61, %v4491_v56  ;;  %v177_v1 = vpop.f32.mrb[2].mxu0  ;;  %v249_v3 = vadd.f32 %v248_v63, %v4495_v57  ;;  %v250_v4 = vpop.f32.mrb[2].mxu1 }
  0xde   :  { %v178_v5 = vadd.f32 %v177_v1, %v4483_v54  ;;  %v179_v6 = vpop.f32.mrb[3].mxu0  ;;  %v251_v7 = vadd.f32 %v250_v4, %v4487_v55  ;;  %v252_v9 = vpop.f32.mrb[3].mxu1 }
  0xdf   :  { %v4503_v10 = vpack.c.bf16 %v176_v0, %v174_v60  ;;  %v180_v20 = vadd.f32 %v179_v6, %v4491_v56  ;;  %v4506_v29 = vpack.c.bf16 %v249_v3, %v247_v62  ;;  %v253_v38 = vadd.f32 %v252_v9, %v4495_v57 }
  0xe1   :  { %v4509_v45 = vpack.c.bf16 %v180_v20, %v178_v5  ;;  %v4511_v46 = vpack.c.bf16 %v253_v38, %v251_v7 }
  0xe3   :  { %v183_v47 = vpop.f32.mrb[4].mxu0  ;;  %v256_v51 = vpop.f32.mrb[4].mxu1 }
  0xe4   :  { %v184_v58 = vadd.f32 %v183_v47, %v4483_v54  ;;  %v185_v59 = vpop.f32.mrb[5].mxu0  ;;  %v257_v61 = vadd.f32 %v256_v51, %v4487_v55  ;;  %v258_v63 = vpop.f32.mrb[5].mxu1 }
  0xe5   :  { %v186_v60 = vadd.f32 %v185_v59, %v4491_v56  ;;  %v187_v0 = vpop.f32.mrb[6].mxu0  ;;  %v259_v62 = vadd.f32 %v258_v63, %v4495_v57  ;;  %v260_v1 = vpop.f32.mrb[6].mxu1 }
  0xe6   :  { %v188_v3 = vadd.f32 %v187_v0, %v4483_v54  ;;  %v189_v4 = vpop.f32.mrb[7].mxu0  ;;  %v261_v5 = vadd.f32 %v260_v1, %v4487_v55  ;;  %v262_v6 = vpop.f32.mrb[7].mxu1 }
  0xe7   :  { %v4519_v7 = vpack.c.bf16 %v186_v60, %v184_v58  ;;  %v190_v9 = vadd.f32 %v189_v4, %v4491_v56  ;;  %v4522_v20 = vpack.c.bf16 %v259_v62, %v257_v61  ;;  %v263_v38 = vadd.f32 %v262_v6, %v4495_v57 }
  0xe9   :  { %v4525_v47 = vpack.c.bf16 %v190_v9, %v188_v3  ;;  %v4527_v51 = vpack.c.bf16 %v263_v38, %v261_v5 }
  0xeb   :  { %v193_v59 = vpop.f32.mrb[8].mxu0  ;;  %v266_v63 = vpop.f32.mrb[8].mxu1 }
  0xec   :  { %v194_v0 = vadd.f32 %v193_v59, %v4483_v54  ;;  %v195_v53 = vpop.f32.mrb[9].mxu0  ;;  %v267_v1 = vadd.f32 %v266_v63, %v4487_v55  ;;  %v268_v52 = vpop.f32.mrb[9].mxu1 }
  0xed   :  { %v196_v58 = vadd.f32 %v195_v53, %v4491_v56  ;;  %v197_v60 = vpop.f32.mrb[10].mxu0  ;;  %v269_v61 = vadd.f32 %v268_v52, %v4495_v57  ;;  %v270_v62 = vpop.f32.mrb[10].mxu1 }
  0xee   :  { %v198_v4 = vadd.f32 %v197_v60, %v4483_v54  ;;  %v199_v3 = vpop.f32.mrb[11].mxu0  ;;  %v271_v5 = vadd.f32 %v270_v62, %v4487_v55  ;;  %v272_v6 = vpop.f32.mrb[11].mxu1 }
  0xef   :  { %v4535_v9 = vpack.c.bf16 %v196_v58, %v194_v0  ;;  %v200_v38 = vadd.f32 %v199_v3, %v4491_v56  ;;  %v4538_v59 = vpack.c.bf16 %v269_v61, %v267_v1  ;;  %v273_v63 = vadd.f32 %v272_v6, %v4495_v57 }
  0xf1   :  { %v4541_v50 = vpack.c.bf16 %v200_v38, %v198_v4  ;;  %v4543_v53 = vpack.c.bf16 %v273_v63, %v271_v5 }
  0xf3   :  { %5893 = vst [vmem:[#allocation7_spill] sm:$0xff] %v4541_v50  ;;  %5894 = vst [vmem:[#allocation8_spill] sm:$0xff] %v4543_v53  ;;  %v203_v52 = vpop.f32.mrb[12].mxu0  ;;  %v276_v49 = vpop.f32.mrb[12].mxu1 }
  0xf4   :  { %v204_v60 = vadd.f32 %v203_v52, %v4483_v54  ;;  %v205_v2 = vpop.f32.mrb[13].mxu0  ;;  %v277_v62 = vadd.f32 %v276_v49, %v4487_v55  ;;  %v278_v48 = vpop.f32.mrb[13].mxu1 }
  0xf5   :  { %v206_v0 = vadd.f32 %v205_v2, %v4491_v56  ;;  %v207_v58 = vpop.f32.mrb[14].mxu0  ;;  %v279_v1 = vadd.f32 %v278_v48, %v4495_v57  ;;  %v280_v61 = vpop.f32.mrb[14].mxu1  ;;  %v465_v48 = vunpack.c.l.bf16 %v4503_v10 }
  0xf6   :  { %v208_v3 = vadd.f32 %v207_v58, %v4483_v54  ;;  %v209_v4 = vpop.f32.mrb[15].mxu0  ;;  %v281_v5 = vadd.f32 %v280_v61, %v4487_v55  ;;  %v282_v6 = vpop.f32.mrb[15].mxu1  ;;  %v467_v54 = vunpack.c.l.bf16 %v4506_v29  ;;  %v466_v55 = vunpack.c.h.bf16 %v4503_v10 }
  0xf7   :  { %v4551_v38 = vpack.c.bf16 %v206_v0, %v204_v60  ;;  %v210_v63 = vadd.f32 %v209_v4, %v4491_v56  ;;  %v4554_v52 = vpack.c.bf16 %v279_v1, %v277_v62  ;;  %v283_v49 = vadd.f32 %v282_v6, %v4495_v57 }
  0xf8   :  { %v468_v60 = vunpack.c.h.bf16 %v4506_v29 }
  0xf9   :  { %5895 = vst [vmem:[#allocation9_spill] sm:$0xff] %v4554_v52  ;;  %v4557_v53 = vpack.c.bf16 %v210_v63, %v208_v3  ;;  %v4559_v2 = vpack.c.bf16 %v283_v49, %v281_v5 }
  0xfb   :  { %5896 = vst [vmem:[#allocation10_spill] sm:$0xff] %v4557_v53  ;;  %5897 = vst [vmem:[#allocation11_spill] sm:$0xff] %v4559_v2  ;;  %v664_v58 = vpop.f32.mrb[16].mxu0  ;;  %v705_v50 = vpop.f32.mrb[16].mxu1 }
  0xfc   :  { %v712_v0 = vadd.f32 %v664_v58, %v465_v48  ;;  %v714_v56 = vadd.f32 %v705_v50, %v467_v54  ;;  %v666_v62 = vpop.f32.mrb[17].mxu0  ;;  %v707_v1 = vpop.f32.mrb[17].mxu1  ;;  %v47_v54 = vld [vmem:[%s5866_s2] sm:$0xff] }
  0xfd   :  { %v713_v61 = vadd.f32 %v666_v62, %v466_v55  ;;  %v715_v57 = vadd.f32 %v707_v1, %v468_v60  ;;  %v668_v3 = vpop.f32.mrb[18].mxu0  ;;  %v709_v4 = vpop.f32.mrb[18].mxu1 }
  0xfe   :  { %v3449_v5 = vmul.f32 -1.442695, %v712_v0  ;;  %v669_v6 = vpop.f32.mrb[19].mxu0  ;;  %v710_v63 = vpop.f32.mrb[19].mxu1  ;;  %v747_v3 = vunpack.c.l.bf16 %v4511_v46 }
  0xff   :  { %v3450_v49 = vmul.f32 -1.442695, %v713_v61  ;;  %v3451_v2 = vmul.f32 -1.442695, %v715_v57  ;;  %v5898_v61 = vmov 0   ;;  %v745_v57 = vunpack.c.l.bf16 %v4509_v45 }
 0x100   :  { %3818 = vpow2.f32 %v3449_v5  ;;  %v746_v6 = vunpack.c.h.bf16 %v4509_v45  ;;  %v748_v63 = vunpack.c.h.bf16 %v4511_v46 }
 0x101   :  { %3820 = vpow2.f32 %v3450_v49 }
 0x102   :  { %3822 = vpow2.f32 %v3451_v2 }
 0x103   :  { %3824 = vtanh.f32 %v714_v56 }
 0x10a   :  { %v3819_v53 = vpop.eup %3818 }
 0x10b   :  { %v3821_v52 = vpop.eup %3820  ;;  %v719_v10 = vadd.f32 1.0, %v3819_v53 }
 0x10c   :  { %v725_v29 = vadd.f32 1.0, %v3821_v52  ;;  %v3823_v50 = vpop.eup %3822 }
 0x10d   :  { %3826 = vrcp.f32 %v719_v10  ;;  %v3825_v48 = vpop.eup %3824  ;;  %v732_v0 = vadd.f32 1.0, %v3823_v50 }
 0x10e   :  { %3828 = vrcp.f32 %v725_v29 }
 0x10f   :  { %3830 = vrcp.f32 %v732_v0 }
 0x117   :  { %v3827_v58 = vpop.eup %3826 }
 0x118   :  { %v3829_v55 = vpop.eup %3828  ;;  %v736_v60 = vmul.f32 %v3827_v58, %v3825_v48 }
 0x119   :  { %v735_v62 = vmul.f32 %v3829_v55, %v47_v54  ;;  %v3831_v53 = vpop.eup %3830 }
 0x11b   :  { %v4568_v1 = vadd.f32 %v736_v60, %v735_v62 }
 0x11d   :  { %3832 = vtanh.f32 %v4568_v1 }
 0x127   :  { %v3833_v52 = vpop.eup %3832 }
 0x128   :  { %v739_v2 = vmul.f32 %v3833_v52, %v3831_v53 }
 0x12a   :  { %v740_v56 = vpack.c.bf16 %v739_v2, %v739_v2 }
 0x12c   :  { %741 = vst [vmem:[#allocation3] sm:$0xf] %v740_v56  ;;  %782 = vmatmul.mubr.bf16.vlgmr.msra.gmra.mrb[20].mxu0 %v740_v56  ;;  %823 = vmatmul.mubr.bf16.vlgmr.msra.gmra.mrb[20].mxu1 %v740_v56 }
 0x12d   :  { %870 = vmatpush1.bf16.msra.mxu0 %v4229_v12  ;;  %911 = vmatpush1.bf16.msra.mxu1 %v4234_v13 }
 0x12e   :  { %871 = vmatprep.subr.bf16.mxu0 %v4241_v14  ;;  %912 = vmatprep.subr.bf16.mxu1 %v4246_v15 }
 0x12f   :  { %901 = vmatprep.mubr.bf16.mxu0 %v5898_v61  ;;  %942 = vmatprep.mubr.bf16.mxu1 %v5898_v61 }
 0x131   :  { %872 = vmatpush1.bf16.msra.mxu0 %v4251_v16  ;;  %913 = vmatpush1.bf16.msra.mxu1 %v4258_v17 }
 0x132   :  { %873 = vmatprep.subr.bf16.mxu0 %v4265_v18  ;;  %914 = vmatprep.subr.bf16.mxu1 %v4272_v19 }
 0x135   :  { %874 = vmatpush1.bf16.msra.mxu0 %v4282_v21  ;;  %915 = vmatpush1.bf16.msra.mxu1 %v4289_v22 }
 0x136   :  { %875 = vmatprep.subr.bf16.mxu0 %v4294_v23  ;;  %916 = vmatprep.subr.bf16.mxu1 %v4301_v24 }
 0x139   :  { %876 = vmatpush1.bf16.msra.mxu0 %v4310_v25  ;;  %917 = vmatpush1.bf16.msra.mxu1 %v4315_v26 }
 0x13a   :  { %877 = vmatprep.subr.bf16.mxu0 %v4320_v27  ;;  %918 = vmatprep.subr.bf16.mxu1 %v4327_v28 }
 0x13d   :  { %878 = vmatpush1.bf16.msra.mxu0 %v4337_v30  ;;  %919 = vmatpush1.bf16.msra.mxu1 %v4342_v31 }
 0x13e   :  { %879 = vmatprep.subr.bf16.mxu0 %v4349_v32  ;;  %920 = vmatprep.subr.bf16.mxu1 %v4356_v33 }
 0x141   :  { %880 = vmatpush1.bf16.msra.mxu0 %v4363_v34  ;;  %921 = vmatpush1.bf16.msra.mxu1 %v4370_v35 }
 0x142   :  { %881 = vmatprep.subr.bf16.mxu0 %v4377_v36  ;;  %922 = vmatprep.subr.bf16.mxu1 %v4382_v37 }
 0x145   :  { %882 = vmatpush1.bf16.msra.mxu0 %v4394_v39  ;;  %923 = vmatpush1.bf16.msra.mxu1 %v4399_v40 }
 0x146   :  { %883 = vmatprep.subr.bf16.mxu0 %v4406_v41  ;;  %924 = vmatprep.subr.bf16.mxu1 %v4411_v42 }
 0x149   :  { %884 = vmatpush1.bf16.msra.mxu0 %v4420_v43  ;;  %925 = vmatpush1.bf16.msra.mxu1 %v4425_v44 }
 0x14a   :  { %989 = vmatprep.subr.bf16.mxu0 %v4219_v8  ;;  %1030 = vmatprep.subr.bf16.mxu1 %v4224_v11 }
 0x1ff   :  { %v783_v4 = vpop.f32.mrb[20].mxu0  ;;  %v824_v5 = vpop.f32.mrb[20].mxu1 }
 0x200   :  { %v831_v49 = vadd.f32 %v783_v4, %v745_v57  ;;  %v833_v10 = vadd.f32 %v824_v5, %v747_v3  ;;  %v785_v29 = vpop.f32.mrb[21].mxu0  ;;  %v826_v50 = vpop.f32.mrb[21].mxu1 }
 0x201   :  { %v832_v48 = vadd.f32 %v785_v29, %v746_v6  ;;  %v834_v54 = vadd.f32 %v826_v50, %v748_v63  ;;  %v787_v58 = vpop.f32.mrb[22].mxu0  ;;  %v828_v55 = vpop.f32.mrb[22].mxu1 }
 0x202   :  { %v3452_v60 = vmul.f32 -1.442695, %v831_v49  ;;  %v788_v0 = vpop.f32.mrb[23].mxu0  ;;  %v829_v62 = vpop.f32.mrb[23].mxu1  ;;  %v867_v58 = vunpack.c.l.bf16 %v4522_v20 }
 0x203   :  { %v3453_v53 = vmul.f32 -1.442695, %v832_v48  ;;  %v3454_v52 = vmul.f32 -1.442695, %v834_v54  ;;  %v866_v0 = vunpack.c.h.bf16 %v4519_v7  ;;  %v868_v62 = vunpack.c.h.bf16 %v4522_v20 }
 0x204   :  { %3834 = vpow2.f32 %v3452_v60 }
 0x205   :  { %3836 = vpow2.f32 %v3453_v53 }
 0x206   :  { %3838 = vpow2.f32 %v3454_v52 }
 0x207   :  { %3840 = vtanh.f32 %v833_v10 }
 0x20e   :  { %v3835_v2 = vpop.eup %3834 }
 0x20f   :  { %v3837_v56 = vpop.eup %3836  ;;  %v838_v45 = vadd.f32 1.0, %v3835_v2 }
 0x210   :  { %v844_v46 = vadd.f32 1.0, %v3837_v56  ;;  %v3839_v57 = vpop.eup %3838 }
 0x211   :  { %3842 = vrcp.f32 %v838_v45  ;;  %v3841_v3 = vpop.eup %3840  ;;  %v851_v63 = vadd.f32 1.0, %v3839_v57 }
 0x212   :  { %3844 = vrcp.f32 %v844_v46 }
 0x213   :  { %3846 = vrcp.f32 %v851_v63 }
 0x21b   :  { %v3843_v4 = vpop.eup %3842 }
 0x21c   :  { %v3845_v5 = vpop.eup %3844  ;;  %v855_v6 = vmul.f32 %v3843_v4, %v3841_v3 }
 0x21d   :  { %v854_v49 = vmul.f32 %v3845_v5, %v4568_v1  ;;  %v3847_v50 = vpop.eup %3846  ;;  %v865_v1 = vunpack.c.l.bf16 %v4519_v7 }
 0x21f   :  { %v4610_v29 = vadd.f32 %v855_v6, %v854_v49 }
 0x221   :  { %3848 = vtanh.f32 %v4610_v29 }
 0x22b   :  { %v3849_v48 = vpop.eup %3848 }
 0x22c   :  { %v858_v54 = vmul.f32 %v3849_v48, %v3847_v50 }
 0x22e   :  { %v859_v10 = vpack.c.bf16 %v858_v54, %v858_v54 }
 0x230   :  { %861 = vst [vmem:[#allocation3 + $0x4] sm:$0xf] %v859_v10  ;;  %902 = vmatmul.mubr.bf16.vlgmr.msra.gmra.mrb[24].mxu0 %v859_v10  ;;  %943 = vmatmul.mubr.bf16.vlgmr.msra.gmra.mrb[24].mxu1 %v859_v10 }
 0x231   :  { %990 = vmatpush1.bf16.msra.mxu0 %v4229_v12  ;;  %1031 = vmatpush1.bf16.msra.mxu1 %v4234_v13 }
 0x232   :  { %991 = vmatprep.subr.bf16.mxu0 %v4241_v14  ;;  %1032 = vmatprep.subr.bf16.mxu1 %v4246_v15 }
 0x233   :  { %1021 = vmatprep.mubr.bf16.mxu0 %v5898_v61  ;;  %1062 = vmatprep.mubr.bf16.mxu1 %v5898_v61 }
 0x235   :  { %992 = vmatpush1.bf16.msra.mxu0 %v4251_v16  ;;  %1033 = vmatpush1.bf16.msra.mxu1 %v4258_v17 }
 0x236   :  { %993 = vmatprep.subr.bf16.mxu0 %v4265_v18  ;;  %1034 = vmatprep.subr.bf16.mxu1 %v4272_v19 }
 0x239   :  { %994 = vmatpush1.bf16.msra.mxu0 %v4282_v21  ;;  %1035 = vmatpush1.bf16.msra.mxu1 %v4289_v22 }
 0x23a   :  { %995 = vmatprep.subr.bf16.mxu0 %v4294_v23  ;;  %1036 = vmatprep.subr.bf16.mxu1 %v4301_v24 }
 0x23d   :  { %996 = vmatpush1.bf16.msra.mxu0 %v4310_v25  ;;  %1037 = vmatpush1.bf16.msra.mxu1 %v4315_v26 }
 0x23e   :  { %997 = vmatprep.subr.bf16.mxu0 %v4320_v27  ;;  %1038 = vmatprep.subr.bf16.mxu1 %v4327_v28 }
 0x241   :  { %998 = vmatpush1.bf16.msra.mxu0 %v4337_v30  ;;  %1039 = vmatpush1.bf16.msra.mxu1 %v4342_v31 }
 0x242   :  { %999 = vmatprep.subr.bf16.mxu0 %v4349_v32  ;;  %1040 = vmatprep.subr.bf16.mxu1 %v4356_v33 }
 0x245   :  { %1000 = vmatpush1.bf16.msra.mxu0 %v4363_v34  ;;  %1041 = vmatpush1.bf16.msra.mxu1 %v4370_v35 }
 0x246   :  { %1001 = vmatprep.subr.bf16.mxu0 %v4377_v36  ;;  %1042 = vmatprep.subr.bf16.mxu1 %v4382_v37 }
 0x249   :  { %1002 = vmatpush1.bf16.msra.mxu0 %v4394_v39  ;;  %1043 = vmatpush1.bf16.msra.mxu1 %v4399_v40 }
 0x24a   :  { %1003 = vmatprep.subr.bf16.mxu0 %v4406_v41  ;;  %1044 = vmatprep.subr.bf16.mxu1 %v4411_v42 }
 0x24d   :  { %1004 = vmatpush1.bf16.msra.mxu0 %v4420_v43  ;;  %1045 = vmatpush1.bf16.msra.mxu1 %v4425_v44 }
 0x24e   :  { %1109 = vmatprep.subr.bf16.mxu0 %v4219_v8  ;;  %1150 = vmatprep.subr.bf16.mxu1 %v4224_v11 }
 0x303   :  { %v903_v55 = vpop.f32.mrb[24].mxu0  ;;  %v944_v60 = vpop.f32.mrb[24].mxu1 }
 0x304   :  { %v951_v53 = vadd.f32 %v903_v55, %v865_v1  ;;  %v953_v52 = vadd.f32 %v944_v60, %v867_v58  ;;  %v905_v2 = vpop.f32.mrb[25].mxu0  ;;  %v946_v56 = vpop.f32.mrb[25].mxu1 }
 0x305   :  { %v952_v45 = vadd.f32 %v905_v2, %v866_v0  ;;  %v954_v46 = vadd.f32 %v946_v56, %v868_v62  ;;  %v907_v57 = vpop.f32.mrb[26].mxu0  ;;  %v948_v3 = vpop.f32.mrb[26].mxu1 }
 0x306   :  { %v3455_v4 = vmul.f32 -1.442695, %v951_v53  ;;  %v908_v5 = vpop.f32.mrb[27].mxu0  ;;  %v949_v6 = vpop.f32.mrb[27].mxu1 }
 0x307   :  { %v3456_v63 = vmul.f32 -1.442695, %v952_v45  ;;  %v3457_v49 = vmul.f32 -1.442695, %v954_v46 }
 0x308   :  { %3850 = vpow2.f32 %v3455_v4 }
 0x309   :  { %3852 = vpow2.f32 %v3456_v63 }
 0x30a   :  { %3854 = vpow2.f32 %v3457_v49 }
 0x30b   :  { %3856 = vtanh.f32 %v953_v52 }
 0x312   :  { %v3851_v50 = vpop.eup %3850 }
 0x313   :  { %v3853_v48 = vpop.eup %3852  ;;  %v958_v7 = vadd.f32 1.0, %v3851_v50 }
 0x314   :  { %v964_v20 = vadd.f32 1.0, %v3853_v48  ;;  %v3855_v54 = vpop.eup %3854 }
 0x315   :  { %3858 = vrcp.f32 %v958_v7  ;;  %v3857_v10 = vpop.eup %3856  ;;  %v971_v60 = vadd.f32 1.0, %v3855_v54 }
 0x316   :  { %3860 = vrcp.f32 %v964_v20 }
 0x317   :  { %3862 = vrcp.f32 %v971_v60  ;;  %v4700_v60 = vld [vmem:[%s5863_s4] ss:$16 sps:$4 sm:$0xff]  }
 0x31f   :  { %v3859_v1 = vpop.eup %3858 }
 0x320   :  { %v3861_v58 = vpop.eup %3860  ;;  %v975_v55 = vmul.f32 %v3859_v1, %v3857_v10 }
 0x321   :  { %v974_v0 = vmul.f32 %v3861_v58, %v4610_v29  ;;  %v3863_v53 = vpop.eup %3862 }
 0x323   :  { %v4652_v62 = vadd.f32 %v975_v55, %v974_v0  ;;  %v4706_v0 = vld [vmem:[%s5863_s4 + $0x8] ss:$16 sps:$4 sm:$0xff]  }
 0x325   :  { %3864 = vtanh.f32 %v4652_v62 }
 0x32f   :  { %v3865_v2 = vpop.eup %3864 }
 0x330   :  { %v978_v56 = vmul.f32 %v3865_v2, %v3863_v53  ;;  %v4718_v53 = vld [vmem:[%s5863_s4 + $0x2c] ss:$16 sps:$4 sm:$0xff]   ;;  %v4726_v2 = vld [vmem:[%s5863_s4 + $0x20] ss:$16 sps:$4 sm:$0xff]  }
 0x332   :  { %v979_v52 = vpack.c.bf16 %v978_v56, %v978_v56  ;;  %v4732_v56 = vld [vmem:[%s5863_s4 + $0x28] ss:$16 sps:$4 sm:$0xff]  }
 0x334   :  { %981 = vst [vmem:[#allocation3 + $0x8] sm:$0xf] %v979_v52  ;;  %1022 = vmatmul.mubr.bf16.vlgmr.msra.gmra.mrb[28].mxu0 %v979_v52  ;;  %1063 = vmatmul.mubr.bf16.vlgmr.msra.gmra.mrb[28].mxu1 %v979_v52  ;;  %v4738_v52 = vld [vmem:[%s5863_s4 + $0x44] ss:$16 sps:$4 sm:$0xff]  }
 0x335   :  { %1110 = vmatpush1.bf16.msra.mxu0 %v4229_v12  ;;  %1151 = vmatpush1.bf16.msra.mxu1 %v4234_v13  ;;  %v985_v12 = vunpack.c.l.bf16 %v4525_v47  ;;  %v987_v13 = vunpack.c.l.bf16 %v4527_v51 }
 0x336   :  { %1111 = vmatprep.subr.bf16.mxu0 %v4241_v14  ;;  %1152 = vmatprep.subr.bf16.mxu1 %v4246_v15 }
 0x337   :  { %1141 = vmatprep.mubr.bf16.mxu0 %v5898_v61  ;;  %1182 = vmatprep.mubr.bf16.mxu1 %v5898_v61 }
 0x339   :  { %1112 = vmatpush1.bf16.msra.mxu0 %v4251_v16  ;;  %1153 = vmatpush1.bf16.msra.mxu1 %v4258_v17  ;;  %v986_v16 = vunpack.c.h.bf16 %v4525_v47  ;;  %v988_v17 = vunpack.c.h.bf16 %v4527_v51 }
 0x33a   :  { %1113 = vmatprep.subr.bf16.mxu0 %v4265_v18  ;;  %1154 = vmatprep.subr.bf16.mxu1 %v4272_v19 }
 0x33d   :  { %1114 = vmatpush1.bf16.msra.mxu0 %v4282_v21  ;;  %1155 = vmatpush1.bf16.msra.mxu1 %v4289_v22 }
 0x33e   :  { %1115 = vmatprep.subr.bf16.mxu0 %v4294_v23  ;;  %1156 = vmatprep.subr.bf16.mxu1 %v4301_v24 }
 0x341   :  { %1116 = vmatpush1.bf16.msra.mxu0 %v4310_v25  ;;  %1157 = vmatpush1.bf16.msra.mxu1 %v4315_v26 }
 0x342   :  { %1117 = vmatprep.subr.bf16.mxu0 %v4320_v27  ;;  %1158 = vmatprep.subr.bf16.mxu1 %v4327_v28 }
 0x345   :  { %1118 = vmatpush1.bf16.msra.mxu0 %v4337_v30  ;;  %1159 = vmatpush1.bf16.msra.mxu1 %v4342_v31 }
 0x346   :  { %1119 = vmatprep.subr.bf16.mxu0 %v4349_v32  ;;  %1160 = vmatprep.subr.bf16.mxu1 %v4356_v33 }
 0x349   :  { %1120 = vmatpush1.bf16.msra.mxu0 %v4363_v34  ;;  %1161 = vmatpush1.bf16.msra.mxu1 %v4370_v35 }
 0x34a   :  { %1121 = vmatprep.subr.bf16.mxu0 %v4377_v36  ;;  %1162 = vmatprep.subr.bf16.mxu1 %v4382_v37 }
 0x34d   :  { %1122 = vmatpush1.bf16.msra.mxu0 %v4394_v39  ;;  %1163 = vmatpush1.bf16.msra.mxu1 %v4399_v40 }
 0x34e   :  { %1123 = vmatprep.subr.bf16.mxu0 %v4406_v41  ;;  %1164 = vmatprep.subr.bf16.mxu1 %v4411_v42 }
 0x351   :  { %1124 = vmatpush1.bf16.msra.mxu0 %v4420_v43  ;;  %1165 = vmatpush1.bf16.msra.mxu1 %v4425_v44 }
 0x352   :  { %1229 = vmatprep.subr.bf16.mxu0 %v4219_v8  ;;  %1270 = vmatprep.subr.bf16.mxu1 %v4224_v11 }
 0x407   :  { %v1023_v14 = vpop.f32.mrb[28].mxu0  ;;  %v1064_v15 = vpop.f32.mrb[28].mxu1 }
 0x408   :  { %v1071_v18 = vadd.f32 %v1023_v14, %v985_v12  ;;  %v1073_v19 = vadd.f32 %v1064_v15, %v987_v13  ;;  %v1025_v21 = vpop.f32.mrb[29].mxu0  ;;  %v1066_v22 = vpop.f32.mrb[29].mxu1  ;;  %v4744_v12 = vld [vmem:[%s5863_s4 + $0x4c] ss:$16 sps:$4 sm:$0xff]   ;;  %v4750_v13 = vld [vmem:[%s5863_s4 + $0x40] ss:$16 sps:$4 sm:$0xff]  }
 0x409   :  { %v1072_v23 = vadd.f32 %v1025_v21, %v986_v16  ;;  %v1074_v24 = vadd.f32 %v1066_v22, %v988_v17  ;;  %v1027_v29 = vpop.f32.mrb[30].mxu0  ;;  %v1068_v8 = vpop.f32.mrb[30].mxu1  ;;  %v4756_v14 = vld [vmem:[%s5863_s4 + $0x48] ss:$16 sps:$4 sm:$0xff]   ;;  %v4762_v15 = vld [vmem:[%s5863_s4 + $0x64] ss:$16 sps:$4 sm:$0xff]  }
 0x40a   :  { %v3458_v45 = vmul.f32 -1.442695, %v1071_v18  ;;  %v1028_v11 = vpop.f32.mrb[31].mxu0  ;;  %v1069_v46 = vpop.f32.mrb[31].mxu1  ;;  %v4768_v16 = vld [vmem:[%s5863_s4 + $0x6c] ss:$16 sps:$4 sm:$0xff]  }
 0x40b   :  { %v3459_v57 = vmul.f32 -1.442695, %v1072_v23  ;;  %v3460_v3 = vmul.f32 -1.442695, %v1074_v24 }
 0x40c   :  { %3866 = vpow2.f32 %v3458_v45 }
 0x40d   :  { %3868 = vpow2.f32 %v3459_v57 }
 0x40e   :  { %3870 = vpow2.f32 %v3460_v3 }
 0x40f   :  { %3872 = vtanh.f32 %v1073_v19 }
 0x416   :  { %v3867_v4 = vpop.eup %3866 }
 0x417   :  { %v3869_v5 = vpop.eup %3868  ;;  %v1078_v47 = vadd.f32 1.0, %v3867_v4 }
 0x418   :  { %v1084_v51 = vadd.f32 1.0, %v3869_v5  ;;  %v3871_v6 = vpop.eup %3870 }
 0x419   :  { %3874 = vrcp.f32 %v1078_v47  ;;  %v3873_v63 = vpop.eup %3872  ;;  %v1091_v7 = vadd.f32 1.0, %v3871_v6  ;;  %v4832_v6 = vld [vmem:[%s5863_s4 + $0x68] ss:$16 sps:$4 sm:$0xff]  }
 0x41a   :  { %3876 = vrcp.f32 %v1084_v51  ;;  %v4826_v51 = vld [vmem:[%s5863_s4 + $0x60] ss:$16 sps:$4 sm:$0xff]  }
 0x41b   :  { %3878 = vrcp.f32 %v1091_v7  ;;  %v4862_v7 = vld [vmem:[%s5863_s4 + $0xa4] ss:$16 sps:$4 sm:$0xff]  }
 0x423   :  { %v3875_v49 = vpop.eup %3874 }
 0x424   :  { %v3877_v50 = vpop.eup %3876  ;;  %v1095_v48 = vmul.f32 %v3875_v49, %v3873_v63  ;;  %v4838_v63 = vld [vmem:[%s5863_s4 + $0x84] ss:$16 sps:$4 sm:$0xff]   ;;  %v4844_v49 = vld [vmem:[%s5863_s4 + $0x8c] ss:$16 sps:$4 sm:$0xff]  }
 0x425   :  { %v1094_v20 = vmul.f32 %v3877_v50, %v4652_v62  ;;  %v3879_v10 = vpop.eup %3878  ;;  %v4712_v62 = vld [vmem:[%s5863_s4 + $0x24] ss:$16 sps:$4 sm:$0xff]   ;;  %v4850_v50 = vld [vmem:[%s5863_s4 + $0x80] ss:$16 sps:$4 sm:$0xff]  }
 0x427   :  { %v4694_v54 = vadd.f32 %v1095_v48, %v1094_v20  ;;  %v4856_v48 = vld [vmem:[%s5863_s4 + $0x88] ss:$16 sps:$4 sm:$0xff]   ;;  %v4868_v20 = vld [vmem:[%s5863_s4 + $0xac] ss:$16 sps:$4 sm:$0xff]  }
 0x429   :  { %3880 = vtanh.f32 %v4694_v54 }
 0x433   :  { %v3881_v1 = vpop.eup %3880 }
 0x434   :  { %v1098_v58 = vmul.f32 %v3881_v1, %v3879_v10  ;;  %v4880_v10 = vld [vmem:[%s5863_s4 + $0xa8] ss:$16 sps:$4 sm:$0xff]   ;;  %v4886_v1 = vld [vmem:[%s5863_s4 + $0xc4] ss:$16 sps:$4 sm:$0xff]  }
 0x436   :  { %v1099_v55 = vpack.c.bf16 %v1098_v58, %v1098_v58  ;;  %v4892_v58 = vld [vmem:[%s5863_s4 + $0xcc] ss:$16 sps:$4 sm:$0xff]  }
 0x438   :  { %1101 = vst [vmem:[#allocation3 + $0xc] sm:$0xf] %v1099_v55  ;;  %1142 = vmatmul.mubr.bf16.vlgmr.msra.gmra.mrb[32].mxu0 %v1099_v55  ;;  %1183 = vmatmul.mubr.bf16.vlgmr.msra.gmra.mrb[32].mxu1 %v1099_v55  ;;  %v4898_v55 = vld [vmem:[%s5863_s4 + $0xc0] ss:$16 sps:$4 sm:$0xff]  }
 0x439   :  { %1230 = vmatpush1.bf16.msra.mxu0 %v4700_v60  ;;  %1271 = vmatpush1.bf16.msra.mxu1 %v4706_v0 }
 0x43a   :  { %1231 = vmatprep.subr.bf16.mxu0 %v4712_v62  ;;  %1272 = vmatprep.subr.bf16.mxu1 %v4718_v53 }
 0x43b   :  { %1261 = vmatprep.mubr.bf16.mxu0 %v5898_v61  ;;  %1302 = vmatprep.mubr.bf16.mxu1 %v5898_v61 }
 0x43d   :  { %1232 = vmatpush1.bf16.msra.mxu0 %v4726_v2  ;;  %1273 = vmatpush1.bf16.msra.mxu1 %v4732_v56 }
 0x43e   :  { %1233 = vmatprep.subr.bf16.mxu0 %v4738_v52  ;;  %1274 = vmatprep.subr.bf16.mxu1 %v4744_v12 }
 0x441   :  { %1234 = vmatpush1.bf16.msra.mxu0 %v4750_v13  ;;  %1275 = vmatpush1.bf16.msra.mxu1 %v4756_v14 }
 0x442   :  { %1235 = vmatprep.subr.bf16.mxu0 %v4762_v15  ;;  %1276 = vmatprep.subr.bf16.mxu1 %v4768_v16 }
 0x445   :  { %1236 = vmatpush1.bf16.msra.mxu0 %v4310_v25  ;;  %1277 = vmatpush1.bf16.msra.mxu1 %v4315_v26  ;;  %v4792_v25 = vld [vmem:[%s5863_s4 + $0x4] ss:$16 sps:$4 sm:$0xff]   ;;  %v4798_v26 = vld [vmem:[%s5863_s4 + $0xc] ss:$16 sps:$4 sm:$0xff]  }
 0x446   :  { %1237 = vmatprep.subr.bf16.mxu0 %v4320_v27  ;;  %1278 = vmatprep.subr.bf16.mxu1 %v4327_v28  ;;  %v1105_v27 = vunpack.c.l.bf16 %v4535_v9  ;;  %v1107_v28 = vunpack.c.l.bf16 %v4538_v59 }
 0x449   :  { %1238 = vmatpush1.bf16.msra.mxu0 %v4337_v30  ;;  %1279 = vmatpush1.bf16.msra.mxu1 %v4342_v31 }
 0x44a   :  { %1239 = vmatprep.subr.bf16.mxu0 %v4349_v32  ;;  %1280 = vmatprep.subr.bf16.mxu1 %v4356_v33  ;;  %v1106_v32 = vunpack.c.h.bf16 %v4535_v9  ;;  %v1108_v33 = vunpack.c.h.bf16 %v4538_v59 }
 0x44d   :  { %1240 = vmatpush1.bf16.msra.mxu0 %v4363_v34  ;;  %1281 = vmatpush1.bf16.msra.mxu1 %v4370_v35 }
 0x44e   :  { %1241 = vmatprep.subr.bf16.mxu0 %v4377_v36  ;;  %1282 = vmatprep.subr.bf16.mxu1 %v4382_v37 }
 0x451   :  { %1242 = vmatpush1.bf16.msra.mxu0 %v4394_v39  ;;  %1283 = vmatpush1.bf16.msra.mxu1 %v4399_v40 }
 0x452   :  { %1243 = vmatprep.subr.bf16.mxu0 %v4406_v41  ;;  %1284 = vmatprep.subr.bf16.mxu1 %v4411_v42 }
 0x455   :  { %1244 = vmatpush1.bf16.msra.mxu0 %v4420_v43  ;;  %1285 = vmatpush1.bf16.msra.mxu1 %v4425_v44 }
 0x456   :  { %1349 = vmatprep.subr.bf16.mxu0 %v4792_v25  ;;  %1390 = vmatprep.subr.bf16.mxu1 %v4798_v26 }
 0x50b   :  { %v1143_v30 = vpop.f32.mrb[32].mxu0  ;;  %v1184_v31 = vpop.f32.mrb[32].mxu1 }
 0x50c   :  { %v1191_v34 = vadd.f32 %v1143_v30, %v1105_v27  ;;  %v1193_v35 = vadd.f32 %v1184_v31, %v1107_v28  ;;  %v1145_v36 = vpop.f32.mrb[33].mxu0  ;;  %v1186_v37 = vpop.f32.mrb[33].mxu1  ;;  %v4904_v27 = vld [vmem:[%s5863_s4 + $0xc8] ss:$16 sps:$4 sm:$0xff]   ;;  %v4910_v28 = vld [vmem:[%s5863_s4 + $0xe4] ss:$16 sps:$4 sm:$0xff]  }
 0x50d   :  { %v1192_v39 = vadd.f32 %v1145_v36, %v1106_v32  ;;  %v1194_v40 = vadd.f32 %v1186_v37, %v1108_v33  ;;  %v1147_v41 = vpop.f32.mrb[34].mxu0  ;;  %v1188_v42 = vpop.f32.mrb[34].mxu1  ;;  %v4916_v30 = vld [vmem:[%s5863_s4 + $0xec] ss:$16 sps:$4 sm:$0xff]   ;;  %v4922_v31 = vld [vmem:[%s5863_s4 + $0xe0] ss:$16 sps:$4 sm:$0xff]  }
 0x50e   :  { %v3461_v43 = vmul.f32 -1.442695, %v1191_v34  ;;  %v1148_v44 = vpop.f32.mrb[35].mxu0  ;;  %v1189_v17 = vpop.f32.mrb[35].mxu1  ;;  %v4928_v32 = vld [vmem:[%s5863_s4 + $0xe8] ss:$16 sps:$4 sm:$0xff]  }
 0x50f   :  { %v3462_v18 = vmul.f32 -1.442695, %v1192_v39  ;;  %v3463_v19 = vmul.f32 -1.442695, %v1194_v40  ;;  %v5899_v33 = vld [vmem:[#allocation7_spill] sm:$0xff] }
 0x510   :  { %3882 = vpow2.f32 %v3461_v43  ;;  %v1225_v34 = vunpack.c.l.bf16 %v5899_v33  ;;  %v1226_v40 = vunpack.c.h.bf16 %v5899_v33 }
 0x511   :  { %3884 = vpow2.f32 %v3462_v18 }
 0x512   :  { %3886 = vpow2.f32 %v3463_v19 }
 0x513   :  { %3888 = vtanh.f32 %v1193_v35  ;;  %v5900_v35 = vld [vmem:[#allocation8_spill] sm:$0xff] }
 0x514   :  { %v1227_v36 = vunpack.c.l.bf16 %v5900_v35  ;;  %v1228_v41 = vunpack.c.h.bf16 %v5900_v35 }
 0x51a   :  { %v3883_v21 = vpop.eup %3882 }
 0x51b   :  { %v3885_v22 = vpop.eup %3884  ;;  %v1198_v9 = vadd.f32 1.0, %v3883_v21 }
 0x51c   :  { %v1204_v59 = vadd.f32 1.0, %v3885_v22  ;;  %v3887_v23 = vpop.eup %3886 }
 0x51d   :  { %3890 = vrcp.f32 %v1198_v9  ;;  %v3889_v24 = vpop.eup %3888  ;;  %v1211_v11 = vadd.f32 1.0, %v3887_v23 }
 0x51e   :  { %3892 = vrcp.f32 %v1204_v59 }
 0x51f   :  { %3894 = vrcp.f32 %v1211_v11 }
 0x527   :  { %v3891_v29 = vpop.eup %3890 }
 0x528   :  { %v3893_v8 = vpop.eup %3892  ;;  %v1215_v45 = vmul.f32 %v3891_v29, %v3889_v24 }
 0x529   :  { %v1214_v46 = vmul.f32 %v3893_v8, %v4694_v54  ;;  %v3895_v3 = vpop.eup %3894  ;;  %v4874_v54 = vld [vmem:[%s5863_s4 + $0xa0] ss:$16 sps:$4 sm:$0xff]  }
 0x52b   :  { %v4806_v57 = vadd.f32 %v1215_v45, %v1214_v46 }
 0x52d   :  { %3896 = vtanh.f32 %v4806_v57 }
 0x537   :  { %v3897_v4 = vpop.eup %3896 }
 0x538   :  { %v1218_v5 = vmul.f32 %v3897_v4, %v3895_v3 }
 0x53a   :  { %v1219_v47 = vpack.c.bf16 %v1218_v5, %v1218_v5 }
 0x53c   :  { %1221 = vst [vmem:[#allocation3 + $0x10] sm:$0xf] %v1219_v47  ;;  %1262 = vmatmul.mubr.bf16.vlgmr.msra.gmra.mrb[36].mxu0 %v1219_v47  ;;  %1303 = vmatmul.mubr.bf16.vlgmr.msra.gmra.mrb[36].mxu1 %v1219_v47 }
 0x53d   :  { %1350 = vmatpush1.bf16.msra.mxu0 %v4700_v60  ;;  %1391 = vmatpush1.bf16.msra.mxu1 %v4706_v0 }
 0x53e   :  { %1351 = vmatprep.subr.bf16.mxu0 %v4712_v62  ;;  %1392 = vmatprep.subr.bf16.mxu1 %v4718_v53 }
 0x53f   :  { %1381 = vmatprep.mubr.bf16.mxu0 %v5898_v61  ;;  %1422 = vmatprep.mubr.bf16.mxu1 %v5898_v61 }
 0x541   :  { %1352 = vmatpush1.bf16.msra.mxu0 %v4726_v2  ;;  %1393 = vmatpush1.bf16.msra.mxu1 %v4732_v56 }
 0x542   :  { %1353 = vmatprep.subr.bf16.mxu0 %v4738_v52  ;;  %1394 = vmatprep.subr.bf16.mxu1 %v4744_v12 }
 0x545   :  { %1354 = vmatpush1.bf16.msra.mxu0 %v4750_v13  ;;  %1395 = vmatpush1.bf16.msra.mxu1 %v4756_v14 }
 0x546   :  { %1355 = vmatprep.subr.bf16.mxu0 %v4762_v15  ;;  %1396 = vmatprep.subr.bf16.mxu1 %v4768_v16 }
 0x549   :  { %1356 = vmatpush1.bf16.msra.mxu0 %v4826_v51  ;;  %1397 = vmatpush1.bf16.msra.mxu1 %v4832_v6 }
 0x54a   :  { %1357 = vmatprep.subr.bf16.mxu0 %v4838_v63  ;;  %1398 = vmatprep.subr.bf16.mxu1 %v4844_v49 }
 0x54d   :  { %1358 = vmatpush1.bf16.msra.mxu0 %v4850_v50  ;;  %1399 = vmatpush1.bf16.msra.mxu1 %v4856_v48 }
 0x54e   :  { %1359 = vmatprep.subr.bf16.mxu0 %v4862_v7  ;;  %1400 = vmatprep.subr.bf16.mxu1 %v4868_v20 }
 0x551   :  { %1360 = vmatpush1.bf16.msra.mxu0 %v4874_v54  ;;  %1401 = vmatpush1.bf16.msra.mxu1 %v4880_v10 }
 0x552   :  { %1361 = vmatprep.subr.bf16.mxu0 %v4886_v1  ;;  %1402 = vmatprep.subr.bf16.mxu1 %v4892_v58 }
 0x555   :  { %1362 = vmatpush1.bf16.msra.mxu0 %v4898_v55  ;;  %1403 = vmatpush1.bf16.msra.mxu1 %v4904_v27 }
 0x556   :  { %1363 = vmatprep.subr.bf16.mxu0 %v4910_v28  ;;  %1404 = vmatprep.subr.bf16.mxu1 %v4916_v30 }
 0x559   :  { %1364 = vmatpush1.bf16.msra.mxu0 %v4922_v31  ;;  %1405 = vmatpush1.bf16.msra.mxu1 %v4928_v32 }
 0x55a   :  { %1469 = vmatprep.subr.bf16.mxu0 %v4792_v25  ;;  %1510 = vmatprep.subr.bf16.mxu1 %v4798_v26 }
 0x60f   :  { %v1263_v37 = vpop.f32.mrb[36].mxu0  ;;  %v1304_v39 = vpop.f32.mrb[36].mxu1 }
 0x610   :  { %v1311_v42 = vadd.f32 %v1263_v37, %v1225_v34  ;;  %v1313_v43 = vadd.f32 %v1304_v39, %v1227_v36  ;;  %v1265_v44 = vpop.f32.mrb[37].mxu0  ;;  %v1306_v17 = vpop.f32.mrb[37].mxu1 }
 0x611   :  { %v1312_v18 = vadd.f32 %v1265_v44, %v1226_v40  ;;  %v1314_v19 = vadd.f32 %v1306_v17, %v1228_v41  ;;  %v1267_v21 = vpop.f32.mrb[38].mxu0  ;;  %v1308_v25 = vpop.f32.mrb[38].mxu1  ;;  %v3710_v17 = vld [vmem:[%s5867_s6] ss:$16 sps:$4 sm:$0xff]  }
 0x612   :  { %v3464_v22 = vmul.f32 -1.442695, %v1311_v42  ;;  %v1268_v26 = vpop.f32.mrb[39].mxu0  ;;  %v1309_v9 = vpop.f32.mrb[39].mxu1  ;;  %v3718_v21 = vld [vmem:[%s5867_s6 + $0x24] ss:$16 sps:$4 sm:$0xff]  }
 0x613   :  { %v3465_v59 = vmul.f32 -1.442695, %v1312_v18  ;;  %v3466_v23 = vmul.f32 -1.442695, %v1314_v19  ;;  %v3713_v18 = vld [vmem:[%s5867_s6 + $0x8] ss:$16 sps:$4 sm:$0xff]  }
 0x614   :  { %3898 = vpow2.f32 %v3464_v22  ;;  %v3721_v25 = vld [vmem:[%s5867_s6 + $0x2c] ss:$16 sps:$4 sm:$0xff]   ;;  %v3716_v22 = vld [vmem:[%s5867_s6 + $0x20] ss:$16 sps:$4 sm:$0xff]   ;;  %v3719_v26 = vld [vmem:[%s5867_s6 + $0x28] ss:$16 sps:$4 sm:$0xff]  }
 0x615   :  { %3900 = vpow2.f32 %v3465_v59  ;;  %v3724_v9 = vld [vmem:[%s5867_s6 + $0x44] ss:$16 sps:$4 sm:$0xff]   ;;  %v3727_v59 = vld [vmem:[%s5867_s6 + $0x4c] ss:$16 sps:$4 sm:$0xff]  }
 0x616   :  { %3902 = vpow2.f32 %v3466_v23  ;;  %v3722_v23 = vld [vmem:[%s5867_s6 + $0x40] ss:$16 sps:$4 sm:$0xff]  }
 0x617   :  { %3904 = vtanh.f32 %v1313_v43 }
 0x61e   :  { %v3899_v24 = vpop.eup %3898 }
 0x61f   :  { %v3901_v29 = vpop.eup %3900  ;;  %v1318_v8 = vadd.f32 1.0, %v3899_v24  ;;  %v3725_v24 = vld [vmem:[%s5867_s6 + $0x48] ss:$16 sps:$4 sm:$0xff]  }
 0x620   :  { %v1324_v45 = vadd.f32 1.0, %v3901_v29  ;;  %v3903_v11 = vpop.eup %3902  ;;  %v3730_v29 = vld [vmem:[%s5867_s6 + $0x64] ss:$16 sps:$4 sm:$0xff]  }
 0x621   :  { %3906 = vrcp.f32 %v1318_v8  ;;  %v3905_v46 = vpop.eup %3904  ;;  %v1331_v47 = vadd.f32 1.0, %v3903_v11  ;;  %v3733_v8 = vld [vmem:[%s5867_s6 + $0x6c] ss:$16 sps:$4 sm:$0xff]   ;;  %v3731_v11 = vld [vmem:[%s5867_s6 + $0x68] ss:$16 sps:$4 sm:$0xff]  }
 0x622   :  { %3908 = vrcp.f32 %v1324_v45  ;;  %v3728_v45 = vld [vmem:[%s5867_s6 + $0x60] ss:$16 sps:$4 sm:$0xff]  }
 0x623   :  { %3910 = vrcp.f32 %v1331_v47  ;;  %v3742_v47 = vld [vmem:[%s5867_s6 + $0xa4] ss:$16 sps:$4 sm:$0xff]  }
 0x62b   :  { %v3907_v3 = vpop.eup %3906 }
 0x62c   :  { %v3909_v4 = vpop.eup %3908  ;;  %v1335_v5 = vmul.f32 %v3907_v3, %v3905_v46  ;;  %v3736_v46 = vld [vmem:[%s5867_s6 + $0x84] ss:$16 sps:$4 sm:$0xff]   ;;  %v3739_v3 = vld [vmem:[%s5867_s6 + $0x8c] ss:$16 sps:$4 sm:$0xff]  }
 0x62d   :  { %v1334_v33 = vmul.f32 %v3909_v4, %v4806_v57  ;;  %v3911_v35 = vpop.eup %3910  ;;  %v3734_v4 = vld [vmem:[%s5867_s6 + $0x80] ss:$16 sps:$4 sm:$0xff]  }
 0x62f   :  { %v4938_v34 = vadd.f32 %v1335_v5, %v1334_v33  ;;  %v3737_v5 = vld [vmem:[%s5867_s6 + $0x88] ss:$16 sps:$4 sm:$0xff]   ;;  %v3745_v33 = vld [vmem:[%s5867_s6 + $0xac] ss:$16 sps:$4 sm:$0xff]  }
 0x631   :  { %3912 = vtanh.f32 %v4938_v34 }
 0x63b   :  { %v3913_v36 = vpop.eup %3912 }
 0x63c   :  { %v1338_v37 = vmul.f32 %v3913_v36, %v3911_v35  ;;  %v3743_v35 = vld [vmem:[%s5867_s6 + $0xa8] ss:$16 sps:$4 sm:$0xff]   ;;  %v3748_v36 = vld [vmem:[%s5867_s6 + $0xc4] ss:$16 sps:$4 sm:$0xff]  }
 0x63e   :  { %v1339_v39 = vpack.c.bf16 %v1338_v37, %v1338_v37  ;;  %v3751_v37 = vld [vmem:[%s5867_s6 + $0xcc] ss:$16 sps:$4 sm:$0xff]  }
 0x640   :  { %1341 = vst [vmem:[#allocation3 + $0x14] sm:$0xf] %v1339_v39  ;;  %1382 = vmatmul.mubr.bf16.vlgmr.msra.gmra.mrb[40].mxu0 %v1339_v39  ;;  %1423 = vmatmul.mubr.bf16.vlgmr.msra.gmra.mrb[40].mxu1 %v1339_v39  ;;  %v3746_v39 = vld [vmem:[%s5867_s6 + $0xc0] ss:$16 sps:$4 sm:$0xff]  }
 0x641   :  { %1470 = vmatpush1.bf16.msra.mxu0 %v4700_v60  ;;  %1511 = vmatpush1.bf16.msra.mxu1 %v4706_v0  ;;  %v3712_v60 = vld [vmem:[%s5867_s6 + $0x4] ss:$16 sps:$4 sm:$0xff]   ;;  %v3715_v0 = vld [vmem:[%s5867_s6 + $0xc] ss:$16 sps:$4 sm:$0xff]  }
 0x642   :  { %1471 = vmatprep.subr.bf16.mxu0 %v4712_v62  ;;  %1512 = vmatprep.subr.bf16.mxu1 %v4718_v53  ;;  %v1345_v62 = vunpack.c.l.bf16 %v4551_v38  ;;  %v5901_v53 = vld [vmem:[#allocation9_spill] sm:$0xff] }
 0x643   :  { %1501 = vmatprep.mubr.bf16.mxu0 %v5898_v61  ;;  %1542 = vmatprep.mubr.bf16.mxu1 %v5898_v61 }
 0x645   :  { %1472 = vmatpush1.bf16.msra.mxu0 %v4726_v2  ;;  %1513 = vmatpush1.bf16.msra.mxu1 %v4732_v56  ;;  %v1347_v2 = vunpack.c.l.bf16 %v5901_v53 }
 0x646   :  { %1473 = vmatprep.subr.bf16.mxu0 %v4738_v52  ;;  %1514 = vmatprep.subr.bf16.mxu1 %v4744_v12  ;;  %v1346_v12 = vunpack.c.h.bf16 %v4551_v38 }
 0x649   :  { %1474 = vmatpush1.bf16.msra.mxu0 %v4750_v13  ;;  %1515 = vmatpush1.bf16.msra.mxu1 %v4756_v14  ;;  %v1348_v13 = vunpack.c.h.bf16 %v5901_v53  ;;  %v3752_v53 = vld [vmem:[%s5867_s6 + $0xe0] ss:$16 sps:$4 sm:$0xff]  }
 0x64a   :  { %1475 = vmatprep.subr.bf16.mxu0 %v4762_v15  ;;  %1516 = vmatprep.subr.bf16.mxu1 %v4768_v16 }
 0x64d   :  { %1476 = vmatpush1.bf16.msra.mxu0 %v4826_v51  ;;  %1517 = vmatpush1.bf16.msra.mxu1 %v4832_v6 }
 0x64e   :  { %1477 = vmatprep.subr.bf16.mxu0 %v4838_v63  ;;  %1518 = vmatprep.subr.bf16.mxu1 %v4844_v49 }
 0x651   :  { %1478 = vmatpush1.bf16.msra.mxu0 %v4850_v50  ;;  %1519 = vmatpush1.bf16.msra.mxu1 %v4856_v48 }
 0x652   :  { %1479 = vmatprep.subr.bf16.mxu0 %v4862_v7  ;;  %1520 = vmatprep.subr.bf16.mxu1 %v4868_v20 }
 0x655   :  { %1480 = vmatpush1.bf16.msra.mxu0 %v4874_v54  ;;  %1521 = vmatpush1.bf16.msra.mxu1 %v4880_v10 }
 0x656   :  { %1481 = vmatprep.subr.bf16.mxu0 %v4886_v1  ;;  %1522 = vmatprep.subr.bf16.mxu1 %v4892_v58 }
 0x659   :  { %1482 = vmatpush1.bf16.msra.mxu0 %v4898_v55  ;;  %1523 = vmatpush1.bf16.msra.mxu1 %v4904_v27 }
 0x65a   :  { %1483 = vmatprep.subr.bf16.mxu0 %v4910_v28  ;;  %1524 = vmatprep.subr.bf16.mxu1 %v4916_v30 }
 0x65d   :  { %1484 = vmatpush1.bf16.msra.mxu0 %v4922_v31  ;;  %1525 = vmatpush1.bf16.msra.mxu1 %v4928_v32 }
 0x65e   :  { %1830 = vmatprep.subr.bf16.mxu0 %v3712_v60  ;;  %1903 = vmatprep.subr.bf16.mxu1 %v3715_v0  ;;  %v3749_v60 = vld [vmem:[%s5867_s6 + $0xc8] ss:$16 sps:$4 sm:$0xff]   ;;  %v3754_v0 = vld [vmem:[%s5867_s6 + $0xe4] ss:$16 sps:$4 sm:$0xff]  }
 0x713   :  { %v1383_v56 = vpop.f32.mrb[40].mxu0  ;;  %v1424_v52 = vpop.f32.mrb[40].mxu1 }
 0x714   :  { %v1431_v14 = vadd.f32 %v1383_v56, %v1345_v62  ;;  %v1433_v15 = vadd.f32 %v1424_v52, %v1347_v2  ;;  %v1385_v16 = vpop.f32.mrb[41].mxu0  ;;  %v1426_v57 = vpop.f32.mrb[41].mxu1  ;;  %v3757_v62 = vld [vmem:[%s5867_s6 + $0xec] ss:$16 sps:$4 sm:$0xff]   ;;  %v3755_v2 = vld [vmem:[%s5867_s6 + $0xe8] ss:$16 sps:$4 sm:$0xff]  }
 0x715   :  { %v1432_v51 = vadd.f32 %v1385_v16, %v1346_v12  ;;  %v1434_v6 = vadd.f32 %v1426_v57, %v1348_v13  ;;  %v1387_v63 = vpop.f32.mrb[42].mxu0  ;;  %v1428_v49 = vpop.f32.mrb[42].mxu1  ;;  %v3758_v56 = vld [vmem:[#allocation3] sm:$0xff]   ;;  %v3759_v52 = vld [vmem:[#allocation3 + $0x8] sm:$0xff]   ;;  %v3760_v12 = vld [vmem:[#allocation3 + $0x10] sm:$0xff]  }
 0x716   :  { %v3467_v50 = vmul.f32 -1.442695, %v1431_v14  ;;  %v1388_v48 = vpop.f32.mrb[43].mxu0  ;;  %v1429_v7 = vpop.f32.mrb[43].mxu1  ;;  %v5088_v13 = vld [vmem:[%s5868_s7 + $0x4] ss:$16 sps:$4 sm:$0xff]  }
 0x717   :  { %v3468_v20 = vmul.f32 -1.442695, %v1432_v51  ;;  %v3469_v54 = vmul.f32 -1.442695, %v1434_v6  ;;  %v5093_v14 = vld [vmem:[%s5868_s7 + $0xc] ss:$16 sps:$4 sm:$0xff]  }
 0x718   :  { %3914 = vpow2.f32 %v3467_v50  ;;  %v5104_v16 = vld [vmem:[%s5868_s7 + $0x8] ss:$16 sps:$4 sm:$0xff]   ;;  %v5112_v57 = vld [vmem:[%s5868_s7 + $0x24] ss:$16 sps:$4 sm:$0xff]   ;;  %v5117_v51 = vld [vmem:[%s5868_s7 + $0x2c] ss:$16 sps:$4 sm:$0xff]  }
 0x719   :  { %3916 = vpow2.f32 %v3468_v20  ;;  %v5122_v6 = vld [vmem:[%s5868_s7 + $0x20] ss:$16 sps:$4 sm:$0xff]   ;;  %v5127_v63 = vld [vmem:[%s5868_s7 + $0x28] ss:$16 sps:$4 sm:$0xff]   ;;  %v5136_v49 = vld [vmem:[%s5868_s7 + $0x44] ss:$16 sps:$4 sm:$0xff]  }
 0x71a   :  { %3918 = vpow2.f32 %v3469_v54  ;;  %v5141_v50 = vld [vmem:[%s5868_s7 + $0x4c] ss:$16 sps:$4 sm:$0xff]   ;;  %v5146_v48 = vld [vmem:[%s5868_s7 + $0x40] ss:$16 sps:$4 sm:$0xff]   ;;  %v5151_v7 = vld [vmem:[%s5868_s7 + $0x48] ss:$16 sps:$4 sm:$0xff]  }
 0x71b   :  { %3920 = vtanh.f32 %v1433_v15  ;;  %v5099_v15 = vld [vmem:[%s5868_s7] ss:$16 sps:$4 sm:$0xff]   ;;  %v5160_v20 = vld [vmem:[%s5868_s7 + $0x64] ss:$16 sps:$4 sm:$0xff]   ;;  %v5165_v54 = vld [vmem:[%s5868_s7 + $0x6c] ss:$16 sps:$4 sm:$0xff]  }
 0x722   :  { %v3915_v10 = vpop.eup %3914 }
 0x723   :  { %v3917_v1 = vpop.eup %3916  ;;  %v1438_v38 = vadd.f32 1.0, %v3915_v10  ;;  %v5170_v10 = vld [vmem:[%s5868_s7 + $0x60] ss:$16 sps:$4 sm:$0xff]  }
 0x724   :  { %v1444_v58 = vadd.f32 1.0, %v3917_v1  ;;  %v3919_v55 = vpop.eup %3918  ;;  %v5175_v1 = vld [vmem:[%s5868_s7 + $0x68] ss:$16 sps:$4 sm:$0xff]  }
 0x725   :  { %3922 = vrcp.f32 %v1438_v38  ;;  %v3921_v27 = vpop.eup %3920  ;;  %v1451_v32 = vadd.f32 1.0, %v3919_v55  ;;  %v5184_v38 = vld [vmem:[%s5868_s7 + $0x84] ss:$16 sps:$4 sm:$0xff]   ;;  %v5194_v55 = vld [vmem:[%s5868_s7 + $0x80] ss:$16 sps:$4 sm:$0xff]  }
 0x726   :  { %3924 = vrcp.f32 %v1444_v58  ;;  %v5189_v58 = vld [vmem:[%s5868_s7 + $0x8c] ss:$16 sps:$4 sm:$0xff]  }
 0x727   :  { %3926 = vrcp.f32 %v1451_v32  ;;  %v5223_v32 = vld [vmem:[%s5868_s7 + $0xa8] ss:$16 sps:$4 sm:$0xff]  }
 0x72f   :  { %v3923_v28 = vpop.eup %3922 }
 0x730   :  { %v3925_v30 = vpop.eup %3924  ;;  %v1455_v31 = vmul.f32 %v3923_v28, %v3921_v27  ;;  %v5199_v27 = vld [vmem:[%s5868_s7 + $0x88] ss:$16 sps:$4 sm:$0xff]   ;;  %v5208_v28 = vld [vmem:[%s5868_s7 + $0xa4] ss:$16 sps:$4 sm:$0xff]  }
 0x731   :  { %v1454_v40 = vmul.f32 %v3925_v30, %v4938_v34  ;;  %v3927_v42 = vpop.eup %3926  ;;  %v3740_v34 = vld [vmem:[%s5867_s6 + $0xa0] ss:$16 sps:$4 sm:$0xff]   ;;  %v5213_v30 = vld [vmem:[%s5868_s7 + $0xac] ss:$16 sps:$4 sm:$0xff]  }
 0x733   :  { %v4984_v41 = vadd.f32 %v1455_v31, %v1454_v40  ;;  %v5218_v31 = vld [vmem:[%s5868_s7 + $0xa0] ss:$16 sps:$4 sm:$0xff]   ;;  %v5232_v40 = vld [vmem:[%s5868_s7 + $0xc4] ss:$16 sps:$4 sm:$0xff]  }
 0x735   :  { %3928 = vtanh.f32 %v4984_v41 }
 0x73f   :  { %v3929_v43 = vpop.eup %3928 }
 0x740   :  { %v1458_v44 = vmul.f32 %v3929_v43, %v3927_v42  ;;  %v5237_v42 = vld [vmem:[%s5868_s7 + $0xcc] ss:$16 sps:$4 sm:$0xff]   ;;  %v5242_v43 = vld [vmem:[%s5868_s7 + $0xc0] ss:$16 sps:$4 sm:$0xff]  }
 0x742   :  { %v1459_v19 = vpack.c.bf16 %v1458_v44, %v1458_v44  ;;  %v5247_v44 = vld [vmem:[%s5868_s7 + $0xc8] ss:$16 sps:$4 sm:$0xff]  }
 0x744   :  { %1461 = vst [vmem:[#allocation3 + $0x18] sm:$0xf] %v1459_v19  ;;  %1502 = vmatmul.mubr.bf16.vlgmr.msra.gmra.mrb[44].mxu0 %v1459_v19  ;;  %1543 = vmatmul.mubr.bf16.vlgmr.msra.gmra.mrb[44].mxu1 %v1459_v19  ;;  %v5266_v19 = vld [vmem:[%s5868_s7 + $0xe0] ss:$16 sps:$4 sm:$0xff]  }
 0x745   :  { %1831 = vmatpush1.bf16.msra.mxu0 %v3710_v17  ;;  %1904 = vmatpush1.bf16.msra.mxu1 %v3713_v18  ;;  %v5252_v17 = vld [vmem:[%s5868_s7 + $0xe4] ss:$16 sps:$4 sm:$0xff]   ;;  %v5259_v18 = vld [vmem:[%s5868_s7 + $0xec] ss:$16 sps:$4 sm:$0xff]  }
 0x746   :  { %1832 = vmatprep.subr.bf16.mxu0 %v3718_v21  ;;  %1905 = vmatprep.subr.bf16.mxu1 %v3721_v25  ;;  %v5271_v21 = vld [vmem:[%s5868_s7 + $0xe8] ss:$16 sps:$4 sm:$0xff]   ;;  %v5902_v25 = vld [vmem:[#allocation10_spill] sm:$0xff] }
 0x747   :  { %1862 = vmatprep.mubr.bf16.mxu0 %v5898_v61  ;;  %1935 = vmatprep.mubr.bf16.mxu1 %v5898_v61 }
 0x749   :  { %1833 = vmatpush1.bf16.msra.mxu0 %v3716_v22  ;;  %1906 = vmatpush1.bf16.msra.mxu1 %v3719_v26  ;;  %v1465_v22 = vunpack.c.l.bf16 %v5902_v25  ;;  %v5903_v26 = vld [vmem:[#allocation11_spill] sm:$0xff] }
 0x74a   :  { %1834 = vmatprep.subr.bf16.mxu0 %v3724_v9  ;;  %1907 = vmatprep.subr.bf16.mxu1 %v3727_v59  ;;  %v1467_v9 = vunpack.c.l.bf16 %v5903_v26 }
 0x74d   :  { %1835 = vmatpush1.bf16.msra.mxu0 %v3722_v23  ;;  %1908 = vmatpush1.bf16.msra.mxu1 %v3725_v24  ;;  %v1466_v24 = vunpack.c.h.bf16 %v5902_v25 }
 0x74e   :  { %1836 = vmatprep.subr.bf16.mxu0 %v3730_v29  ;;  %1909 = vmatprep.subr.bf16.mxu1 %v3733_v8  ;;  %v1468_v29 = vunpack.c.h.bf16 %v5903_v26  ;;  %v5904_v26 = vld [vmem:[#allocation6_spill] sm:$0xff] }
 0x751   :  { %1837 = vmatpush1.bf16.msra.mxu0 %v3728_v45  ;;  %1910 = vmatpush1.bf16.msra.mxu1 %v3731_v11 }
 0x752   :  { %1838 = vmatprep.subr.bf16.mxu0 %v3736_v46  ;;  %1911 = vmatprep.subr.bf16.mxu1 %v3739_v3 }
 0x755   :  { %1839 = vmatpush1.bf16.msra.mxu0 %v3734_v4  ;;  %1912 = vmatpush1.bf16.msra.mxu1 %v3737_v5 }
 0x756   :  { %1840 = vmatprep.subr.bf16.mxu0 %v3742_v47  ;;  %1913 = vmatprep.subr.bf16.mxu1 %v3745_v33 }
 0x759   :  { %1841 = vmatpush1.bf16.msra.mxu0 %v3740_v34  ;;  %1914 = vmatpush1.bf16.msra.mxu1 %v3743_v35 }
 0x75a   :  { %1842 = vmatprep.subr.bf16.mxu0 %v3748_v36  ;;  %1915 = vmatprep.subr.bf16.mxu1 %v3751_v37 }
 0x75d   :  { %1843 = vmatpush1.bf16.msra.mxu0 %v3746_v39  ;;  %1916 = vmatpush1.bf16.msra.mxu1 %v3749_v60 }
 0x75e   :  { %1844 = vmatprep.subr.bf16.mxu0 %v3754_v0  ;;  %1917 = vmatprep.subr.bf16.mxu1 %v3757_v62 }
 0x761   :  { %1845 = vmatpush1.bf16.msra.mxu0 %v3752_v53  ;;  %1918 = vmatpush1.bf16.msra.mxu1 %v3755_v2  ;;  %v1624_v2 = vld [vmem:[%s5869_s8] sm:$0xf] }
 0x762   :  { %2323 = vmatprep.subr.bf16.mxu0 %v5088_v13  ;;  %2364 = vmatprep.subr.bf16.mxu1 %v5093_v14 }
 0x764   :  { %1863 = vmatmul.mubr.bf16.vlgmr.msra.gmra.mrb[48].mxu0 %v3758_v56  ;;  %1936 = vmatmul.mubr.bf16.vlgmr.msra.gmra.mrb[48].mxu1 %v3758_v56 }
 0x765   :  { %1872 = vmatprep.mubr.bf16.mxu0 %v5898_v61  ;;  %1945 = vmatprep.mubr.bf16.mxu1 %v5898_v61 }
 0x766   :  { %2324 = vmatpush1.bf16.msra.mxu0 %v5099_v15  ;;  %2365 = vmatpush1.bf16.msra.mxu1 %v5104_v16 }
 0x767   :  { %2325 = vmatprep.subr.bf16.mxu0 %v5112_v57  ;;  %2366 = vmatprep.subr.bf16.mxu1 %v5117_v51 }
 0x76a   :  { %2326 = vmatpush1.bf16.msra.mxu0 %v5122_v6  ;;  %2367 = vmatpush1.bf16.msra.mxu1 %v5127_v63 }
 0x76b   :  { %2327 = vmatprep.subr.bf16.mxu0 %v5136_v49  ;;  %2368 = vmatprep.subr.bf16.mxu1 %v5141_v50 }
 0x76c   :  { %1873 = vmatmul.mubr.bf16.gmra.mrb[52].mxu0 %v3759_v52  ;;  %1946 = vmatmul.mubr.bf16.gmra.mrb[52].mxu1 %v3759_v52 }
 0x76d   :  { %1882 = vmatprep.mubr.bf16.mxu0 %v5898_v61  ;;  %1955 = vmatprep.mubr.bf16.mxu1 %v5898_v61 }
 0x76e   :  { %2328 = vmatpush1.bf16.msra.mxu0 %v5146_v48  ;;  %2369 = vmatpush1.bf16.msra.mxu1 %v5151_v7 }
 0x76f   :  { %2329 = vmatprep.subr.bf16.mxu0 %v5160_v20  ;;  %2370 = vmatprep.subr.bf16.mxu1 %v5165_v54 }
 0x772   :  { %2330 = vmatpush1.bf16.msra.mxu0 %v5170_v10  ;;  %2371 = vmatpush1.bf16.msra.mxu1 %v5175_v1 }
 0x773   :  { %2331 = vmatprep.subr.bf16.mxu0 %v5184_v38  ;;  %2372 = vmatprep.subr.bf16.mxu1 %v5189_v58 }
 0x774   :  { %1883 = vmatmul.mubr.bf16.gmra.mrb[56].mxu0 %v3760_v12  ;;  %1956 = vmatmul.mubr.bf16.gmra.mrb[56].mxu1 %v3760_v12 }
 0x775   :  { %1892 = vmatprep.mubr.bf16.mxu0 %v5898_v61  ;;  %1965 = vmatprep.mubr.bf16.mxu1 %v5898_v61 }
 0x776   :  { %2332 = vmatpush1.bf16.msra.mxu0 %v5194_v55  ;;  %2373 = vmatpush1.bf16.msra.mxu1 %v5199_v27 }
 0x777   :  { %2333 = vmatprep.subr.bf16.mxu0 %v5208_v28  ;;  %2374 = vmatprep.subr.bf16.mxu1 %v5213_v30 }
 0x77a   :  { %2334 = vmatpush1.bf16.msra.mxu0 %v5218_v31  ;;  %2375 = vmatpush1.bf16.msra.mxu1 %v5223_v32 }
 0x77b   :  { %2335 = vmatprep.subr.bf16.mxu0 %v5232_v40  ;;  %2376 = vmatprep.subr.bf16.mxu1 %v5237_v42 }
 0x77e   :  { %2336 = vmatpush1.bf16.msra.mxu0 %v5242_v43  ;;  %2377 = vmatpush1.bf16.msra.mxu1 %v5247_v44 }
 0x77f   :  { %2337 = vmatprep.subr.bf16.mxu0 %v5252_v17  ;;  %2378 = vmatprep.subr.bf16.mxu1 %v5259_v18 }
 0x782   :  { %2338 = vmatpush1.bf16.msra.mxu0 %v5266_v19  ;;  %2379 = vmatpush1.bf16.msra.mxu1 %v5271_v21 }
 0x783   :  { %2440 = vmatprep.subr.bf16.mxu0 %v5088_v13  ;;  %2481 = vmatprep.subr.bf16.mxu1 %v5093_v14 }
 0x817   :  { %v1503_v59 = vpop.f32.mrb[44].mxu0  ;;  %v1544_v23 = vpop.f32.mrb[44].mxu1 }
 0x818   :  { %v1551_v8 = vadd.f32 %v1503_v59, %v1465_v22  ;;  %v1553_v45 = vadd.f32 %v1544_v23, %v1467_v9  ;;  %v1505_v11 = vpop.f32.mrb[45].mxu0  ;;  %v1546_v46 = vpop.f32.mrb[45].mxu1  ;;  %v5905_v9 = vsub.s32 0, %v5904_v26  ;;  %v5906_v23 = vsub.s32 2, %v5904_v26 }
 0x819   :  { %v1552_v3 = vadd.f32 %v1505_v11, %v1466_v24  ;;  %v1554_v4 = vadd.f32 %v1546_v46, %v1468_v29  ;;  %v1507_v5 = vpop.f32.mrb[46].mxu0  ;;  %v1548_v47 = vpop.f32.mrb[46].mxu1  ;;  %v5908_v11 = vsub.s32 3, %v5904_v26 }
 0x81a   :  { %v3470_v33 = vmul.f32 -1.442695, %v1551_v8  ;;  %v1508_v34 = vpop.f32.mrb[47].mxu0  ;;  %v1549_v35 = vpop.f32.mrb[47].mxu1  ;;  %v5288_v59 = vrot.slane %v1624_v2, %v5905_v9  ;;  %v5292_v24 = vrot.slane %v1624_v2, %v5906_v23  ;;  %v5907_v8 = vsub.s32 1, %v5904_v26 }
 0x81b   :  { %v3471_v36 = vmul.f32 -1.442695, %v1552_v3  ;;  %v3472_v37 = vmul.f32 -1.442695, %v1554_v4  ;;  %v5301_v46 = vrot.slane %v1624_v2, %v5908_v11 }
 0x81c   :  { %3930 = vpow2.f32 %v3470_v33 }
 0x81d   :  { %3932 = vpow2.f32 %v3471_v36 }
 0x81e   :  { %3934 = vpow2.f32 %v3472_v37 }
 0x81f   :  { %3936 = vtanh.f32 %v1553_v45  ;;  %v5297_v45 = vrot.slane %v1624_v2, %v5907_v8 }
 0x826   :  { %v3931_v39 = vpop.eup %3930 }
 0x827   :  { %v3933_v60 = vpop.eup %3932  ;;  %v1558_v0 = vadd.f32 1.0, %v3931_v39 }
 0x828   :  { %v1564_v62 = vadd.f32 1.0, %v3933_v60  ;;  %v3935_v53 = vpop.eup %3934 }
 0x829   :  { %3938 = vrcp.f32 %v1558_v0  ;;  %v3937_v56 = vpop.eup %3936  ;;  %v1571_v22 = vadd.f32 1.0, %v3935_v53 }
 0x82a   :  { %3940 = vrcp.f32 %v1564_v62 }
 0x82b   :  { %3942 = vrcp.f32 %v1571_v22 }
 0x833   :  { %v3939_v52 = vpop.eup %3938 }
 0x834   :  { %v3941_v12 = vpop.eup %3940  ;;  %v1575_v25 = vmul.f32 %v3939_v52, %v3937_v56 }
 0x835   :  { %v1574_v29 = vmul.f32 %v3941_v12, %v4984_v41 }
 0x837   :  { %v1576_v3 = vadd.f32 %v1575_v25, %v1574_v29  ;;  %v1864_v4 = vpop.f32.mrb[48].mxu0  ;;  %v1937_v5 = vpop.f32.mrb[48].mxu1 }
 0x838   :  { %v1865_v47 = vadd.f32 %v1864_v4, %v5288_v59  ;;  %v1938_v33 = vadd.f32 %v1937_v5, %v5292_v24  ;;  %v1866_v34 = vpop.f32.mrb[49].mxu0  ;;  %v1939_v35 = vpop.f32.mrb[49].mxu1 }
 0x839   :  { %3944 = vtanh.f32 %v1576_v3  ;;  %v1867_v41 = vadd.f32 %v1866_v34, %v5297_v45  ;;  %v1940_v36 = vadd.f32 %v1939_v35, %v5301_v46  ;;  %v1868_v37 = vpop.f32.mrb[50].mxu0  ;;  %v1941_v39 = vpop.f32.mrb[50].mxu1 }
 0x83a   :  { %v1869_v60 = vadd.f32 %v1868_v37, %v5288_v59  ;;  %v1942_v0 = vadd.f32 %v1941_v39, %v5292_v24  ;;  %v1870_v62 = vpop.f32.mrb[51].mxu0  ;;  %v1943_v53 = vpop.f32.mrb[51].mxu1 }
 0x83b   :  { %v5309_v2 = vpack.c.bf16 %v1867_v41, %v1865_v47  ;;  %v5311_v56 = vpack.c.bf16 %v1940_v36, %v1938_v33  ;;  %v1871_v52 = vadd.f32 %v1870_v62, %v5297_v45  ;;  %v1944_v12 = vadd.f32 %v1943_v53, %v5301_v46  ;;  %v3943_v33 = vpop.eup %3942 }
 0x83d   :  { %v5315_v25 = vpack.c.bf16 %v1871_v52, %v1869_v60  ;;  %v5317_v22 = vpack.c.bf16 %v1944_v12, %v1942_v0 }
 0x83f   :  { %v1874_v26 = vpop.f32.mrb[52].mxu0  ;;  %v1947_v9 = vpop.f32.mrb[52].mxu1 }
 0x840   :  { %v1875_v23 = vadd.f32 %v1874_v26, %v5288_v59  ;;  %v1948_v29 = vadd.f32 %v1947_v9, %v5292_v24  ;;  %v1876_v8 = vpop.f32.mrb[53].mxu0  ;;  %v1949_v11 = vpop.f32.mrb[53].mxu1 }
 0x841   :  { %v1877_v3 = vadd.f32 %v1876_v8, %v5297_v45  ;;  %v1950_v4 = vadd.f32 %v1949_v11, %v5301_v46  ;;  %v1878_v5 = vpop.f32.mrb[54].mxu0  ;;  %v1951_v47 = vpop.f32.mrb[54].mxu1 }
 0x842   :  { %v1879_v34 = vadd.f32 %v1878_v5, %v5288_v59  ;;  %v1952_v35 = vadd.f32 %v1951_v47, %v5292_v24  ;;  %v1880_v41 = vpop.f32.mrb[55].mxu0  ;;  %v1953_v36 = vpop.f32.mrb[55].mxu1 }
 0x843   :  { %v3945_v37 = vpop.eup %3944  ;;  %v5325_v39 = vpack.c.bf16 %v1877_v3, %v1875_v23  ;;  %v5327_v60 = vpack.c.bf16 %v1950_v4, %v1948_v29  ;;  %v1881_v0 = vadd.f32 %v1880_v41, %v5297_v45  ;;  %v1954_v62 = vadd.f32 %v1953_v36, %v5301_v46 }
 0x844   :  { %v1578_v53 = vmul.f32 %v3945_v37, %v3943_v33 }
 0x845   :  { %v5331_v52 = vpack.c.bf16 %v1881_v0, %v1879_v34  ;;  %v5333_v12 = vpack.c.bf16 %v1954_v62, %v1952_v35 }
 0x846   :  { %v1579_v26 = vpack.c.bf16 %v1578_v53, %v1578_v53 }
 0x847   :  { %v1884_v9 = vpop.f32.mrb[56].mxu0  ;;  %v1957_v8 = vpop.f32.mrb[56].mxu1 }
 0x848   :  { %1581 = vst [vmem:[#allocation3 + $0x1c] sm:$0xf] %v1579_v26  ;;  %v1885_v11 = vadd.f32 %v1884_v9, %v5288_v59  ;;  %v1958_v23 = vadd.f32 %v1957_v8, %v5292_v24  ;;  %v1886_v3 = vpop.f32.mrb[57].mxu0  ;;  %v1959_v29 = vpop.f32.mrb[57].mxu1 }
 0x849   :  { %v1887_v4 = vadd.f32 %v1886_v3, %v5297_v45  ;;  %v1960_v5 = vadd.f32 %v1959_v29, %v5301_v46  ;;  %v1888_v47 = vpop.f32.mrb[58].mxu0  ;;  %v1961_v33 = vpop.f32.mrb[58].mxu1 }
 0x84a   :  { %v1889_v34 = vadd.f32 %v1888_v47, %v5288_v59  ;;  %v1962_v35 = vadd.f32 %v1961_v33, %v5292_v24  ;;  %v1890_v41 = vpop.f32.mrb[59].mxu0  ;;  %v1963_v36 = vpop.f32.mrb[59].mxu1 }
 0x84b   :  { %v5341_v37 = vpack.c.bf16 %v1887_v4, %v1885_v11  ;;  %v5343_v0 = vpack.c.bf16 %v1960_v5, %v1958_v23  ;;  %v1891_v62 = vadd.f32 %v1890_v41, %v5297_v45  ;;  %v1964_v53 = vadd.f32 %v1963_v36, %v5301_v46  ;;  %v44_v11 = vld [vmem:[%s5864_s1 + $0x8] sm:$0xff] }
 0x84c   :  { %v2162_v23 = vpack.c.bf16 %v44_v11, %v44_v11 }
 0x84d   :  { %v5347_v26 = vpack.c.bf16 %v1891_v62, %v1889_v34  ;;  %v5349_v9 = vpack.c.bf16 %v1964_v53, %v1962_v35 }
 0x84f   :  { %5909 = vst [vmem:[#allocation7_spill] sm:$0xff] %v5347_v26  ;;  %5910 = vst [vmem:[#allocation8_spill] sm:$0xff] %v5349_v9  ;;  %v3797_v8 = vld [vmem:[#allocation3 + $0x18] sm:$0xff]  }
 0x850   :  { %1893 = vmatmul.mubr.bf16.gmra.mrb[60].mxu0 %v3797_v8  ;;  %1966 = vmatmul.mubr.bf16.gmra.mrb[60].mxu1 %v3797_v8 }
 0x851   :  { %2355 = vmatprep.mubr.bf16.mxu0 %v5898_v61  ;;  %2396 = vmatprep.mubr.bf16.mxu1 %v5898_v61 }
 0x858   :  { %2356 = vmatmul.mubr.bf16.vlgmr.msra.gmra.mrb[64].mxu0 %v2162_v23  ;;  %2397 = vmatmul.mubr.bf16.vlgmr.msra.gmra.mrb[64].mxu1 %v2162_v23 }
 0x859   :  { %2441 = vmatpush1.bf16.msra.mxu0 %v5099_v15  ;;  %2482 = vmatpush1.bf16.msra.mxu1 %v5104_v16 }
 0x85a   :  { %2442 = vmatprep.subr.bf16.mxu0 %v5112_v57  ;;  %2483 = vmatprep.subr.bf16.mxu1 %v5117_v51 }
 0x85b   :  { %2472 = vmatprep.mubr.bf16.mxu0 %v5898_v61  ;;  %2513 = vmatprep.mubr.bf16.mxu1 %v5898_v61 }
 0x85d   :  { %2443 = vmatpush1.bf16.msra.mxu0 %v5122_v6  ;;  %2484 = vmatpush1.bf16.msra.mxu1 %v5127_v63 }
 0x85e   :  { %2444 = vmatprep.subr.bf16.mxu0 %v5136_v49  ;;  %2485 = vmatprep.subr.bf16.mxu1 %v5141_v50 }
 0x861   :  { %2445 = vmatpush1.bf16.msra.mxu0 %v5146_v48  ;;  %2486 = vmatpush1.bf16.msra.mxu1 %v5151_v7 }
 0x862   :  { %2446 = vmatprep.subr.bf16.mxu0 %v5160_v20  ;;  %2487 = vmatprep.subr.bf16.mxu1 %v5165_v54 }
 0x865   :  { %2447 = vmatpush1.bf16.msra.mxu0 %v5170_v10  ;;  %2488 = vmatpush1.bf16.msra.mxu1 %v5175_v1 }
 0x866   :  { %2448 = vmatprep.subr.bf16.mxu0 %v5184_v38  ;;  %2489 = vmatprep.subr.bf16.mxu1 %v5189_v58 }
 0x869   :  { %2449 = vmatpush1.bf16.msra.mxu0 %v5194_v55  ;;  %2490 = vmatpush1.bf16.msra.mxu1 %v5199_v27 }
 0x86a   :  { %2450 = vmatprep.subr.bf16.mxu0 %v5208_v28  ;;  %2491 = vmatprep.subr.bf16.mxu1 %v5213_v30 }
 0x86d   :  { %2451 = vmatpush1.bf16.msra.mxu0 %v5218_v31  ;;  %2492 = vmatpush1.bf16.msra.mxu1 %v5223_v32 }
 0x86e   :  { %2452 = vmatprep.subr.bf16.mxu0 %v5232_v40  ;;  %2493 = vmatprep.subr.bf16.mxu1 %v5237_v42 }
 0x871   :  { %2453 = vmatpush1.bf16.msra.mxu0 %v5242_v43  ;;  %2494 = vmatpush1.bf16.msra.mxu1 %v5247_v44 }
 0x872   :  { %2454 = vmatprep.subr.bf16.mxu0 %v5252_v17  ;;  %2495 = vmatprep.subr.bf16.mxu1 %v5259_v18 }
 0x875   :  { %2455 = vmatpush1.bf16.msra.mxu0 %v5266_v19  ;;  %2496 = vmatpush1.bf16.msra.mxu1 %v5271_v21 }
 0x876   :  { %2557 = vmatprep.subr.bf16.mxu0 %v5088_v13  ;;  %2598 = vmatprep.subr.bf16.mxu1 %v5093_v14 }
 0x923   :  { %v1894_v3 = vpop.f32.mrb[60].mxu0  ;;  %v1967_v29 = vpop.f32.mrb[60].mxu1 }
 0x924   :  { %v1895_v4 = vadd.f32 %v1894_v3, %v5288_v59  ;;  %v1968_v5 = vadd.f32 %v1967_v29, %v5292_v24  ;;  %v1896_v47 = vpop.f32.mrb[61].mxu0  ;;  %v1969_v33 = vpop.f32.mrb[61].mxu1 }
 0x925   :  { %v1897_v34 = vadd.f32 %v1896_v47, %v5297_v45  ;;  %v1970_v35 = vadd.f32 %v1969_v33, %v5301_v46  ;;  %v1898_v41 = vpop.f32.mrb[62].mxu0  ;;  %v1971_v36 = vpop.f32.mrb[62].mxu1  ;;  %v2158_v33 = vunpack.c.l.bf16 %v5309_v2 }
 0x926   :  { %v1899_v62 = vadd.f32 %v1898_v41, %v5288_v59  ;;  %v1972_v53 = vadd.f32 %v1971_v36, %v5292_v24  ;;  %v1900_v8 = vpop.f32.mrb[63].mxu0  ;;  %v1973_v11 = vpop.f32.mrb[63].mxu1  ;;  %v2160_v59 = vunpack.c.l.bf16 %v5311_v56  ;;  %v2159_v36 = vunpack.c.h.bf16 %v5309_v2 }
 0x927   :  { %v5396_v23 = vpack.c.bf16 %v1897_v34, %v1895_v4  ;;  %v5398_v9 = vpack.c.bf16 %v1970_v35, %v1968_v5  ;;  %v1901_v3 = vadd.f32 %v1900_v8, %v5297_v45  ;;  %v1974_v29 = vadd.f32 %v1973_v11, %v5301_v46 }
 0x928   :  { %v2161_v4 = vunpack.c.h.bf16 %v5311_v56 }
 0x929   :  { %5911 = vst [vmem:[#allocation9_spill] sm:$0xff] %v5396_v23  ;;  %5912 = vst [vmem:[#allocation10_spill] sm:$0xff] %v5398_v9  ;;  %v5402_v26 = vpack.c.bf16 %v1901_v3, %v1899_v62  ;;  %v5404_v47 = vpack.c.bf16 %v1974_v29, %v1972_v53 }
 0x92b   :  { %5913 = vst [vmem:[#allocation11_spill] sm:$0xff] %v5402_v26  ;;  %5914 = vst [vmem:[#allocation6_spill] sm:$0xff] %v5404_v47  ;;  %v2357_v41 = vpop.f32.mrb[64].mxu0  ;;  %v2398_v24 = vpop.f32.mrb[64].mxu1 }
 0x92c   :  { %v2405_v5 = vadd.f32 %v2357_v41, %v2158_v33  ;;  %v2407_v34 = vadd.f32 %v2398_v24, %v2160_v59  ;;  %v2359_v35 = vpop.f32.mrb[65].mxu0  ;;  %v2400_v45 = vpop.f32.mrb[65].mxu1  ;;  %v48_v41 = vld [vmem:[%s5866_s2 + $0x8] sm:$0xff] }
 0x92d   :  { %v2406_v8 = vadd.f32 %v2359_v35, %v2159_v36  ;;  %v2408_v46 = vadd.f32 %v2400_v45, %v2161_v4  ;;  %v2361_v62 = vpop.f32.mrb[66].mxu0  ;;  %v2402_v11 = vpop.f32.mrb[66].mxu1  ;;  %v2435_v45 = vunpack.c.l.bf16 %v5315_v25 }
 0x92e   :  { %v3557_v53 = vmul.f32 -1.442695, %v2405_v5  ;;  %v2362_v3 = vpop.f32.mrb[67].mxu0  ;;  %v2403_v29 = vpop.f32.mrb[67].mxu1  ;;  %v2436_v11 = vunpack.c.h.bf16 %v5315_v25 }
 0x92f   :  { %v3558_v47 = vmul.f32 -1.442695, %v2406_v8  ;;  %v3559_v26 = vmul.f32 -1.442695, %v2408_v46  ;;  %v2437_v8 = vunpack.c.l.bf16 %v5317_v22 }
 0x930   :  { %3946 = vpow2.f32 %v3557_v53  ;;  %v2438_v53 = vunpack.c.h.bf16 %v5317_v22 }
 0x931   :  { %3948 = vpow2.f32 %v3558_v47 }
 0x932   :  { %3950 = vpow2.f32 %v3559_v26 }
 0x933   :  { %3952 = vtanh.f32 %v2407_v34 }
 0x93a   :  { %v3947_v9 = vpop.eup %3946 }
 0x93b   :  { %v3949_v23 = vpop.eup %3948  ;;  %v2412_v2 = vadd.f32 1.0, %v3947_v9 }
 0x93c   :  { %v2418_v56 = vadd.f32 1.0, %v3949_v23  ;;  %v3951_v33 = vpop.eup %3950 }
 0x93d   :  { %3954 = vrcp.f32 %v2412_v2  ;;  %v3953_v59 = vpop.eup %3952  ;;  %v2425_v5 = vadd.f32 1.0, %v3951_v33 }
 0x93e   :  { %3956 = vrcp.f32 %v2418_v56 }
 0x93f   :  { %3958 = vrcp.f32 %v2425_v5 }
 0x947   :  { %v3955_v24 = vpop.eup %3954 }
 0x948   :  { %v3957_v36 = vpop.eup %3956  ;;  %v2429_v4 = vmul.f32 %v3955_v24, %v3953_v59 }
 0x949   :  { %v2428_v47 = vmul.f32 %v3957_v36, %v48_v41  ;;  %v3959_v26 = vpop.eup %3958 }
 0x94b   :  { %v5413_v35 = vadd.f32 %v2429_v4, %v2428_v47 }
 0x94d   :  { %3960 = vtanh.f32 %v5413_v35 }
 0x957   :  { %v3961_v9 = vpop.eup %3960 }
 0x958   :  { %v2432_v23 = vmul.f32 %v3961_v9, %v3959_v26 }
 0x95a   :  { %v2439_v34 = vpack.c.bf16 %v2432_v23, %v2432_v23 }
 0x95c   :  { %2473 = vmatmul.mubr.bf16.vlgmr.msra.gmra.mrb[68].mxu0 %v2439_v34  ;;  %2514 = vmatmul.mubr.bf16.vlgmr.msra.gmra.mrb[68].mxu1 %v2439_v34 }
 0x95d   :  { %2558 = vmatpush1.bf16.msra.mxu0 %v5099_v15  ;;  %2599 = vmatpush1.bf16.msra.mxu1 %v5104_v16 }
 0x95e   :  { %2559 = vmatprep.subr.bf16.mxu0 %v5112_v57  ;;  %2600 = vmatprep.subr.bf16.mxu1 %v5117_v51 }
 0x95f   :  { %2589 = vmatprep.mubr.bf16.mxu0 %v5898_v61  ;;  %2630 = vmatprep.mubr.bf16.mxu1 %v5898_v61 }
 0x961   :  { %2560 = vmatpush1.bf16.msra.mxu0 %v5122_v6  ;;  %2601 = vmatpush1.bf16.msra.mxu1 %v5127_v63 }
 0x962   :  { %2561 = vmatprep.subr.bf16.mxu0 %v5136_v49  ;;  %2602 = vmatprep.subr.bf16.mxu1 %v5141_v50 }
 0x965   :  { %2562 = vmatpush1.bf16.msra.mxu0 %v5146_v48  ;;  %2603 = vmatpush1.bf16.msra.mxu1 %v5151_v7 }
 0x966   :  { %2563 = vmatprep.subr.bf16.mxu0 %v5160_v20  ;;  %2604 = vmatprep.subr.bf16.mxu1 %v5165_v54 }
 0x969   :  { %2564 = vmatpush1.bf16.msra.mxu0 %v5170_v10  ;;  %2605 = vmatpush1.bf16.msra.mxu1 %v5175_v1 }
 0x96a   :  { %2565 = vmatprep.subr.bf16.mxu0 %v5184_v38  ;;  %2606 = vmatprep.subr.bf16.mxu1 %v5189_v58 }
 0x96d   :  { %2566 = vmatpush1.bf16.msra.mxu0 %v5194_v55  ;;  %2607 = vmatpush1.bf16.msra.mxu1 %v5199_v27 }
 0x96e   :  { %2567 = vmatprep.subr.bf16.mxu0 %v5208_v28  ;;  %2608 = vmatprep.subr.bf16.mxu1 %v5213_v30 }
 0x971   :  { %2568 = vmatpush1.bf16.msra.mxu0 %v5218_v31  ;;  %2609 = vmatpush1.bf16.msra.mxu1 %v5223_v32 }
 0x972   :  { %2569 = vmatprep.subr.bf16.mxu0 %v5232_v40  ;;  %2610 = vmatprep.subr.bf16.mxu1 %v5237_v42 }
 0x975   :  { %2570 = vmatpush1.bf16.msra.mxu0 %v5242_v43  ;;  %2611 = vmatpush1.bf16.msra.mxu1 %v5247_v44 }
 0x976   :  { %2571 = vmatprep.subr.bf16.mxu0 %v5252_v17  ;;  %2612 = vmatprep.subr.bf16.mxu1 %v5259_v18 }
 0x979   :  { %2572 = vmatpush1.bf16.msra.mxu0 %v5266_v19  ;;  %2613 = vmatpush1.bf16.msra.mxu1 %v5271_v21 }
 0x97a   :  { %2674 = vmatprep.subr.bf16.mxu0 %v5088_v13  ;;  %2715 = vmatprep.subr.bf16.mxu1 %v5093_v14 }
 0xa2f   :  { %v2474_v46 = vpop.f32.mrb[68].mxu0  ;;  %v2515_v62 = vpop.f32.mrb[68].mxu1 }
 0xa30   :  { %v2522_v3 = vadd.f32 %v2474_v46, %v2435_v45  ;;  %v2524_v29 = vadd.f32 %v2515_v62, %v2437_v8  ;;  %v2476_v2 = vpop.f32.mrb[69].mxu0  ;;  %v2517_v56 = vpop.f32.mrb[69].mxu1 }
 0xa31   :  { %v2523_v33 = vadd.f32 %v2476_v2, %v2436_v11  ;;  %v2525_v59 = vadd.f32 %v2517_v56, %v2438_v53  ;;  %v2478_v41 = vpop.f32.mrb[70].mxu0  ;;  %v2519_v24 = vpop.f32.mrb[70].mxu1 }
 0xa32   :  { %v3560_v36 = vmul.f32 -1.442695, %v2522_v3  ;;  %v2479_v4 = vpop.f32.mrb[71].mxu0  ;;  %v2520_v5 = vpop.f32.mrb[71].mxu1 }
 0xa33   :  { %v3561_v47 = vmul.f32 -1.442695, %v2523_v33  ;;  %v3562_v26 = vmul.f32 -1.442695, %v2525_v59  ;;  %v2554_v59 = vunpack.c.l.bf16 %v5327_v60  ;;  %v2555_v4 = vunpack.c.h.bf16 %v5327_v60 }
 0xa34   :  { %3962 = vpow2.f32 %v3560_v36  ;;  %v2553_v36 = vunpack.c.h.bf16 %v5325_v39 }
 0xa35   :  { %3964 = vpow2.f32 %v3561_v47 }
 0xa36   :  { %3966 = vpow2.f32 %v3562_v26 }
 0xa37   :  { %3968 = vtanh.f32 %v2524_v29 }
 0xa3e   :  { %v3963_v9 = vpop.eup %3962 }
 0xa3f   :  { %v3965_v23 = vpop.eup %3964  ;;  %v2529_v25 = vadd.f32 1.0, %v3963_v9 }
 0xa40   :  { %v2535_v22 = vadd.f32 1.0, %v3965_v23  ;;  %v3967_v34 = vpop.eup %3966 }
 0xa41   :  { %3970 = vrcp.f32 %v2529_v25  ;;  %v3969_v45 = vpop.eup %3968  ;;  %v2542_v11 = vadd.f32 1.0, %v3967_v34 }
 0xa42   :  { %3972 = vrcp.f32 %v2535_v22 }
 0xa43   :  { %3974 = vrcp.f32 %v2542_v11 }
 0xa4b   :  { %v3971_v8 = vpop.eup %3970 }
 0xa4c   :  { %v3973_v46 = vpop.eup %3972  ;;  %v2546_v62 = vmul.f32 %v3971_v8, %v3969_v45 }
 0xa4d   :  { %v2545_v53 = vmul.f32 %v3973_v46, %v5413_v35  ;;  %v3975_v2 = vpop.eup %3974  ;;  %v2552_v35 = vunpack.c.l.bf16 %v5325_v39 }
 0xa4f   :  { %v5455_v3 = vadd.f32 %v2546_v62, %v2545_v53 }
 0xa51   :  { %3976 = vtanh.f32 %v5455_v3 }
 0xa5b   :  { %v3977_v56 = vpop.eup %3976 }
 0xa5c   :  { %v2549_v33 = vmul.f32 %v3977_v56, %v3975_v2 }
 0xa5e   :  { %v2556_v29 = vpack.c.bf16 %v2549_v33, %v2549_v33 }
 0xa60   :  { %2590 = vmatmul.mubr.bf16.vlgmr.msra.gmra.mrb[72].mxu0 %v2556_v29  ;;  %2631 = vmatmul.mubr.bf16.vlgmr.msra.gmra.mrb[72].mxu1 %v2556_v29 }
 0xa61   :  { %2675 = vmatpush1.bf16.msra.mxu0 %v5099_v15  ;;  %2716 = vmatpush1.bf16.msra.mxu1 %v5104_v16 }
 0xa62   :  { %2676 = vmatprep.subr.bf16.mxu0 %v5112_v57  ;;  %2717 = vmatprep.subr.bf16.mxu1 %v5117_v51 }
 0xa63   :  { %2706 = vmatprep.mubr.bf16.mxu0 %v5898_v61  ;;  %2747 = vmatprep.mubr.bf16.mxu1 %v5898_v61 }
 0xa65   :  { %2677 = vmatpush1.bf16.msra.mxu0 %v5122_v6  ;;  %2718 = vmatpush1.bf16.msra.mxu1 %v5127_v63 }
 0xa66   :  { %2678 = vmatprep.subr.bf16.mxu0 %v5136_v49  ;;  %2719 = vmatprep.subr.bf16.mxu1 %v5141_v50 }
 0xa69   :  { %2679 = vmatpush1.bf16.msra.mxu0 %v5146_v48  ;;  %2720 = vmatpush1.bf16.msra.mxu1 %v5151_v7 }
 0xa6a   :  { %2680 = vmatprep.subr.bf16.mxu0 %v5160_v20  ;;  %2721 = vmatprep.subr.bf16.mxu1 %v5165_v54 }
 0xa6d   :  { %2681 = vmatpush1.bf16.msra.mxu0 %v5170_v10  ;;  %2722 = vmatpush1.bf16.msra.mxu1 %v5175_v1 }
 0xa6e   :  { %2682 = vmatprep.subr.bf16.mxu0 %v5184_v38  ;;  %2723 = vmatprep.subr.bf16.mxu1 %v5189_v58 }
 0xa71   :  { %2683 = vmatpush1.bf16.msra.mxu0 %v5194_v55  ;;  %2724 = vmatpush1.bf16.msra.mxu1 %v5199_v27 }
 0xa72   :  { %2684 = vmatprep.subr.bf16.mxu0 %v5208_v28  ;;  %2725 = vmatprep.subr.bf16.mxu1 %v5213_v30 }
 0xa75   :  { %2685 = vmatpush1.bf16.msra.mxu0 %v5218_v31  ;;  %2726 = vmatpush1.bf16.msra.mxu1 %v5223_v32 }
 0xa76   :  { %2686 = vmatprep.subr.bf16.mxu0 %v5232_v40  ;;  %2727 = vmatprep.subr.bf16.mxu1 %v5237_v42 }
 0xa79   :  { %2687 = vmatpush1.bf16.msra.mxu0 %v5242_v43  ;;  %2728 = vmatpush1.bf16.msra.mxu1 %v5247_v44 }
 0xa7a   :  { %2688 = vmatprep.subr.bf16.mxu0 %v5252_v17  ;;  %2729 = vmatprep.subr.bf16.mxu1 %v5259_v18 }
 0xa7d   :  { %2689 = vmatpush1.bf16.msra.mxu0 %v5266_v19  ;;  %2730 = vmatpush1.bf16.msra.mxu1 %v5271_v21 }
 0xa7e   :  { %2791 = vmatprep.subr.bf16.mxu0 %v5088_v13  ;;  %2832 = vmatprep.subr.bf16.mxu1 %v5093_v14 }
 0xb33   :  { %v2591_v41 = vpop.f32.mrb[72].mxu0  ;;  %v2632_v24 = vpop.f32.mrb[72].mxu1 }
 0xb34   :  { %v2639_v5 = vadd.f32 %v2591_v41, %v2552_v35  ;;  %v2641_v47 = vadd.f32 %v2632_v24, %v2554_v59  ;;  %v2593_v26 = vpop.f32.mrb[73].mxu0  ;;  %v2634_v9 = vpop.f32.mrb[73].mxu1 }
 0xb35   :  { %v2640_v23 = vadd.f32 %v2593_v26, %v2553_v36  ;;  %v2642_v25 = vadd.f32 %v2634_v9, %v2555_v4  ;;  %v2595_v22 = vpop.f32.mrb[74].mxu0  ;;  %v2636_v34 = vpop.f32.mrb[74].mxu1 }
 0xb36   :  { %v3563_v45 = vmul.f32 -1.442695, %v2639_v5  ;;  %v2596_v8 = vpop.f32.mrb[75].mxu0  ;;  %v2637_v46 = vpop.f32.mrb[75].mxu1 }
 0xb37   :  { %v3564_v62 = vmul.f32 -1.442695, %v2640_v23  ;;  %v3565_v11 = vmul.f32 -1.442695, %v2642_v25 }
 0xb38   :  { %3978 = vpow2.f32 %v3563_v45 }
 0xb39   :  { %3980 = vpow2.f32 %v3564_v62 }
 0xb3a   :  { %3982 = vpow2.f32 %v3565_v11 }
 0xb3b   :  { %3984 = vtanh.f32 %v2641_v47 }
 0xb42   :  { %v3979_v53 = vpop.eup %3978 }
 0xb43   :  { %v3981_v2 = vpop.eup %3980  ;;  %v2646_v39 = vadd.f32 1.0, %v3979_v53 }
 0xb44   :  { %v2652_v60 = vadd.f32 1.0, %v3981_v2  ;;  %v3983_v56 = vpop.eup %3982 }
 0xb45   :  { %3986 = vrcp.f32 %v2646_v39  ;;  %v3985_v33 = vpop.eup %3984  ;;  %v2659_v41 = vadd.f32 1.0, %v3983_v56 }
 0xb46   :  { %3988 = vrcp.f32 %v2652_v60 }
 0xb47   :  { %3990 = vrcp.f32 %v2659_v41  ;;  %v5563_v41 = vld [vmem:[%s5868_s7 + $0x2c] ss:$16 sps:$4 sm:$0xff]  }
 0xb4f   :  { %v3987_v29 = vpop.eup %3986 }
 0xb50   :  { %v3989_v35 = vpop.eup %3988  ;;  %v2663_v59 = vmul.f32 %v3987_v29, %v3985_v33  ;;  %v5545_v29 = vld [vmem:[%s5868_s7] ss:$16 sps:$4 sm:$0xff]  }
 0xb51   :  { %v2662_v24 = vmul.f32 %v3989_v35, %v5455_v3  ;;  %v3991_v4 = vpop.eup %3990  ;;  %v5551_v35 = vld [vmem:[%s5868_s7 + $0x8] ss:$16 sps:$4 sm:$0xff]  }
 0xb53   :  { %v5497_v36 = vadd.f32 %v2663_v59, %v2662_v24  ;;  %v5557_v59 = vld [vmem:[%s5868_s7 + $0x24] ss:$16 sps:$4 sm:$0xff]   ;;  %v5571_v24 = vld [vmem:[%s5868_s7 + $0x20] ss:$16 sps:$4 sm:$0xff]  }
 0xb55   :  { %3992 = vtanh.f32 %v5497_v36 }
 0xb5f   :  { %v3993_v5 = vpop.eup %3992 }
 0xb60   :  { %v2666_v26 = vmul.f32 %v3993_v5, %v3991_v4  ;;  %v5583_v4 = vld [vmem:[%s5868_s7 + $0x44] ss:$16 sps:$4 sm:$0xff]   ;;  %v5589_v5 = vld [vmem:[%s5868_s7 + $0x4c] ss:$16 sps:$4 sm:$0xff]  }
 0xb62   :  { %v2673_v47 = vpack.c.bf16 %v2666_v26, %v2666_v26  ;;  %v5595_v26 = vld [vmem:[%s5868_s7 + $0x40] ss:$16 sps:$4 sm:$0xff]  }
 0xb64   :  { %2707 = vmatmul.mubr.bf16.vlgmr.msra.gmra.mrb[76].mxu0 %v2673_v47  ;;  %2748 = vmatmul.mubr.bf16.vlgmr.msra.gmra.mrb[76].mxu1 %v2673_v47  ;;  %v5601_v47 = vld [vmem:[%s5868_s7 + $0x48] ss:$16 sps:$4 sm:$0xff]  }
 0xb65   :  { %2792 = vmatpush1.bf16.msra.mxu0 %v5099_v15  ;;  %2833 = vmatpush1.bf16.msra.mxu1 %v5104_v16  ;;  %v2669_v15 = vunpack.c.l.bf16 %v5331_v52  ;;  %v2671_v16 = vunpack.c.l.bf16 %v5333_v12 }
 0xb66   :  { %2793 = vmatprep.subr.bf16.mxu0 %v5112_v57  ;;  %2834 = vmatprep.subr.bf16.mxu1 %v5117_v51 }
 0xb67   :  { %2823 = vmatprep.mubr.bf16.mxu0 %v5898_v61  ;;  %2864 = vmatprep.mubr.bf16.mxu1 %v5898_v61 }
 0xb69   :  { %2794 = vmatpush1.bf16.msra.mxu0 %v5122_v6  ;;  %2835 = vmatpush1.bf16.msra.mxu1 %v5127_v63  ;;  %v2670_v6 = vunpack.c.h.bf16 %v5331_v52  ;;  %v2672_v63 = vunpack.c.h.bf16 %v5333_v12 }
 0xb6a   :  { %2795 = vmatprep.subr.bf16.mxu0 %v5136_v49  ;;  %2836 = vmatprep.subr.bf16.mxu1 %v5141_v50 }
 0xb6d   :  { %2796 = vmatpush1.bf16.msra.mxu0 %v5146_v48  ;;  %2837 = vmatpush1.bf16.msra.mxu1 %v5151_v7 }
 0xb6e   :  { %2797 = vmatprep.subr.bf16.mxu0 %v5160_v20  ;;  %2838 = vmatprep.subr.bf16.mxu1 %v5165_v54 }
 0xb71   :  { %2798 = vmatpush1.bf16.msra.mxu0 %v5170_v10  ;;  %2839 = vmatpush1.bf16.msra.mxu1 %v5175_v1 }
 0xb72   :  { %2799 = vmatprep.subr.bf16.mxu0 %v5184_v38  ;;  %2840 = vmatprep.subr.bf16.mxu1 %v5189_v58 }
 0xb75   :  { %2800 = vmatpush1.bf16.msra.mxu0 %v5194_v55  ;;  %2841 = vmatpush1.bf16.msra.mxu1 %v5199_v27 }
 0xb76   :  { %2801 = vmatprep.subr.bf16.mxu0 %v5208_v28  ;;  %2842 = vmatprep.subr.bf16.mxu1 %v5213_v30 }
 0xb79   :  { %2802 = vmatpush1.bf16.msra.mxu0 %v5218_v31  ;;  %2843 = vmatpush1.bf16.msra.mxu1 %v5223_v32 }
 0xb7a   :  { %2803 = vmatprep.subr.bf16.mxu0 %v5232_v40  ;;  %2844 = vmatprep.subr.bf16.mxu1 %v5237_v42 }
 0xb7d   :  { %2804 = vmatpush1.bf16.msra.mxu0 %v5242_v43  ;;  %2845 = vmatpush1.bf16.msra.mxu1 %v5247_v44 }
 0xb7e   :  { %2805 = vmatprep.subr.bf16.mxu0 %v5252_v17  ;;  %2846 = vmatprep.subr.bf16.mxu1 %v5259_v18 }
 0xb81   :  { %2806 = vmatpush1.bf16.msra.mxu0 %v5266_v19  ;;  %2847 = vmatpush1.bf16.msra.mxu1 %v5271_v21 }
 0xb82   :  { %2908 = vmatprep.subr.bf16.mxu0 %v5088_v13  ;;  %2949 = vmatprep.subr.bf16.mxu1 %v5093_v14 }
 0xc37   :  { %v2708_v57 = vpop.f32.mrb[76].mxu0  ;;  %v2749_v51 = vpop.f32.mrb[76].mxu1 }
 0xc38   :  { %v2756_v49 = vadd.f32 %v2708_v57, %v2669_v15  ;;  %v2758_v50 = vadd.f32 %v2749_v51, %v2671_v16  ;;  %v2710_v48 = vpop.f32.mrb[77].mxu0  ;;  %v2751_v7 = vpop.f32.mrb[77].mxu1  ;;  %v5607_v15 = vld [vmem:[%s5868_s7 + $0x64] ss:$16 sps:$4 sm:$0xff]   ;;  %v5613_v16 = vld [vmem:[%s5868_s7 + $0x6c] ss:$16 sps:$4 sm:$0xff]  }
 0xc39   :  { %v2757_v20 = vadd.f32 %v2710_v48, %v2670_v6  ;;  %v2759_v54 = vadd.f32 %v2751_v7, %v2672_v63  ;;  %v2712_v10 = vpop.f32.mrb[78].mxu0  ;;  %v2753_v13 = vpop.f32.mrb[78].mxu1  ;;  %v5619_v57 = vld [vmem:[%s5868_s7 + $0x60] ss:$16 sps:$4 sm:$0xff]   ;;  %v5625_v51 = vld [vmem:[%s5868_s7 + $0x68] ss:$16 sps:$4 sm:$0xff]  }
 0xc3a   :  { %v3566_v1 = vmul.f32 -1.442695, %v2756_v49  ;;  %v2713_v14 = vpop.f32.mrb[79].mxu0  ;;  %v2754_v3 = vpop.f32.mrb[79].mxu1 }
 0xc3b   :  { %v3567_v9 = vmul.f32 -1.442695, %v2757_v20  ;;  %v3568_v23 = vmul.f32 -1.442695, %v2759_v54 }
 0xc3c   :  { %3994 = vpow2.f32 %v3566_v1 }
 0xc3d   :  { %3996 = vpow2.f32 %v3567_v9 }
 0xc3e   :  { %3998 = vpow2.f32 %v3568_v23 }
 0xc3f   :  { %4000 = vtanh.f32 %v2758_v50 }
 0xc46   :  { %v3995_v25 = vpop.eup %3994 }
 0xc47   :  { %v3997_v22 = vpop.eup %3996  ;;  %v2763_v52 = vadd.f32 1.0, %v3995_v25 }
 0xc48   :  { %v2769_v12 = vadd.f32 1.0, %v3997_v22  ;;  %v3999_v34 = vpop.eup %3998 }
 0xc49   :  { %4002 = vrcp.f32 %v2763_v52  ;;  %v4001_v45 = vpop.eup %4000  ;;  %v2776_v11 = vadd.f32 1.0, %v3999_v34  ;;  %v5683_v34 = vld [vmem:[%s5868_s7 + $0x84] ss:$16 sps:$4 sm:$0xff]  }
 0xc4a   :  { %4004 = vrcp.f32 %v2769_v12 }
 0xc4b   :  { %4006 = vrcp.f32 %v2776_v11  ;;  %v5713_v11 = vld [vmem:[%s5868_s7 + $0xac] ss:$16 sps:$4 sm:$0xff]  }
 0xc53   :  { %v4003_v8 = vpop.eup %4002 }
 0xc54   :  { %v4005_v46 = vpop.eup %4004  ;;  %v2780_v62 = vmul.f32 %v4003_v8, %v4001_v45  ;;  %v5689_v45 = vld [vmem:[%s5868_s7 + $0x8c] ss:$16 sps:$4 sm:$0xff]   ;;  %v5695_v8 = vld [vmem:[%s5868_s7 + $0x80] ss:$16 sps:$4 sm:$0xff]  }
 0xc55   :  { %v2779_v53 = vmul.f32 %v4005_v46, %v5497_v36  ;;  %v4007_v39 = vpop.eup %4006  ;;  %v5577_v36 = vld [vmem:[%s5868_s7 + $0x28] ss:$16 sps:$4 sm:$0xff]  }
 0xc56   :  { %v5701_v46 = vld [vmem:[%s5868_s7 + $0x88] ss:$16 sps:$4 sm:$0xff]  }
 0xc57   :  { %v5539_v2 = vadd.f32 %v2780_v62, %v2779_v53  ;;  %v5707_v62 = vld [vmem:[%s5868_s7 + $0xa4] ss:$16 sps:$4 sm:$0xff]   ;;  %v5719_v53 = vld [vmem:[%s5868_s7 + $0xa0] ss:$16 sps:$4 sm:$0xff]  }
 0xc59   :  { %4008 = vtanh.f32 %v5539_v2 }
 0xc63   :  { %v4009_v60 = vpop.eup %4008 }
 0xc64   :  { %v2783_v56 = vmul.f32 %v4009_v60, %v4007_v39  ;;  %v5731_v39 = vld [vmem:[%s5868_s7 + $0xc4] ss:$16 sps:$4 sm:$0xff]   ;;  %v5737_v60 = vld [vmem:[%s5868_s7 + $0xcc] ss:$16 sps:$4 sm:$0xff]  }
 0xc66   :  { %v2790_v33 = vpack.c.bf16 %v2783_v56, %v2783_v56  ;;  %v5743_v56 = vld [vmem:[%s5868_s7 + $0xc0] ss:$16 sps:$4 sm:$0xff]  }
 0xc68   :  { %2824 = vmatmul.mubr.bf16.vlgmr.msra.gmra.mrb[80].mxu0 %v2790_v33  ;;  %2865 = vmatmul.mubr.bf16.vlgmr.msra.gmra.mrb[80].mxu1 %v2790_v33  ;;  %v5749_v33 = vld [vmem:[%s5868_s7 + $0xc8] ss:$16 sps:$4 sm:$0xff]  }
 0xc69   :  { %2909 = vmatpush1.bf16.msra.mxu0 %v5545_v29  ;;  %2950 = vmatpush1.bf16.msra.mxu1 %v5551_v35 }
 0xc6a   :  { %2910 = vmatprep.subr.bf16.mxu0 %v5557_v59  ;;  %2951 = vmatprep.subr.bf16.mxu1 %v5563_v41 }
 0xc6b   :  { %2940 = vmatprep.mubr.bf16.mxu0 %v5898_v61  ;;  %2981 = vmatprep.mubr.bf16.mxu1 %v5898_v61 }
 0xc6d   :  { %2911 = vmatpush1.bf16.msra.mxu0 %v5571_v24  ;;  %2952 = vmatpush1.bf16.msra.mxu1 %v5577_v36 }
 0xc6e   :  { %2912 = vmatprep.subr.bf16.mxu0 %v5583_v4  ;;  %2953 = vmatprep.subr.bf16.mxu1 %v5589_v5 }
 0xc71   :  { %2913 = vmatpush1.bf16.msra.mxu0 %v5595_v26  ;;  %2954 = vmatpush1.bf16.msra.mxu1 %v5601_v47 }
 0xc72   :  { %2914 = vmatprep.subr.bf16.mxu0 %v5607_v15  ;;  %2955 = vmatprep.subr.bf16.mxu1 %v5613_v16 }
 0xc75   :  { %2915 = vmatpush1.bf16.msra.mxu0 %v5619_v57  ;;  %2956 = vmatpush1.bf16.msra.mxu1 %v5625_v51 }
 0xc76   :  { %2916 = vmatprep.subr.bf16.mxu0 %v5184_v38  ;;  %2957 = vmatprep.subr.bf16.mxu1 %v5189_v58  ;;  %v5647_v38 = vld [vmem:[%s5868_s7 + $0x4] ss:$16 sps:$4 sm:$0xff]   ;;  %v5653_v58 = vld [vmem:[%s5868_s7 + $0xc] ss:$16 sps:$4 sm:$0xff]  }
 0xc79   :  { %2917 = vmatpush1.bf16.msra.mxu0 %v5194_v55  ;;  %2958 = vmatpush1.bf16.msra.mxu1 %v5199_v27  ;;  %v2786_v55 = vunpack.c.l.bf16 %v5341_v37  ;;  %v2788_v27 = vunpack.c.l.bf16 %v5343_v0 }
 0xc7a   :  { %2918 = vmatprep.subr.bf16.mxu0 %v5208_v28  ;;  %2959 = vmatprep.subr.bf16.mxu1 %v5213_v30 }
 0xc7d   :  { %2919 = vmatpush1.bf16.msra.mxu0 %v5218_v31  ;;  %2960 = vmatpush1.bf16.msra.mxu1 %v5223_v32  ;;  %v2787_v31 = vunpack.c.h.bf16 %v5341_v37  ;;  %v2789_v32 = vunpack.c.h.bf16 %v5343_v0 }
 0xc7e   :  { %2920 = vmatprep.subr.bf16.mxu0 %v5232_v40  ;;  %2961 = vmatprep.subr.bf16.mxu1 %v5237_v42 }
 0xc81   :  { %2921 = vmatpush1.bf16.msra.mxu0 %v5242_v43  ;;  %2962 = vmatpush1.bf16.msra.mxu1 %v5247_v44 }
 0xc82   :  { %2922 = vmatprep.subr.bf16.mxu0 %v5252_v17  ;;  %2963 = vmatprep.subr.bf16.mxu1 %v5259_v18 }
 0xc85   :  { %2923 = vmatpush1.bf16.msra.mxu0 %v5266_v19  ;;  %2964 = vmatpush1.bf16.msra.mxu1 %v5271_v21 }
 0xc86   :  { %3025 = vmatprep.subr.bf16.mxu0 %v5647_v38  ;;  %3066 = vmatprep.subr.bf16.mxu1 %v5653_v58 }
 0xd3b   :  { %v2825_v28 = vpop.f32.mrb[80].mxu0  ;;  %v2866_v30 = vpop.f32.mrb[80].mxu1 }
 0xd3c   :  { %v2873_v40 = vadd.f32 %v2825_v28, %v2786_v55  ;;  %v2875_v42 = vadd.f32 %v2866_v30, %v2788_v27  ;;  %v2827_v43 = vpop.f32.mrb[81].mxu0  ;;  %v2868_v44 = vpop.f32.mrb[81].mxu1  ;;  %v5755_v55 = vld [vmem:[%s5868_s7 + $0xe4] ss:$16 sps:$4 sm:$0xff]   ;;  %v5761_v27 = vld [vmem:[%s5868_s7 + $0xec] ss:$16 sps:$4 sm:$0xff]  }
 0xd3d   :  { %v2874_v17 = vadd.f32 %v2827_v43, %v2787_v31  ;;  %v2876_v18 = vadd.f32 %v2868_v44, %v2789_v32  ;;  %v2829_v19 = vpop.f32.mrb[82].mxu0  ;;  %v2870_v21 = vpop.f32.mrb[82].mxu1  ;;  %v5767_v28 = vld [vmem:[%s5868_s7 + $0xe0] ss:$16 sps:$4 sm:$0xff]   ;;  %v5773_v30 = vld [vmem:[%s5868_s7 + $0xe8] ss:$16 sps:$4 sm:$0xff]  }
 0xd3e   :  { %v3569_v6 = vmul.f32 -1.442695, %v2873_v40  ;;  %v2830_v63 = vpop.f32.mrb[83].mxu0  ;;  %v2871_v49 = vpop.f32.mrb[83].mxu1  ;;  %v5915_v31 = vld [vmem:[#allocation7_spill] sm:$0xff]  ;;  %v5916_v40 = vld [vmem:[#allocation8_spill] sm:$0xff] }
 0xd3f   :  { %v3570_v50 = vmul.f32 -1.442695, %v2874_v17  ;;  %v3571_v48 = vmul.f32 -1.442695, %v2876_v18  ;;  %v2903_v32 = vunpack.c.l.bf16 %v5915_v31  ;;  %v2904_v17 = vunpack.c.h.bf16 %v5915_v31 }
 0xd40   :  { %4010 = vpow2.f32 %v3569_v6  ;;  %v2906_v18 = vunpack.c.h.bf16 %v5916_v40 }
 0xd41   :  { %4012 = vpow2.f32 %v3570_v50 }
 0xd42   :  { %4014 = vpow2.f32 %v3571_v48 }
 0xd43   :  { %4016 = vtanh.f32 %v2875_v42  ;;  %v2905_v42 = vunpack.c.l.bf16 %v5916_v40 }
 0xd4a   :  { %v4011_v7 = vpop.eup %4010 }
 0xd4b   :  { %v4013_v20 = vpop.eup %4012  ;;  %v2880_v37 = vadd.f32 1.0, %v4011_v7 }
 0xd4c   :  { %v2886_v0 = vadd.f32 1.0, %v4013_v20  ;;  %v4015_v54 = vpop.eup %4014 }
 0xd4d   :  { %4018 = vrcp.f32 %v2880_v37  ;;  %v4017_v10 = vpop.eup %4016  ;;  %v2893_v3 = vadd.f32 1.0, %v4015_v54 }
 0xd4e   :  { %4020 = vrcp.f32 %v2886_v0 }
 0xd4f   :  { %4022 = vrcp.f32 %v2893_v3 }
 0xd57   :  { %v4019_v13 = vpop.eup %4018 }
 0xd58   :  { %v4021_v1 = vpop.eup %4020  ;;  %v2897_v14 = vmul.f32 %v4019_v13, %v4017_v10 }
 0xd59   :  { %v2896_v9 = vmul.f32 %v4021_v1, %v5539_v2  ;;  %v4023_v25 = vpop.eup %4022  ;;  %v5725_v2 = vld [vmem:[%s5868_s7 + $0xa8] ss:$16 sps:$4 sm:$0xff]  }
 0xd5b   :  { %v5661_v23 = vadd.f32 %v2897_v14, %v2896_v9 }
 0xd5d   :  { %4024 = vtanh.f32 %v5661_v23 }
 0xd67   :  { %v4025_v22 = vpop.eup %4024 }
 0xd68   :  { %v2900_v52 = vmul.f32 %v4025_v22, %v4023_v25 }
 0xd6a   :  { %v2907_v12 = vpack.c.bf16 %v2900_v52, %v2900_v52 }
 0xd6c   :  { %2941 = vmatmul.mubr.bf16.vlgmr.msra.gmra.mrb[84].mxu0 %v2907_v12  ;;  %2982 = vmatmul.mubr.bf16.vlgmr.msra.gmra.mrb[84].mxu1 %v2907_v12 }
 0xd6d   :  { %3026 = vmatpush1.bf16.msra.mxu0 %v5545_v29  ;;  %3067 = vmatpush1.bf16.msra.mxu1 %v5551_v35 }
 0xd6e   :  { %3027 = vmatprep.subr.bf16.mxu0 %v5557_v59  ;;  %3068 = vmatprep.subr.bf16.mxu1 %v5563_v41 }
 0xd6f   :  { %3057 = vmatprep.mubr.bf16.mxu0 %v5898_v61  ;;  %3098 = vmatprep.mubr.bf16.mxu1 %v5898_v61 }
 0xd71   :  { %3028 = vmatpush1.bf16.msra.mxu0 %v5571_v24  ;;  %3069 = vmatpush1.bf16.msra.mxu1 %v5577_v36 }
 0xd72   :  { %3029 = vmatprep.subr.bf16.mxu0 %v5583_v4  ;;  %3070 = vmatprep.subr.bf16.mxu1 %v5589_v5 }
 0xd75   :  { %3030 = vmatpush1.bf16.msra.mxu0 %v5595_v26  ;;  %3071 = vmatpush1.bf16.msra.mxu1 %v5601_v47 }
 0xd76   :  { %3031 = vmatprep.subr.bf16.mxu0 %v5607_v15  ;;  %3072 = vmatprep.subr.bf16.mxu1 %v5613_v16 }
 0xd79   :  { %3032 = vmatpush1.bf16.msra.mxu0 %v5619_v57  ;;  %3073 = vmatpush1.bf16.msra.mxu1 %v5625_v51 }
 0xd7a   :  { %3033 = vmatprep.subr.bf16.mxu0 %v5683_v34  ;;  %3074 = vmatprep.subr.bf16.mxu1 %v5689_v45 }
 0xd7d   :  { %3034 = vmatpush1.bf16.msra.mxu0 %v5695_v8  ;;  %3075 = vmatpush1.bf16.msra.mxu1 %v5701_v46 }
 0xd7e   :  { %3035 = vmatprep.subr.bf16.mxu0 %v5707_v62  ;;  %3076 = vmatprep.subr.bf16.mxu1 %v5713_v11 }
 0xd81   :  { %3036 = vmatpush1.bf16.msra.mxu0 %v5719_v53  ;;  %3077 = vmatpush1.bf16.msra.mxu1 %v5725_v2 }
 0xd82   :  { %3037 = vmatprep.subr.bf16.mxu0 %v5731_v39  ;;  %3078 = vmatprep.subr.bf16.mxu1 %v5737_v60 }
 0xd85   :  { %3038 = vmatpush1.bf16.msra.mxu0 %v5743_v56  ;;  %3079 = vmatpush1.bf16.msra.mxu1 %v5749_v33 }
 0xd86   :  { %3039 = vmatprep.subr.bf16.mxu0 %v5755_v55  ;;  %3080 = vmatprep.subr.bf16.mxu1 %v5761_v27 }
 0xd89   :  { %3040 = vmatpush1.bf16.msra.mxu0 %v5767_v28  ;;  %3081 = vmatpush1.bf16.msra.mxu1 %v5773_v30 }
 0xd8a   :  { %3142 = vmatprep.subr.bf16.mxu0 %v5647_v38  ;;  %3183 = vmatprep.subr.bf16.mxu1 %v5653_v58 }
 0xe3f   :  { %v2942_v43 = vpop.f32.mrb[84].mxu0  ;;  %v2983_v44 = vpop.f32.mrb[84].mxu1 }
 0xe40   :  { %v2990_v19 = vadd.f32 %v2942_v43, %v2903_v32  ;;  %v2992_v21 = vadd.f32 %v2983_v44, %v2905_v42  ;;  %v2944_v6 = vpop.f32.mrb[85].mxu0  ;;  %v2985_v63 = vpop.f32.mrb[85].mxu1 }
 0xe41   :  { %v2991_v49 = vadd.f32 %v2944_v6, %v2904_v17  ;;  %v2993_v50 = vadd.f32 %v2985_v63, %v2906_v18  ;;  %v2946_v48 = vpop.f32.mrb[86].mxu0  ;;  %v2987_v38 = vpop.f32.mrb[86].mxu1  ;;  %v3810_v6 = vld [vmem:[%s5870_s9] sm:$0xff]   ;;  %v4143_v63 = vmov 0.0  }
 0xe42   :  { %v3572_v7 = vmul.f32 -1.442695, %v2990_v19  ;;  %v2947_v58 = vpop.f32.mrb[87].mxu0  ;;  %v2988_v20 = vpop.f32.mrb[87].mxu1  ;;  %v3813_v48 = vld [vmem:[%s5870_s9 + $0x18] sm:$0xff]   ;;  %v3814_v38 = vld [vmem:[%s5870_s9 + $0x20] sm:$0xff]  }
 0xe43   :  { %v3573_v37 = vmul.f32 -1.442695, %v2991_v49  ;;  %v3574_v0 = vmul.f32 -1.442695, %v2993_v50  ;;  %v3811_v49 = vld [vmem:[%s5870_s9 + $0x8] sm:$0xff]   ;;  %v3812_v50 = vld [vmem:[%s5870_s9 + $0x10] sm:$0xff]  }
 0xe44   :  { %4026 = vpow2.f32 %v3572_v7  ;;  %v3815_v7 = vld [vmem:[%s5870_s9 + $0x28] sm:$0xff]   ;;  %v3816_v58 = vld [vmem:[%s5870_s9 + $0x30] sm:$0xff]   ;;  %v3817_v20 = vld [vmem:[%s5870_s9 + $0x38] sm:$0xff]  }
 0xe45   :  { %4028 = vpow2.f32 %v3573_v37  ;;  %v5919_v37 = vld [vmem:[#allocation11_spill] sm:$0xff] }
 0xe46   :  { %4030 = vpow2.f32 %v3574_v0  ;;  %v3137_v0 = vunpack.c.l.bf16 %v5919_v37 }
 0xe47   :  { %4032 = vtanh.f32 %v2992_v21 }
 0xe4e   :  { %v4027_v54 = vpop.eup %4026 }
 0xe4f   :  { %v4029_v10 = vpop.eup %4028  ;;  %v2997_v13 = vadd.f32 1.0, %v4027_v54  ;;  %v5920_v54 = vld [vmem:[#allocation6_spill] sm:$0xff] }
 0xe50   :  { %v3003_v1 = vadd.f32 1.0, %v4029_v10  ;;  %v4031_v14 = vpop.eup %4030  ;;  %v3139_v10 = vunpack.c.l.bf16 %v5920_v54 }
 0xe51   :  { %4034 = vrcp.f32 %v2997_v13  ;;  %v4033_v3 = vpop.eup %4032  ;;  %v3010_v52 = vadd.f32 1.0, %v4031_v14  ;;  %v3138_v14 = vunpack.c.h.bf16 %v5919_v37 }
 0xe52   :  { %4036 = vrcp.f32 %v3003_v1 }
 0xe53   :  { %4038 = vrcp.f32 %v3010_v52 }
 0xe5b   :  { %v4035_v9 = vpop.eup %4034 }
 0xe5c   :  { %v4037_v25 = vpop.eup %4036  ;;  %v3014_v22 = vmul.f32 %v4035_v9, %v4033_v3  ;;  %v3140_v3 = vunpack.c.h.bf16 %v5920_v54 }
 0xe5d   :  { %v3013_v12 = vmul.f32 %v4037_v25, %v5661_v23  ;;  %v4039_v32 = vpop.eup %4038 }
 0xe5f   :  { %v5783_v31 = vadd.f32 %v3014_v22, %v3013_v12 }
 0xe61   :  { %4040 = vtanh.f32 %v5783_v31 }
 0xe6b   :  { %v4041_v40 = vpop.eup %4040 }
 0xe6c   :  { %v3017_v42 = vmul.f32 %v4041_v40, %v4039_v32 }
 0xe6e   :  { %v3024_v43 = vpack.c.bf16 %v3017_v42, %v3017_v42 }
 0xe70   :  { %3058 = vmatmul.mubr.bf16.vlgmr.msra.gmra.mrb[88].mxu0 %v3024_v43  ;;  %3099 = vmatmul.mubr.bf16.vlgmr.msra.gmra.mrb[88].mxu1 %v3024_v43 }
 0xe71   :  { %3143 = vmatpush1.bf16.msra.mxu0 %v5545_v29  ;;  %3184 = vmatpush1.bf16.msra.mxu1 %v5551_v35  ;;  %v5918_v35 = vld [vmem:[#allocation10_spill] sm:$0xff] }
 0xe72   :  { %3144 = vmatprep.subr.bf16.mxu0 %v5557_v59  ;;  %3185 = vmatprep.subr.bf16.mxu1 %v5563_v41  ;;  %v3022_v59 = vunpack.c.l.bf16 %v5918_v35 }
 0xe73   :  { %3174 = vmatprep.mubr.bf16.mxu0 %v5898_v61  ;;  %3215 = vmatprep.mubr.bf16.mxu1 %v5898_v61  ;;  %v5917_v61 = vld [vmem:[#allocation9_spill] sm:$0xff] }
 0xe74   :  { %v3020_v29 = vunpack.c.l.bf16 %v5917_v61 }
 0xe75   :  { %3145 = vmatpush1.bf16.msra.mxu0 %v5571_v24  ;;  %3186 = vmatpush1.bf16.msra.mxu1 %v5577_v36  ;;  %v3021_v36 = vunpack.c.h.bf16 %v5917_v61 }
 0xe76   :  { %3146 = vmatprep.subr.bf16.mxu0 %v5583_v4  ;;  %3187 = vmatprep.subr.bf16.mxu1 %v5589_v5  ;;  %v3023_v4 = vunpack.c.h.bf16 %v5918_v35 }
 0xe79   :  { %3147 = vmatpush1.bf16.msra.mxu0 %v5595_v26  ;;  %3188 = vmatpush1.bf16.msra.mxu1 %v5601_v47 }
 0xe7a   :  { %3148 = vmatprep.subr.bf16.mxu0 %v5607_v15  ;;  %3189 = vmatprep.subr.bf16.mxu1 %v5613_v16 }
 0xe7d   :  { %3149 = vmatpush1.bf16.msra.mxu0 %v5619_v57  ;;  %3190 = vmatpush1.bf16.msra.mxu1 %v5625_v51 }
 0xe7e   :  { %3150 = vmatprep.subr.bf16.mxu0 %v5683_v34  ;;  %3191 = vmatprep.subr.bf16.mxu1 %v5689_v45 }
 0xe81   :  { %3151 = vmatpush1.bf16.msra.mxu0 %v5695_v8  ;;  %3192 = vmatpush1.bf16.msra.mxu1 %v5701_v46 }
 0xe82   :  { %3152 = vmatprep.subr.bf16.mxu0 %v5707_v62  ;;  %3193 = vmatprep.subr.bf16.mxu1 %v5713_v11 }
 0xe85   :  { %3153 = vmatpush1.bf16.msra.mxu0 %v5719_v53  ;;  %3194 = vmatpush1.bf16.msra.mxu1 %v5725_v2 }
 0xe86   :  { %3154 = vmatprep.subr.bf16.mxu0 %v5731_v39  ;;  %3195 = vmatprep.subr.bf16.mxu1 %v5737_v60 }
 0xe89   :  { %3155 = vmatpush1.bf16.msra.mxu0 %v5743_v56  ;;  %3196 = vmatpush1.bf16.msra.mxu1 %v5749_v33 }
 0xe8a   :  { %3156 = vmatprep.subr.bf16.mxu0 %v5755_v55  ;;  %3197 = vmatprep.subr.bf16.mxu1 %v5761_v27 }
 0xe8d   :  { %3157 = vmatpush1.bf16.msra.mxu0 %v5767_v28  ;;  %3198 = vmatpush1.bf16.msra.mxu1 %v5773_v30 }
 0xe8e   :  { %3631 = vmatprep.subr.bf16.mxu0 %v4143_v63 }
 0xf43   :  { %v3059_v41 = vpop.f32.mrb[88].mxu0  ;;  %v3100_v24 = vpop.f32.mrb[88].mxu1 }
 0xf44   :  { %v3107_v5 = vadd.f32 %v3059_v41, %v3020_v29  ;;  %v3109_v26 = vadd.f32 %v3100_v24, %v3022_v59  ;;  %v3061_v47 = vpop.f32.mrb[89].mxu0  ;;  %v3102_v15 = vpop.f32.mrb[89].mxu1 }
 0xf45   :  { %v3108_v16 = vadd.f32 %v3061_v47, %v3021_v36  ;;  %v3110_v57 = vadd.f32 %v3102_v15, %v3023_v4  ;;  %v3063_v51 = vpop.f32.mrb[90].mxu0  ;;  %v3104_v23 = vpop.f32.mrb[90].mxu1 }
 0xf46   :  { %v3575_v34 = vmul.f32 -1.442695, %v3107_v5  ;;  %v3064_v45 = vpop.f32.mrb[91].mxu0  ;;  %v3105_v8 = vpop.f32.mrb[91].mxu1 }
 0xf47   :  { %v3576_v46 = vmul.f32 -1.442695, %v3108_v16  ;;  %v3577_v62 = vmul.f32 -1.442695, %v3110_v57 }
 0xf48   :  { %4042 = vpow2.f32 %v3575_v34 }
 0xf49   :  { %4044 = vpow2.f32 %v3576_v46  ;;  %v3581_v46 = vld [vmem:[%s5871_s10] ss:$0 sm:$0xff] }
 0xf4a   :  { %4046 = vpow2.f32 %v3577_v62 }
 0xf4b   :  { %4048 = vtanh.f32 %v3109_v26 }
 0xf52   :  { %v4043_v11 = vpop.eup %4042 }
 0xf53   :  { %v4045_v53 = vpop.eup %4044  ;;  %v3114_v2 = vadd.f32 1.0, %v4043_v11 }
 0xf54   :  { %v3120_v39 = vadd.f32 1.0, %v4045_v53  ;;  %v4047_v60 = vpop.eup %4046 }
 0xf55   :  { %4050 = vrcp.f32 %v3114_v2  ;;  %v4049_v56 = vpop.eup %4048  ;;  %v3127_v28 = vadd.f32 1.0, %v4047_v60 }
 0xf56   :  { %4052 = vrcp.f32 %v3120_v39 }
 0xf57   :  { %4054 = vrcp.f32 %v3127_v28 }
 0xf5f   :  { %v4051_v33 = vpop.eup %4050 }
 0xf60   :  { %v4053_v55 = vpop.eup %4052  ;;  %v3131_v27 = vmul.f32 %v4051_v33, %v4049_v56 }
 0xf61   :  { %v3130_v30 = vmul.f32 %v4053_v55, %v5783_v31  ;;  %v4055_v17 = vpop.eup %4054 }
 0xf63   :  { %v5823_v44 = vadd.f32 %v3131_v27, %v3130_v30 }
 0xf65   :  { %4056 = vtanh.f32 %v5823_v44 }
 0xf6f   :  { %v4057_v18 = vpop.eup %4056 }
 0xf70   :  { %v3134_v19 = vmul.f32 %v4057_v18, %v4055_v17 }
 0xf72   :  { %v3141_v21 = vpack.c.bf16 %v3134_v19, %v3134_v19 }
 0xf74   :  { %3175 = vmatmul.mubr.bf16.vlgmr.msra.gmra.mrb[92].mxu0 %v3141_v21  ;;  %3216 = vmatmul.mubr.bf16.vlgmr.msra.gmra.mrb[92].mxu1 %v3141_v21 }
 0xf75   :  { %3632 = vmatpush3.bf16.msra.mxu0 %v3810_v6  ;;  %3647 = vmatprep.mubr.msk.bf16.mxu0 %vm4144_vm2, %v4143_v63 }
 0xf76   :  { %3633 = vmatprep.subr.bf16.mxu0 %v4143_v63 }
 0xf79   :  { %3634 = vmatpush3.bf16.msra.mxu0 %v3811_v49 }
 0xf7a   :  { %3635 = vmatprep.subr.bf16.mxu0 %v4143_v63 }
 0xf7d   :  { %3636 = vmatpush3.bf16.msra.mxu0 %v3812_v50 }
 0xf7e   :  { %3637 = vmatprep.subr.bf16.mxu0 %v4143_v63 }
 0xf81   :  { %3638 = vmatpush3.bf16.msra.mxu0 %v3813_v48 }
 0xf82   :  { %3639 = vmatprep.subr.bf16.mxu0 %v4143_v63 }
 0xf85   :  { %3640 = vmatpush3.bf16.msra.mxu0 %v3814_v38 }
 0xf86   :  { %3641 = vmatprep.subr.bf16.mxu0 %v4143_v63 }
 0xf89   :  { %3642 = vmatpush3.bf16.msra.mxu0 %v3815_v7 }
 0xf8a   :  { %3643 = vmatprep.subr.bf16.mxu0 %v4143_v63 }
 0xf8d   :  { %3644 = vmatpush3.bf16.msra.mxu0 %v3816_v58 }
 0xf8e   :  { %3645 = vmatprep.subr.bf16.mxu0 %v4143_v63 }
 0xf91   :  { %3646 = vmatpush3.bf16.msra.mxu0 %v3817_v20 }
0x1047   :  { %v3176_v13 = vpop.f32.mrb[92].mxu0  ;;  %v3217_v1 = vpop.f32.mrb[92].mxu1 }
0x1048   :  { %v3224_v9 = vadd.f32 %v3176_v13, %v3137_v0  ;;  %v3226_v25 = vadd.f32 %v3217_v1, %v3139_v10  ;;  %v3178_v22 = vpop.f32.mrb[93].mxu0  ;;  %v3219_v52 = vpop.f32.mrb[93].mxu1 }
0x1049   :  { %v3225_v12 = vadd.f32 %v3178_v22, %v3138_v14  ;;  %v3227_v31 = vadd.f32 %v3219_v52, %v3140_v3  ;;  %v3180_v32 = vpop.f32.mrb[94].mxu0  ;;  %v3221_v40 = vpop.f32.mrb[94].mxu1 }
0x104a   :  { %v3578_v42 = vmul.f32 -1.442695, %v3224_v9  ;;  %v3181_v43 = vpop.f32.mrb[95].mxu0  ;;  %v3222_v61 = vpop.f32.mrb[95].mxu1 }
0x104b   :  { %v3579_v29 = vmul.f32 -1.442695, %v3225_v12  ;;  %v3580_v35 = vmul.f32 -1.442695, %v3227_v31 }
0x104c   :  { %4058 = vpow2.f32 %v3578_v42 }
0x104d   :  { %4060 = vpow2.f32 %v3579_v29 }
0x104e   :  { %4062 = vpow2.f32 %v3580_v35 }
0x104f   :  { %4064 = vtanh.f32 %v3226_v25 }
0x1056   :  { %v4059_v59 = vpop.eup %4058 }
0x1057   :  { %v4061_v41 = vpop.eup %4060  ;;  %v3231_v24 = vadd.f32 1.0, %v4059_v59 }
0x1058   :  { %v3237_v36 = vadd.f32 1.0, %v4061_v41  ;;  %v4063_v4 = vpop.eup %4062 }
0x1059   :  { %4066 = vrcp.f32 %v3231_v24  ;;  %v4065_v5 = vpop.eup %4064  ;;  %v3244_v16 = vadd.f32 1.0, %v4063_v4 }
0x105a   :  { %4068 = vrcp.f32 %v3237_v36 }
0x105b   :  { %4070 = vrcp.f32 %v3244_v16 }
0x1063   :  { %v4067_v26 = vpop.eup %4066 }
0x1064   :  { %v4069_v47 = vpop.eup %4068  ;;  %v3248_v15 = vmul.f32 %v4067_v26, %v4065_v5 }
0x1065   :  { %v3247_v57 = vmul.f32 %v4069_v47, %v5823_v44  ;;  %v4071_v23 = vpop.eup %4070 }
0x1067   :  { %v3249_v51 = vadd.f32 %v3248_v15, %v3247_v57 }
0x1069   :  { %4072 = vtanh.f32 %v3249_v51 }
0x1073   :  { %v4073_v34 = vpop.eup %4072 }
0x1074   :  { %v3251_v45 = vmul.f32 %v4073_v34, %v4071_v23 }
0x1076   :  { %v3257_v8 = vpack.c.bf16 %v3251_v45, %v3251_v45 }
0x1078   :  { %3648 = vmatmul.mubr.bf16.vlgmr.msra.gmra.mrb[96].mxu0 %v3257_v8 }
0x114b   :  { %v3363_v62 = vpop.f32.mrb[96].mxu0 }
0x114c   :  { %v3364_v11 = vadd.f32 %v3581_v46, %v3363_v62  ;;  %v3649_v53 = vpop.f32.mrb[97].mxu0 }
0x114d   :  { %v3366_v2 = vpop.f32.mrb[98].mxu0 }
0x114e   :  { %3369 = vmax.xlane.f32.xlu0 %v3364_v11  ;;  %v3650_v39 = vpop.f32.mrb[99].mxu0 }
0x11db   :  { %v3370_v60 = vpop.xlane.xlu0 %3369 }
0x11dc   :  { %v3371_v56 = vsub.f32 %v3364_v11, %v3370_v60 }
0x11de   :  { %v3372_v33 = vmul.f32 1.442695, %v3371_v56 }
0x11e0   :  { %4074 = vpow2.f32 %v3372_v33 }
0x11ea   :  { %v4075_v55 = vpop.eup %4074 }
0x11eb   :  { %3374 = vadd.xlane.f32.xlu0 %v4075_v55 }
0x1278   :  { %v3375_v27 = vpop.xlane.xlu0 %3374 }
0x1279   :  { %4076 = vrcp.f32 %v3375_v27 }
0x1283   :  { %v4077_v28 = vpop.eup %4076 }
0x1284   :  { %v3377_v30 = vmul.f32 %v4077_v28, %v4075_v55 }
0x1286   :  { %3378 = vst [vmem:[%s5872_s11] sm:$0xff] %v3377_v30 }

</bundles_post_ra>
